<compile_context>
chip_gen: v7x
topology: tpu7x:2x2x1
jax: 0.10.0
libtpu: 0.0.40
codegen_flags: <defaults>
</compile_context>

<pallas_src>
import functools

import jax
import jax.numpy as jnp
from jax import lax
from jax.experimental import pallas as pl
from jax.experimental.pallas import tpu as pltpu


# ----------------------------- fused Pallas kernel --------------------------

def _bottleneck_kernel(x_ref, w1_ref, s1_ref, b1_ref,
                       w2_ref, s2_ref, b2_ref, w3_ref, s3_ref, b3_ref,
                       o_ref, *, th, h, w, wpad):
    """One (batch, row-tile) step of the fused bottleneck block.

    x_ref    : (1, H+2, wpad, Cin) f32  whole zero-padded image for this batch
    w1/w2/w3 : (Cin,P) / (9,P,P) / (P,Cout) bf16 conv weights
    s*/b*    : (1, C) f32 folded BN scale / bias
    o_ref    : (1, th, W, Cout) bf16 output row tile
    """
    planes = w1_ref.shape[1]
    cout = w3_ref.shape[1]
    padf = (th + 2) * wpad          # flat rows of the (halo) window
    outf = th * wpad                # flat rows of the output tile (incl. pad cols)

    r = pl.program_id(1)
    r0 = r * th                     # first padded-image row of this tile's window
    if th % 8 == 0:
        r0 = pl.multiple_of(r0, 8)

    # ---- halo window of the padded input, flattened.  wpad % 8 == 0 makes the
    # reshape a layout no-op.  Kept in f32 so the residual is exact.
    xw = x_ref[0, pl.ds(r0, th + 2), :, :]            # (th+2, wpad, cin)
    x2d = xw.reshape(padf, -1)                        # (padf, cin) f32

    # ---- conv1 (1x1) + BN + ReLU in flat layout.
    z1 = jnp.dot(x2d.astype(jnp.bfloat16), w1_ref[...],
                 preferred_element_type=jnp.float32)
    y1 = jnp.maximum(z1 * s1_ref[...] + b1_ref[...], 0.0)

    # Zero the padding ring: conv2's zero padding is padding of conv1's OUTPUT.
    # Row mask (whole wpad-slabs) directly in the flat domain; column mask via a
    # 2-D iota over the (wpad, planes) tile.  Both iotas are plain 2-D.
    p_idx = lax.broadcasted_iota(jnp.int32, (padf, planes), 0)
    row_ok = (p_idx >= (1 - r0) * wpad) & (p_idx < (h + 1 - r0) * wpad)
    y1 = jnp.where(row_ok, y1, 0.0)
    c_idx = lax.broadcasted_iota(jnp.int32, (wpad, planes), 0)
    col_ok = (c_idx >= 1) & (c_idx <= w)
    y1 = jnp.where(col_ok[None], y1.reshape(th + 2, wpad, planes), 0.0)
    y1 = y1.reshape(padf, planes)

    # ---- pre-build the dw in {0,1,2} column-shifted copies with pltpu.roll so
    # every conv2 tap slice below starts at a multiple of wpad (8-aligned).
    # roll(x, padf-dw)[p] == x[(p+dw) mod padf]; the few wrapped rows only land
    # in dropped (>= W) output columns.
    y1s = [y1,
           pltpu.roll(y1, padf - 1, axis=0),
           pltpu.roll(y1, padf - 2, axis=0)]
    y1s = [a.astype(jnp.bfloat16) for a in y1s]

    # ---- conv2 (3x3, pad=1) + BN + ReLU: 9 aligned flat matmuls,
    # 3 independent accumulation chains (one per row tap dh).
    parts = []
    for dh in range(3):
        base = dh * wpad
        part = jnp.dot(y1s[0][base:base + outf, :], w2_ref[dh * 3 + 0],
                       preferred_element_type=jnp.float32)
        for dw in (1, 2):
            part = part + jnp.dot(y1s[dw][base:base + outf, :],
                                  w2_ref[dh * 3 + dw],
                                  preferred_element_type=jnp.float32)
        parts.append(part)
    acc = parts[0] + parts[1] + parts[2]
    y2 = jnp.maximum(acc * s2_ref[...] + b2_ref[...], 0.0).astype(jnp.bfloat16)

    # ---- conv3 (1x1) + BN + residual (exact f32) + ReLU.
    z3 = jnp.dot(y2, w3_ref[...], preferred_element_type=jnp.float32)
    # residual at output flat index q is x2d[q + wpad + 1]; roll by +1 then an
    # 8-aligned slice at offset wpad (no wrap-around for q < outf).
    res = pltpu.roll(x2d, padf - 1, axis=0)[wpad:wpad + outf, :]
    out = jnp.maximum(z3 * s3_ref[...] + b3_ref[...] + res, 0.0)

    # ---- drop the pad columns and store the (th, W, Cout) tile in bf16.
    out = out.reshape(th, wpad, cout)[:, :w, :]
    o_ref[...] = out[None].astype(o_ref.dtype)


# --------------------------------- wrapper ----------------------------------

def bottleneck_forward(x_nchw, params, *, tile_h=32):
    """Forward pass of Bottleneck (stride=1, downsample=None), NCHW in, NCHW out (bf16)."""
    # NCHW -> NHWC boundary transpose only (a full network would stay NHWC).
    x = jnp.transpose(x_nchw, (0, 2, 3, 1))
    n, h, w, cin = x.shape
    planes = params["w1"].shape[1]
    cout = params["w3"].shape[1]
    assert cin == cout, "residual path requires inplanes == planes * expansion"

    # Whole-image row tiles for small H; otherwise tile_h rows per step.
    th = tile_h if (h > 32 and h % tile_h == 0) else h
    num_row_tiles = h // th
    wpad = ((w + 2 + 7) // 8) * 8          # padded width, multiple of 8

    # Single fused zero-pad: 1-row halo top/bottom, 1 left col, right cols up to
    # wpad.  Stays f32 (the kernel casts to bf16 only at the MXU inputs).
    xp = jnp.pad(x, ((0, 0), (1, 1), (1, wpad - w - 1), (0, 0)))

    w1 = params["w1"].astype(jnp.bfloat16)
    w2 = params["w2"].astype(jnp.bfloat16)
    w3 = params["w3"].astype(jnp.bfloat16)

    # Per-generation VMEM budget: <= 48 MiB on v7x (64 MiB physical), up to
    # 100 MiB on v5e/v6e (128 MiB physical).
    try:
        vmem_cap = int(pltpu.get_tpu_info().vmem_capacity_bytes)
    except Exception:
        vmem_cap = 64 * 1024 * 1024
    vmem_limit = int(min(max(vmem_cap - 16 * 1024 * 1024, 32 * 1024 * 1024),
                         100 * 1024 * 1024))

    # NOTE: the grid-invariant inputs (weights, BN scale/bias) are only DMA'd
    # once (their index_map is constant); at planes=512 on v7x one would also
    # mark them pipeline_mode=pl.Buffered(1) to avoid the second VMEM buffer.
    kernel = functools.partial(_bottleneck_kernel, th=th, h=h, w=w, wpad=wpad)
    out = pl.pallas_call(
        kernel,
        out_shape=jax.ShapeDtypeStruct((n, h, w, cout), jnp.bfloat16),
        grid=(n, num_row_tiles),
        in_specs=[
            pl.BlockSpec((1, h + 2, wpad, cin), lambda b, t: (b, 0, 0, 0)),
            pl.BlockSpec((cin, planes), lambda b, t: (0, 0)),
            pl.BlockSpec((1, planes), lambda b, t: (0, 0)),
            pl.BlockSpec((1, planes), lambda b, t: (0, 0)),
            pl.BlockSpec((9, planes, planes), lambda b, t: (0, 0, 0)),
            pl.BlockSpec((1, planes), lambda b, t: (0, 0)),
            pl.BlockSpec((1, planes), lambda b, t: (0, 0)),
            pl.BlockSpec((planes, cout), lambda b, t: (0, 0)),
            pl.BlockSpec((1, cout), lambda b, t: (0, 0)),
            pl.BlockSpec((1, cout), lambda b, t: (0, 0)),
        ],
        out_specs=pl.BlockSpec((1, th, w, cout), lambda b, t: (b, t, 0, 0)),
        compiler_params=pltpu.CompilerParams(
            dimension_semantics=("parallel", "parallel"),
            vmem_limit_bytes=vmem_limit),
    )(xp, w1, params["s1"], params["b1"],
      w2, params["s2"], params["b2"],
      w3, params["s3"], params["b3"])
    return jnp.transpose(out, (0, 3, 1, 2))  # back to NCHW (bf16)


# ----------------------- parameter construction ----------------------------

def _fold_bn(gamma, beta, mean, var, eps=1e-5):
    scale = gamma / jnp.sqrt(var + eps)
    bias = beta - mean * scale
    return (scale.reshape(1, -1).astype(jnp.float32),
            bias.reshape(1, -1).astype(jnp.float32))


def make_params(key, inplanes, planes, expansion=4):
    outplanes = planes * expansion
    ks = jax.random.split(key, 15)

    # PyTorch conv weights are (Cout, Cin, kh, kw).
    w1_t = jax.random.normal(ks[0], (planes, inplanes, 1, 1), jnp.float32) * 0.1
    w2_t = jax.random.normal(ks[1], (planes, planes, 3, 3), jnp.float32) * 0.1
    w3_t = jax.random.normal(ks[2], (outplanes, planes, 1, 1), jnp.float32) * 0.1

    def bn_params(k0, k1, k2, k3, c):
        gamma = 1.0 + 0.1 * jax.random.normal(k0, (c,), jnp.float32)
        beta = 0.1 * jax.random.normal(k1, (c,), jnp.float32)
        mean = 0.1 * jax.random.normal(k2, (c,), jnp.float32)
        var = 0.5 + jax.random.uniform(k3, (c,), jnp.float32)
        return gamma, beta, mean, var

    bn1 = bn_params(ks[3], ks[4], ks[5], ks[6], planes)
    bn2 = bn_params(ks[7], ks[8], ks[9], ks[10], planes)
    bn3 = bn_params(ks[11], ks[12], ks[13], ks[14], outplanes)

    s1, b1 = _fold_bn(*bn1)
    s2, b2 = _fold_bn(*bn2)
    s3, b3 = _fold_bn(*bn3)

    # Kernel layouts.
    w1 = jnp.transpose(w1_t[:, :, 0, 0], (1, 0))                       # (Cin, P)
    w2 = jnp.transpose(w2_t, (2, 3, 1, 0)).reshape(9, planes, planes)  # (9, P, P)
    w3 = jnp.transpose(w3_t[:, :, 0, 0], (1, 0))                       # (P, Cout)

    params = dict(w1=w1, s1=s1, b1=b1,
                  w2=w2, s2=s2, b2=b2,
                  w3=w3, s3=s3, b3=b3)
    torch_style = dict(w1=w1_t, w2=w2_t, w3=w3_t, bn1=bn1, bn2=bn2, bn3=bn3)
    return params, torch_style


# ----------------------------- pure-JAX reference ---------------------------

def reference_forward(x_nchw, torch_style):
    x = jnp.transpose(x_nchw, (0, 2, 3, 1)).astype(jnp.float32)  # NHWC

    def conv(x, w_t, stride, pad):
        w = jnp.transpose(w_t, (2, 3, 1, 0))  # HWIO
        return lax.conv_general_dilated(
            x, w, (stride, stride), [(pad, pad), (pad, pad)],
            dimension_numbers=("NHWC", "HWIO", "NHWC"))

    def bn(x, p, eps=1e-5):
        gamma, beta, mean, var = p
        return gamma * (x - mean) / jnp.sqrt(var + eps) + beta

    out = jax.nn.relu(bn(conv(x, torch_style["w1"], 1, 0), torch_style["bn1"]))
    out = jax.nn.relu(bn(conv(out, torch_style["w2"], 1, 1), torch_style["bn2"]))
    out = bn(conv(out, torch_style["w3"], 1, 0), torch_style["bn3"])
    out = jax.nn.relu(out + x)
    return jnp.transpose(out, (0, 3, 1, 2))


# --------------------------------- main -------------------------------------

if __name__ == "__main__":
    N, INPLANES, PLANES, H, W = 2, 16, 4, 16, 16  # inplanes == planes * expansion

    key = jax.random.PRNGKey(0)
    k_x, k_p = jax.random.split(key)
    x = jax.random.normal(k_x, (N, INPLANES, H, W), jnp.float32)  # NCHW input
    params, torch_style = make_params(k_p, INPLANES, PLANES)

    out = jax.block_until_ready(bottleneck_forward(x, params))
    ref = jax.block_until_ready(reference_forward(x, torch_style))

    assert out.shape == (N, INPLANES, H, W), out.shape
    # Kernel uses bf16 MXU inputs / bf16 output (f32 accumulation, f32 residual);
    # the reference is pure f32, so tolerances are bf16-level.
    err = jnp.abs(out.astype(jnp.float32) - ref)
    max_err = float(jnp.max(err))
    mean_err = float(jnp.mean(err))
    assert max_err < 1.5e-1, ("max abs err", max_err)
    assert mean_err < 2.5e-2, ("mean abs err", mean_err)

    print("KERNEL_OK")
</pallas_src>

<mosaic_0001>
module attributes {stable_mosaic.version = 11 : i64} {
  func.func @_bottleneck_kernel(%arg0: i32, %arg1: i32, %arg2: memref<1x18x24x16xf32, #tpu.memory_space<vmem>>, %arg3: memref<16x4xbf16, #tpu.memory_space<vmem>>, %arg4: memref<1x4xf32, #tpu.memory_space<vmem>>, %arg5: memref<1x4xf32, #tpu.memory_space<vmem>>, %arg6: memref<9x4x4xbf16, #tpu.memory_space<vmem>>, %arg7: memref<1x4xf32, #tpu.memory_space<vmem>>, %arg8: memref<1x4xf32, #tpu.memory_space<vmem>>, %arg9: memref<4x16xbf16, #tpu.memory_space<vmem>>, %arg10: memref<1x16xf32, #tpu.memory_space<vmem>>, %arg11: memref<1x16xf32, #tpu.memory_space<vmem>>, %arg12: memref<1x16x16x16xbf16, #tpu.memory_space<vmem>>) attributes {dimension_semantics = [#tpu.dimension_semantics<parallel>, #tpu.dimension_semantics<parallel>], iteration_bounds = array<i64: 2, 1>, scalar_prefetch = 0 : i64, scratch_operands = 0 : i64, tpu.core_type = #tpu.core_type<tc>, window_params = [{transform_indices = @transform_0, window_bounds = array<i64: 1, 18, 24, 16>}, {pipeline_mode = #tpu.pipeline_mode<synchronous>, transform_indices = @transform_1, window_bounds = array<i64: 16, 4>}, {pipeline_mode = #tpu.pipeline_mode<synchronous>, transform_indices = @transform_2, window_bounds = array<i64: 1, 4>}, {pipeline_mode = #tpu.pipeline_mode<synchronous>, transform_indices = @transform_3, window_bounds = array<i64: 1, 4>}, {pipeline_mode = #tpu.pipeline_mode<synchronous>, transform_indices = @transform_4, window_bounds = array<i64: 9, 4, 4>}, {pipeline_mode = #tpu.pipeline_mode<synchronous>, transform_indices = @transform_5, window_bounds = array<i64: 1, 4>}, {pipeline_mode = #tpu.pipeline_mode<synchronous>, transform_indices = @transform_6, window_bounds = array<i64: 1, 4>}, {pipeline_mode = #tpu.pipeline_mode<synchronous>, transform_indices = @transform_7, window_bounds = array<i64: 4, 16>}, {pipeline_mode = #tpu.pipeline_mode<synchronous>, transform_indices = @transform_8, window_bounds = array<i64: 1, 16>}, {pipeline_mode = #tpu.pipeline_mode<synchronous>, transform_indices = @transform_9, window_bounds = array<i64: 1, 16>}, {transform_indices = @transform_10, window_bounds = array<i64: 1, 16, 16, 16>}]} {
    %c16_i32 = arith.constant 16 : i32
    %0 = arith.muli %arg1, %c16_i32 : i32
    %1 = tpu.assume_multiple %0, 8 : i32
    %c0 = arith.constant 0 : index
    %2 = arith.index_cast %1 : i32 to index
    %c0_0 = arith.constant 0 : index
    %c0_1 = arith.constant 0 : index
    %3 = vector.load %arg2[%c0, %2, %c0_0, %c0_1] : memref<1x18x24x16xf32, #tpu.memory_space<vmem>>, vector<1x18x24x16xf32>
    %4 = vector.shape_cast %3 : vector<1x18x24x16xf32> to vector<18x24x16xf32>
    %5 = vector.shape_cast %4 : vector<18x24x16xf32> to vector<432x16xf32>
    %6 = arith.truncf %5 : vector<432x16xf32> to vector<432x16xbf16>
    %c0_2 = arith.constant 0 : index
    %c0_3 = arith.constant 0 : index
    %7 = vector.load %arg3[%c0_2, %c0_3] : memref<16x4xbf16, #tpu.memory_space<vmem>>, vector<16x4xbf16>
    %cst = arith.constant dense<0.000000e+00> : vector<432x4xf32>
    %8 = tpu.matmul %6, %7, %cst {dimension_numbers = #tpu.dot_dimension_numbers<[1], [0], [0], [1], [0, 0, 1, 1], [], []>} : vector<432x16xbf16>, vector<16x4xbf16>, vector<432x4xf32> -> vector<432x4xf32>
    %c0_4 = arith.constant 0 : index
    %c0_5 = arith.constant 0 : index
    %9 = vector.load %arg4[%c0_4, %c0_5] : memref<1x4xf32, #tpu.memory_space<vmem>>, vector<1x4xf32>
    %10 = vector.broadcast %9 : vector<1x4xf32> to vector<432x4xf32>
    %11 = arith.mulf %8, %10 : vector<432x4xf32>
    %c0_6 = arith.constant 0 : index
    %c0_7 = arith.constant 0 : index
    %12 = vector.load %arg5[%c0_6, %c0_7] : memref<1x4xf32, #tpu.memory_space<vmem>>, vector<1x4xf32>
    %13 = vector.broadcast %12 : vector<1x4xf32> to vector<432x4xf32>
    %14 = arith.addf %11, %13 : vector<432x4xf32>
    %cst_8 = arith.constant 0.000000e+00 : f32
    %15 = vector.broadcast %cst_8 : f32 to vector<432x4xf32>
    %16 = arith.maximumf %14, %15 : vector<432x4xf32>
    %17 = tpu.iota {dimensions = array<i32: 0>} : vector<432x4xi32>
    %c1_i32 = arith.constant 1 : i32
    %18 = arith.subi %c1_i32, %1 : i32
    %c24_i32 = arith.constant 24 : i32
    %19 = arith.muli %18, %c24_i32 : i32
    %20 = vector.broadcast %19 : i32 to vector<432x4xi32>
    %21 = arith.cmpi sge, %17, %20 : vector<432x4xi32>
    %c17_i32 = arith.constant 17 : i32
    %22 = arith.subi %c17_i32, %1 : i32
    %c24_i32_9 = arith.constant 24 : i32
    %23 = arith.muli %22, %c24_i32_9 : i32
    %24 = vector.broadcast %23 : i32 to vector<432x4xi32>
    %25 = arith.cmpi slt, %17, %24 : vector<432x4xi32>
    %26 = arith.andi %21, %25 : vector<432x4xi1>
    %cst_10 = arith.constant 0.000000e+00 : f32
    %27 = vector.broadcast %cst_10 : f32 to vector<432x4xf32>
    %28 = arith.select %26, %16, %27 : vector<432x4xi1>, vector<432x4xf32>
    %29 = tpu.iota {dimensions = array<i32: 0>} : vector<24x4xi32>
    %c1_i32_11 = arith.constant 1 : i32
    %30 = vector.broadcast %c1_i32_11 : i32 to vector<24x4xi32>
    %31 = arith.cmpi sge, %29, %30 : vector<24x4xi32>
    %c16_i32_12 = arith.constant 16 : i32
    %32 = vector.broadcast %c16_i32_12 : i32 to vector<24x4xi32>
    %33 = arith.cmpi sle, %29, %32 : vector<24x4xi32>
    %34 = arith.andi %31, %33 : vector<24x4xi1>
    %35 = vector.shape_cast %34 : vector<24x4xi1> to vector<1x24x4xi1>
    %36 = vector.shape_cast %28 : vector<432x4xf32> to vector<18x24x4xf32>
    %cst_13 = arith.constant 0.000000e+00 : f32
    %37 = vector.shape_cast %35 : vector<1x24x4xi1> to vector<1x24x4xi1>
    %38 = vector.broadcast %37 : vector<1x24x4xi1> to vector<18x24x4xi1>
    %39 = vector.broadcast %cst_13 : f32 to vector<18x24x4xf32>
    %40 = arith.select %38, %36, %39 : vector<18x24x4xi1>, vector<18x24x4xf32>
    %41 = vector.shape_cast %40 : vector<18x24x4xf32> to vector<432x4xf32>
    %c431_i32 = arith.constant 431 : i32
    %42 = tpu.dynamic_rotate %41 by %c431_i32 dim 0 : vector<432x4xf32>, i32 -> vector<432x4xf32>
    %c430_i32 = arith.constant 430 : i32
    %43 = tpu.dynamic_rotate %41 by %c430_i32 dim 0 : vector<432x4xf32>, i32 -> vector<432x4xf32>
    %44 = arith.truncf %41 : vector<432x4xf32> to vector<432x4xbf16>
    %45 = arith.truncf %42 : vector<432x4xf32> to vector<432x4xbf16>
    %46 = arith.truncf %43 : vector<432x4xf32> to vector<432x4xbf16>
    %47 = vector.extract_strided_slice %44 {offsets = [0, 0], sizes = [384, 4], strides = [1, 1]} : vector<432x4xbf16> to vector<384x4xbf16>
    %c0_14 = arith.constant 0 : index
    %c0_15 = arith.constant 0 : index
    %c0_16 = arith.constant 0 : index
    %48 = vector.load %arg6[%c0_14, %c0_15, %c0_16] : memref<9x4x4xbf16, #tpu.memory_space<vmem>>, vector<1x4x4xbf16>
    %49 = vector.shape_cast %48 : vector<1x4x4xbf16> to vector<4x4xbf16>
    %cst_17 = arith.constant dense<0.000000e+00> : vector<384x4xf32>
    %50 = tpu.matmul %47, %49, %cst_17 {dimension_numbers = #tpu.dot_dimension_numbers<[1], [0], [0], [1], [0, 0, 1, 1], [], []>} : vector<384x4xbf16>, vector<4x4xbf16>, vector<384x4xf32> -> vector<384x4xf32>
    %51 = vector.extract_strided_slice %45 {offsets = [0, 0], sizes = [384, 4], strides = [1, 1]} : vector<432x4xbf16> to vector<384x4xbf16>
    %c1 = arith.constant 1 : index
    %c0_18 = arith.constant 0 : index
    %c0_19 = arith.constant 0 : index
    %52 = vector.load %arg6[%c1, %c0_18, %c0_19] : memref<9x4x4xbf16, #tpu.memory_space<vmem>>, vector<1x4x4xbf16>
    %53 = vector.shape_cast %52 : vector<1x4x4xbf16> to vector<4x4xbf16>
    %cst_20 = arith.constant dense<0.000000e+00> : vector<384x4xf32>
    %54 = tpu.matmul %51, %53, %cst_20 {dimension_numbers = #tpu.dot_dimension_numbers<[1], [0], [0], [1], [0, 0, 1, 1], [], []>} : vector<384x4xbf16>, vector<4x4xbf16>, vector<384x4xf32> -> vector<384x4xf32>
    %55 = arith.addf %50, %54 : vector<384x4xf32>
    %56 = vector.extract_strided_slice %46 {offsets = [0, 0], sizes = [384, 4], strides = [1, 1]} : vector<432x4xbf16> to vector<384x4xbf16>
    %c2 = arith.constant 2 : index
    %c0_21 = arith.constant 0 : index
    %c0_22 = arith.constant 0 : index
    %57 = vector.load %arg6[%c2, %c0_21, %c0_22] : memref<9x4x4xbf16, #tpu.memory_space<vmem>>, vector<1x4x4xbf16>
    %58 = vector.shape_cast %57 : vector<1x4x4xbf16> to vector<4x4xbf16>
    %cst_23 = arith.constant dense<0.000000e+00> : vector<384x4xf32>
    %59 = tpu.matmul %56, %58, %cst_23 {dimension_numbers = #tpu.dot_dimension_numbers<[1], [0], [0], [1], [0, 0, 1, 1], [], []>} : vector<384x4xbf16>, vector<4x4xbf16>, vector<384x4xf32> -> vector<384x4xf32>
    %60 = arith.addf %55, %59 : vector<384x4xf32>
    %61 = vector.extract_strided_slice %44 {offsets = [24, 0], sizes = [384, 4], strides = [1, 1]} : vector<432x4xbf16> to vector<384x4xbf16>
    %c3 = arith.constant 3 : index
    %c0_24 = arith.constant 0 : index
    %c0_25 = arith.constant 0 : index
    %62 = vector.load %arg6[%c3, %c0_24, %c0_25] : memref<9x4x4xbf16, #tpu.memory_space<vmem>>, vector<1x4x4xbf16>
    %63 = vector.shape_cast %62 : vector<1x4x4xbf16> to vector<4x4xbf16>
    %cst_26 = arith.constant dense<0.000000e+00> : vector<384x4xf32>
    %64 = tpu.matmul %61, %63, %cst_26 {dimension_numbers = #tpu.dot_dimension_numbers<[1], [0], [0], [1], [0, 0, 1, 1], [], []>} : vector<384x4xbf16>, vector<4x4xbf16>, vector<384x4xf32> -> vector<384x4xf32>
    %65 = vector.extract_strided_slice %45 {offsets = [24, 0], sizes = [384, 4], strides = [1, 1]} : vector<432x4xbf16> to vector<384x4xbf16>
    %c4 = arith.constant 4 : index
    %c0_27 = arith.constant 0 : index
    %c0_28 = arith.constant 0 : index
    %66 = vector.load %arg6[%c4, %c0_27, %c0_28] : memref<9x4x4xbf16, #tpu.memory_space<vmem>>, vector<1x4x4xbf16>
    %67 = vector.shape_cast %66 : vector<1x4x4xbf16> to vector<4x4xbf16>
    %cst_29 = arith.constant dense<0.000000e+00> : vector<384x4xf32>
    %68 = tpu.matmul %65, %67, %cst_29 {dimension_numbers = #tpu.dot_dimension_numbers<[1], [0], [0], [1], [0, 0, 1, 1], [], []>} : vector<384x4xbf16>, vector<4x4xbf16>, vector<384x4xf32> -> vector<384x4xf32>
    %69 = arith.addf %64, %68 : vector<384x4xf32>
    %70 = vector.extract_strided_slice %46 {offsets = [24, 0], sizes = [384, 4], strides = [1, 1]} : vector<432x4xbf16> to vector<384x4xbf16>
    %c5 = arith.constant 5 : index
    %c0_30 = arith.constant 0 : index
    %c0_31 = arith.constant 0 : index
    %71 = vector.load %arg6[%c5, %c0_30, %c0_31] : memref<9x4x4xbf16, #tpu.memory_space<vmem>>, vector<1x4x4xbf16>
    %72 = vector.shape_cast %71 : vector<1x4x4xbf16> to vector<4x4xbf16>
    %cst_32 = arith.constant dense<0.000000e+00> : vector<384x4xf32>
    %73 = tpu.matmul %70, %72, %cst_32 {dimension_numbers = #tpu.dot_dimension_numbers<[1], [0], [0], [1], [0, 0, 1, 1], [], []>} : vector<384x4xbf16>, vector<4x4xbf16>, vector<384x4xf32> -> vector<384x4xf32>
    %74 = arith.addf %69, %73 : vector<384x4xf32>
    %75 = vector.extract_strided_slice %44 {offsets = [48, 0], sizes = [384, 4], strides = [1, 1]} : vector<432x4xbf16> to vector<384x4xbf16>
    %c6 = arith.constant 6 : index
    %c0_33 = arith.constant 0 : index
    %c0_34 = arith.constant 0 : index
    %76 = vector.load %arg6[%c6, %c0_33, %c0_34] : memref<9x4x4xbf16, #tpu.memory_space<vmem>>, vector<1x4x4xbf16>
    %77 = vector.shape_cast %76 : vector<1x4x4xbf16> to vector<4x4xbf16>
    %cst_35 = arith.constant dense<0.000000e+00> : vector<384x4xf32>
    %78 = tpu.matmul %75, %77, %cst_35 {dimension_numbers = #tpu.dot_dimension_numbers<[1], [0], [0], [1], [0, 0, 1, 1], [], []>} : vector<384x4xbf16>, vector<4x4xbf16>, vector<384x4xf32> -> vector<384x4xf32>
    %79 = vector.extract_strided_slice %45 {offsets = [48, 0], sizes = [384, 4], strides = [1, 1]} : vector<432x4xbf16> to vector<384x4xbf16>
    %c7 = arith.constant 7 : index
    %c0_36 = arith.constant 0 : index
    %c0_37 = arith.constant 0 : index
    %80 = vector.load %arg6[%c7, %c0_36, %c0_37] : memref<9x4x4xbf16, #tpu.memory_space<vmem>>, vector<1x4x4xbf16>
    %81 = vector.shape_cast %80 : vector<1x4x4xbf16> to vector<4x4xbf16>
    %cst_38 = arith.constant dense<0.000000e+00> : vector<384x4xf32>
    %82 = tpu.matmul %79, %81, %cst_38 {dimension_numbers = #tpu.dot_dimension_numbers<[1], [0], [0], [1], [0, 0, 1, 1], [], []>} : vector<384x4xbf16>, vector<4x4xbf16>, vector<384x4xf32> -> vector<384x4xf32>
    %83 = arith.addf %78, %82 : vector<384x4xf32>
    %84 = vector.extract_strided_slice %46 {offsets = [48, 0], sizes = [384, 4], strides = [1, 1]} : vector<432x4xbf16> to vector<384x4xbf16>
    %c8 = arith.constant 8 : index
    %c0_39 = arith.constant 0 : index
    %c0_40 = arith.constant 0 : index
    %85 = vector.load %arg6[%c8, %c0_39, %c0_40] : memref<9x4x4xbf16, #tpu.memory_space<vmem>>, vector<1x4x4xbf16>
    %86 = vector.shape_cast %85 : vector<1x4x4xbf16> to vector<4x4xbf16>
    %cst_41 = arith.constant dense<0.000000e+00> : vector<384x4xf32>
    %87 = tpu.matmul %84, %86, %cst_41 {dimension_numbers = #tpu.dot_dimension_numbers<[1], [0], [0], [1], [0, 0, 1, 1], [], []>} : vector<384x4xbf16>, vector<4x4xbf16>, vector<384x4xf32> -> vector<384x4xf32>
    %88 = arith.addf %83, %87 : vector<384x4xf32>
    %89 = arith.addf %60, %74 : vector<384x4xf32>
    %90 = arith.addf %89, %88 : vector<384x4xf32>
    %c0_42 = arith.constant 0 : index
    %c0_43 = arith.constant 0 : index
    %91 = vector.load %arg7[%c0_42, %c0_43] : memref<1x4xf32, #tpu.memory_space<vmem>>, vector<1x4xf32>
    %92 = vector.broadcast %91 : vector<1x4xf32> to vector<384x4xf32>
    %93 = arith.mulf %90, %92 : vector<384x4xf32>
    %c0_44 = arith.constant 0 : index
    %c0_45 = arith.constant 0 : index
    %94 = vector.load %arg8[%c0_44, %c0_45] : memref<1x4xf32, #tpu.memory_space<vmem>>, vector<1x4xf32>
    %95 = vector.broadcast %94 : vector<1x4xf32> to vector<384x4xf32>
    %96 = arith.addf %93, %95 : vector<384x4xf32>
    %cst_46 = arith.constant 0.000000e+00 : f32
    %97 = vector.broadcast %cst_46 : f32 to vector<384x4xf32>
    %98 = arith.maximumf %96, %97 : vector<384x4xf32>
    %99 = arith.truncf %98 : vector<384x4xf32> to vector<384x4xbf16>
    %c0_47 = arith.constant 0 : index
    %c0_48 = arith.constant 0 : index
    %100 = vector.load %arg9[%c0_47, %c0_48] : memref<4x16xbf16, #tpu.memory_space<vmem>>, vector<4x16xbf16>
    %cst_49 = arith.constant dense<0.000000e+00> : vector<384x16xf32>
    %101 = tpu.matmul %99, %100, %cst_49 {dimension_numbers = #tpu.dot_dimension_numbers<[1], [0], [0], [1], [0, 0, 1, 1], [], []>} : vector<384x4xbf16>, vector<4x16xbf16>, vector<384x16xf32> -> vector<384x16xf32>
    %c431_i32_50 = arith.constant 431 : i32
    %102 = tpu.dynamic_rotate %5 by %c431_i32_50 dim 0 : vector<432x16xf32>, i32 -> vector<432x16xf32>
    %103 = vector.extract_strided_slice %102 {offsets = [24, 0], sizes = [384, 16], strides = [1, 1]} : vector<432x16xf32> to vector<384x16xf32>
    %c0_51 = arith.constant 0 : index
    %c0_52 = arith.constant 0 : index
    %104 = vector.load %arg10[%c0_51, %c0_52] : memref<1x16xf32, #tpu.memory_space<vmem>>, vector<1x16xf32>
    %105 = vector.broadcast %104 : vector<1x16xf32> to vector<384x16xf32>
    %106 = arith.mulf %101, %105 : vector<384x16xf32>
    %c0_53 = arith.constant 0 : index
    %c0_54 = arith.constant 0 : index
    %107 = vector.load %arg11[%c0_53, %c0_54] : memref<1x16xf32, #tpu.memory_space<vmem>>, vector<1x16xf32>
    %108 = vector.broadcast %107 : vector<1x16xf32> to vector<384x16xf32>
    %109 = arith.addf %106, %108 : vector<384x16xf32>
    %110 = arith.addf %109, %103 : vector<384x16xf32>
    %cst_55 = arith.constant 0.000000e+00 : f32
    %111 = vector.broadcast %cst_55 : f32 to vector<384x16xf32>
    %112 = arith.maximumf %110, %111 : vector<384x16xf32>
    %113 = vector.shape_cast %112 : vector<384x16xf32> to vector<16x24x16xf32>
    %114 = vector.extract_strided_slice %113 {offsets = [0, 0, 0], sizes = [16, 16, 16], strides = [1, 1, 1]} : vector<16x24x16xf32> to vector<16x16x16xf32>
    %115 = vector.shape_cast %114 : vector<16x16x16xf32> to vector<1x16x16x16xf32>
    %116 = arith.truncf %115 : vector<1x16x16x16xf32> to vector<1x16x16x16xbf16>
    %c0_56 = arith.constant 0 : index
    %c0_57 = arith.constant 0 : index
    %c0_58 = arith.constant 0 : index
    %c0_59 = arith.constant 0 : index
    %117 = vector.load %arg12[%c0_56, %c0_57, %c0_58, %c0_59] : memref<1x16x16x16xbf16, #tpu.memory_space<vmem>>, vector<1x16x16x16xbf16>
    tpu.vector_store %arg12[%c0_56, %c0_57, %c0_58, %c0_59], %116 {strides = array<i32>} : memref<1x16x16x16xbf16, #tpu.memory_space<vmem>>, vector<1x16x16x16xbf16>,
    return
  }
  func.func @transform_0(%arg0: i32, %arg1: i32) -> (i32, i32, i32, i32) {
    %c0_i32 = arith.constant 0 : i32
    %c0_i32_0 = arith.constant 0 : i32
    %c0_i32_1 = arith.constant 0 : i32
    %c0_i32_2 = arith.constant 0 : i32
    return %arg0, %c0_i32, %c0_i32_0, %c0_i32_1 : i32, i32, i32, i32
  }
  func.func @transform_1(%arg0: i32, %arg1: i32) -> (i32, i32) {
    %c0_i32 = arith.constant 0 : i32
    %c0_i32_0 = arith.constant 0 : i32
    %c0_i32_1 = arith.constant 0 : i32
    return %c0_i32, %c0_i32_0 : i32, i32
  }
  func.func @transform_2(%arg0: i32, %arg1: i32) -> (i32, i32) {
    %c0_i32 = arith.constant 0 : i32
    %c0_i32_0 = arith.constant 0 : i32
    %c0_i32_1 = arith.constant 0 : i32
    return %c0_i32, %c0_i32_0 : i32, i32
  }
  func.func @transform_3(%arg0: i32, %arg1: i32) -> (i32, i32) {
    %c0_i32 = arith.constant 0 : i32
    %c0_i32_0 = arith.constant 0 : i32
    %c0_i32_1 = arith.constant 0 : i32
    return %c0_i32, %c0_i32_0 : i32, i32
  }
  func.func @transform_4(%arg0: i32, %arg1: i32) -> (i32, i32, i32) {
    %c0_i32 = arith.constant 0 : i32
    %c0_i32_0 = arith.constant 0 : i32
    %c0_i32_1 = arith.constant 0 : i32
    %c0_i32_2 = arith.constant 0 : i32
    return %c0_i32, %c0_i32_0, %c0_i32_1 : i32, i32, i32
  }
  func.func @transform_5(%arg0: i32, %arg1: i32) -> (i32, i32) {
    %c0_i32 = arith.constant 0 : i32
    %c0_i32_0 = arith.constant 0 : i32
    %c0_i32_1 = arith.constant 0 : i32
    return %c0_i32, %c0_i32_0 : i32, i32
  }
  func.func @transform_6(%arg0: i32, %arg1: i32) -> (i32, i32) {
    %c0_i32 = arith.constant 0 : i32
    %c0_i32_0 = arith.constant 0 : i32
    %c0_i32_1 = arith.constant 0 : i32
    return %c0_i32, %c0_i32_0 : i32, i32
  }
  func.func @transform_7(%arg0: i32, %arg1: i32) -> (i32, i32) {
    %c0_i32 = arith.constant 0 : i32
    %c0_i32_0 = arith.constant 0 : i32
    %c0_i32_1 = arith.constant 0 : i32
    return %c0_i32, %c0_i32_0 : i32, i32
  }
  func.func @transform_8(%arg0: i32, %arg1: i32) -> (i32, i32) {
    %c0_i32 = arith.constant 0 : i32
    %c0_i32_0 = arith.constant 0 : i32
    %c0_i32_1 = arith.constant 0 : i32
    return %c0_i32, %c0_i32_0 : i32, i32
  }
  func.func @transform_9(%arg0: i32, %arg1: i32) -> (i32, i32) {
    %c0_i32 = arith.constant 0 : i32
    %c0_i32_0 = arith.constant 0 : i32
    %c0_i32_1 = arith.constant 0 : i32
    return %c0_i32, %c0_i32_0 : i32, i32
  }
  func.func @transform_10(%arg0: i32, %arg1: i32) -> (i32, i32, i32, i32) {
    %c0_i32 = arith.constant 0 : i32
    %c0_i32_0 = arith.constant 0 : i32
    %c0_i32_1 = arith.constant 0 : i32
    return %arg0, %arg1, %c0_i32, %c0_i32_0 : i32, i32, i32, i32
  }
}

</mosaic_0001>

<bundles_post_ra>
// kernel: tpu_custom_call.1
= control target key start
LH: loop header
LB: loop body
LE: loop exit
PB: predicated region body
PF: predicated region fallthrough
CT: control target
= control target key end

     0   :  { %15 = vsyncpa [#allocation3], 0  ;;  %s9475_s0 = inlined_call_operand.vmem [shape: f32[2,18,24,16], index: 0, kind: input, shape index: {}]   ;;  %s9476_s1 = inlined_call_operand.vmem [shape: bf16[16,4], index: 1, kind: input, shape index: {}]   ;;  %s9477_s2 = inlined_call_operand.vmem [shape: f32[1,4], index: 2, kind: input, shape index: {}]   ;;  %s9478_s3 = inlined_call_operand.vmem [shape: f32[1,4], index: 3, kind: input, shape index: {}]   ;;  %s9479_s4 = inlined_call_operand.vmem [shape: bf16[9,4,4], index: 4, kind: input, shape index: {}]   ;;  %s9480_s5 = inlined_call_operand.vmem [shape: f32[1,4], index: 5, kind: input, shape index: {}]   ;;  %s9481_s6 = inlined_call_operand.vmem [shape: f32[1,4], index: 6, kind: input, shape index: {}]   ;;  %s9482_s7 = inlined_call_operand.vmem [shape: bf16[4,16], index: 7, kind: input, shape index: {}]   ;;  %s9483_s8 = inlined_call_operand.vmem [shape: f32[1,16], index: 8, kind: input, shape index: {}]   ;;  %s9484_s9 = inlined_call_operand.vmem [shape: f32[1,16], index: 9, kind: input, shape index: {}]   ;;  %s9485_s10 = inlined_call_operand.hbm [shape: bf16[2,16,16,16], index: 10, kind: output, shape index: {}]  }
   0x1   :  { %17 = vsyncpa [#allocation3 + $0x1], 0  ;;  %s7448_s13 = smov 0   ;;  %s7450_s14 = smov 0  }
   0x2   :  { %s7452_s15 = smov 0   ;;  %s7454_s16 = smov 0  }
   0x3   :  { %s7456_s17 = smov 0   ;;  %s7458_s18 = smov 0  }
   0x4 LB: > { %s5553_s19 = sadd.s32 4294967295, %s7385_s18   ;;  %s5554_s20 = sadd.s32 4294967294, %s7385_s18   ;;  %s7385_s18 = sphi %s7458_s18, %s23_s18   ;;  %s7381_s17 = sphi %s7456_s17, %s9698_s17   ;;  %s7377_s16 = sphi %s7454_s16, %s9697_s16   ;;  %s7373_s15 = sphi %s7452_s15, %s9696_s15   ;;  %s7369_s14 = sphi %s7450_s14, %s9695_s14   ;;  %s7365_s13 = sphi %s7448_s13, %s9694_s13  }
   0x5   : > { %s35_s21 = sadd.s32 1, %s7381_s17  ;;  %s259_s22 = sadd.s32 1, %s7373_s15 }
   0x6   : > { %p37_p0 = scmp.ge.s32.totalorder %s35_s21, 2  ;;  %p269_p1 = scmp.ne.s32.totalorder %s7373_s15, %s7369_s14 }
   0x7   : > { %p270_p2 = scmp.eq.s32.totalorder %s5553_s19, 1  ;;  %p275_p3 = scmp.ne.s32.totalorder %s7369_s14, %s7365_s13 }
   0x8   : > { %s9700_s21 = smov (%p37_p0, %s35_s21), 0  ;;  %p276_p5 = scmp.eq.s32.totalorder %s5554_s20, 1 }
   0x9   : > { %p7488_p4 = por %p270_p2, %p269_p1  ;;  %s254_s24 = ssub.s32 %s7381_s17, %s9700_s21 }
   0xa   : > { %p5557_p6 = scmp.ge.s32.totalorder %s7385_s18, 1  ;;  %p257_p7 = scmp.eq.s32.totalorder %s254_s24, 0 }
   0xb   : > { %p7495_p8 = por %p276_p5, %p275_p3  ;;  %p329_p9 = scmp.lt.s32.totalorder %s7385_s18, 3 }
   0xc   : > { %s7501_s26 = scalar_select %p257_p7, %s7373_s15, %s259_s22  }
   0xd   : > { %p330_p10 = pnand %p5557_p6, %p329_p9 }
   0xf   : > { %333 = sbr.rel (%p330_p10) target bundleno = 1490 (0x5d2), region = 60 }
  0x16   : > { %v7256_v0 = vld [vmem:[%s9476_s1] sm:$0xff]   ;;  %v9487_v1 = vmov 0.0   ;;  %p367_p11 = scmp.lt.s32.totalorder %s7377_s16, 1  ;;  %vm7388_vm0 = vmmov 0   ;;  %vm466_vm1 = vcmask 130048   ;;  %vm1694_vm2 = vcmask 1041408  }
  0x17   : > { %6188 = vmatprep.subr.bf16.mxu0 %v9487_v1  ;;  %6190 = vmatprep.mubr.msk.bf16.mxu0 %vm7388_vm0, %v9487_v1  ;;  %v5590_v46 = vld [vmem:[%s9479_s4 + $0x2] sm:$0x3]  ;;  %vm1621_vm3 = vcmask 31744   ;;  %vm2602_vm8 = vcmask 1043456   ;;  %vm5428_vm9 = vcmask 125952   ;;  %s5909_s24 = sshll.u32 %s7377_s16, 11 }
  0x18   : > { %6189 = vmatpush3.bf16.msra.mxu0 %v7256_v0  ;;  %s368_s29 = scalar_select %p367_p11, %s7377_s16, 1  ;;  %v1696_v48 = vsel %vm1694_vm2, %v5590_v46, 0 }
  0x19   : > { %7184 = vmatprep.subr.msk.bf16.mxu0 %vm1694_vm2, %v5590_v46  ;;  %s7390_s12 = smov [#allocation2]  }
  0x1a   : > { %s7195_s30 = smul.u32 432, %s368_s29 }
  0x1c   : > { %s7514_s19 = scalar_lea.vmem %s9475_s0, %s7195_s30  ;;  %s9421_s30 = scalar_lea.hbm %s9485_s10, %s5909_s24 }
  0x1d   : > { %v377_v2 = vld [vmem:[%s7514_s19] sm:$0xff]  ;;  %v378_v3 = vld [vmem:[%s7514_s19 + $0x8] sm:$0xff]  ;;  %v379_v5 = vld [vmem:[%s7514_s19 + $0x10] sm:$0xff] }
  0x1e   : > { %v431_v4 = vpack.c.bf16 %v378_v3, %v377_v2  ;;  %v380_v6 = vld [vmem:[%s7514_s19 + $0x18] sm:$0xff]  ;;  %v381_v8 = vld [vmem:[%s7514_s19 + $0x20] sm:$0xff]  ;;  %v382_v9 = vld [vmem:[%s7514_s19 + $0x28] sm:$0xff] }
  0x1f   : > { %v432_v7 = vpack.c.bf16 %v380_v6, %v379_v5  ;;  %v433_v10 = vpack.c.bf16 %v382_v9, %v381_v8  ;;  %v383_v11 = vld [vmem:[%s7514_s19 + $0x30] sm:$0xff]  ;;  %v384_v12 = vld [vmem:[%s7514_s19 + $0x38] sm:$0xff]  ;;  %v385_v14 = vld [vmem:[%s7514_s19 + $0x40] sm:$0xff] }
  0x20   : > { %6191 = vmatmul.mubr.msk.bf16.vlgmr.msra.gmra.mrb[0].mxu0 %vm466_vm1, %v431_v4  ;;  %v434_v13 = vpack.c.bf16 %v384_v12, %v383_v11  ;;  %v386_v15 = vld [vmem:[%s7514_s19 + $0x48] sm:$0xff]  ;;  %v387_v17 = vld [vmem:[%s7514_s19 + $0x50] sm:$0xff]  ;;  %v388_v18 = vld [vmem:[%s7514_s19 + $0x58] sm:$0xff] }
  0x21   : > { %6194 = vmatprep.mubr.msk.bf16.mxu0 %vm7388_vm0, %v9487_v1  ;;  %v435_v16 = vpack.c.bf16 %v386_v15, %v385_v14  ;;  %v436_v19 = vpack.c.bf16 %v388_v18, %v387_v17  ;;  %v389_v20 = vld [vmem:[%s7514_s19 + $0x60] sm:$0xff]  ;;  %v390_v21 = vld [vmem:[%s7514_s19 + $0x68] sm:$0xff]  ;;  %v391_v23 = vld [vmem:[%s7514_s19 + $0x70] sm:$0xff]  ;;  %6299 = vmatpush3.bf16.msra.mxu0 %v1696_v48 }
  0x22   : > { %v437_v22 = vpack.c.bf16 %v390_v21, %v389_v20  ;;  %v392_v24 = vld [vmem:[%s7514_s19 + $0x78] sm:$0xff]  ;;  %v393_v26 = vld [vmem:[%s7514_s19 + $0x80] sm:$0xff]  ;;  %v394_v27 = vld [vmem:[%s7514_s19 + $0x88] sm:$0xff]  ;;  %v7654_v21 = vrot.slane %v9487_v1, 1 }
  0x23   : > { %v438_v25 = vpack.c.bf16 %v392_v24, %v391_v23  ;;  %v439_v28 = vpack.c.bf16 %v394_v27, %v393_v26  ;;  %v395_v29 = vld [vmem:[%s7514_s19 + $0x90] sm:$0xff]  ;;  %v396_v30 = vld [vmem:[%s7514_s19 + $0x98] sm:$0xff]  ;;  %v397_v32 = vld [vmem:[%s7514_s19 + $0xa0] sm:$0xff] }
  0x24   : > { %v440_v31 = vpack.c.bf16 %v396_v30, %v395_v29  ;;  %v398_v33 = vld [vmem:[%s7514_s19 + $0xa8] sm:$0xff]  ;;  %v399_v35 = vld [vmem:[%s7514_s19 + $0xb0] sm:$0xff]  ;;  %v400_v36 = vld [vmem:[%s7514_s19 + $0xb8] sm:$0xff]  ;;  %9554 = vst [vmem:[#allocation5_spill] sm:$0xff] %v7654_v21  ;;  %v7658_v23 = vpack.c.bf16 %v7654_v21, %v7654_v21 }
  0x25   : > { %v441_v34 = vpack.c.bf16 %v398_v33, %v397_v32  ;;  %v442_v37 = vpack.c.bf16 %v400_v36, %v399_v35  ;;  %v401_v38 = vld [vmem:[%s7514_s19 + $0xc0] sm:$0xff]  ;;  %v402_v39 = vld [vmem:[%s7514_s19 + $0xc8] sm:$0xff]  ;;  %v403_v41 = vld [vmem:[%s7514_s19 + $0xd0] sm:$0xff] }
  0x26   : > { %v443_v40 = vpack.c.bf16 %v402_v39, %v401_v38  ;;  %v404_v42 = vld [vmem:[%s7514_s19 + $0xd8] sm:$0xff]  ;;  %v405_v44 = vld [vmem:[%s7514_s19 + $0xe0] sm:$0xff]  ;;  %v406_v45 = vld [vmem:[%s7514_s19 + $0xe8] sm:$0xff]  ;;  %9555 = vst [vmem:[#allocation6_spill] sm:$0xff] %v7658_v23 }
  0x27   : > { %v444_v43 = vpack.c.bf16 %v404_v42, %v403_v41  ;;  %v445_v47 = vpack.c.bf16 %v406_v45, %v405_v44  ;;  %v407_v49 = vld [vmem:[%s7514_s19 + $0xf0] sm:$0xff]  ;;  %v408_v50 = vld [vmem:[%s7514_s19 + $0xf8] sm:$0xff]  ;;  %v409_v52 = vld [vmem:[%s7514_s19 + $0x100] sm:$0xff] }
  0x28   : > { %6195 = vmatmul.mubr.msk.bf16.gmra.mrb[4].mxu0 %vm466_vm1, %v432_v7  ;;  %v446_v51 = vpack.c.bf16 %v408_v50, %v407_v49  ;;  %v410_v53 = vld [vmem:[%s7514_s19 + $0x108] sm:$0xff]  ;;  %v411_v55 = vld [vmem:[%s7514_s19 + $0x110] sm:$0xff]  ;;  %v412_v56 = vld [vmem:[%s7514_s19 + $0x118] sm:$0xff]  ;;  %v7690_v49 = vrot.slane %v9487_v1, 2 }
  0x29   : > { %6198 = vmatprep.mubr.msk.bf16.mxu0 %vm7388_vm0, %v9487_v1  ;;  %v447_v54 = vpack.c.bf16 %v410_v53, %v409_v52  ;;  %v448_v57 = vpack.c.bf16 %v412_v56, %v411_v55  ;;  %v413_v58 = vld [vmem:[%s7514_s19 + $0x120] sm:$0xff]  ;;  %v414_v59 = vld [vmem:[%s7514_s19 + $0x128] sm:$0xff]  ;;  %v415_v61 = vld [vmem:[%s7514_s19 + $0x130] sm:$0xff] }
  0x2a   : > { %v449_v60 = vpack.c.bf16 %v414_v59, %v413_v58  ;;  %v416_v62 = vld [vmem:[%s7514_s19 + $0x138] sm:$0xff]  ;;  %v417_v0 = vld [vmem:[%s7514_s19 + $0x140] sm:$0xff]  ;;  %v418_v2 = vld [vmem:[%s7514_s19 + $0x148] sm:$0xff]  ;;  %9557 = vst [vmem:[#allocation8_spill] sm:$0xff] %v7690_v49 }
  0x2b   : > { %v450_v63 = vpack.c.bf16 %v416_v62, %v415_v61  ;;  %v451_v3 = vpack.c.bf16 %v418_v2, %v417_v0  ;;  %v419_v4 = vld [vmem:[%s7514_s19 + $0x150] sm:$0xff]  ;;  %v420_v5 = vld [vmem:[%s7514_s19 + $0x158] sm:$0xff]  ;;  %v421_v7 = vld [vmem:[%s7514_s19 + $0x160] sm:$0xff] }
  0x2c   : > { %v452_v6 = vpack.c.bf16 %v420_v5, %v419_v4  ;;  %v422_v8 = vld [vmem:[%s7514_s19 + $0x168] sm:$0xff]  ;;  %v424_v11 = vld [vmem:[%s7514_s19 + $0x178] sm:$0xff]  ;;  %v7666_v30 = vld [vmem:[%s9477_s2] ss:$0 sm:$0xff] }
  0x2d   : > { %v453_v9 = vpack.c.bf16 %v422_v8, %v421_v7  ;;  %v426_v14 = vld [vmem:[%s7514_s19 + $0x188] sm:$0xff]  ;;  %v428_v17 = vld [vmem:[%s7514_s19 + $0x198] sm:$0xff]  ;;  %v7671_v33 = vld [vmem:[%s9478_s3] ss:$0 sm:$0xff] }
  0x2e   : > { %v430_v20 = vld [vmem:[%s7514_s19 + $0x1a8] sm:$0xff] }
  0x30   : > { %6199 = vmatmul.mubr.msk.bf16.gmra.mrb[8].mxu0 %vm466_vm1, %v433_v10  ;;  %v423_v10 = vld [vmem:[%s7514_s19 + $0x170] sm:$0xff] }
  0x31   : > { %6202 = vmatprep.mubr.msk.bf16.mxu0 %vm7388_vm0, %v9487_v1  ;;  %v454_v12 = vpack.c.bf16 %v424_v11, %v423_v10 }
  0x38   : > { %6203 = vmatmul.mubr.msk.bf16.gmra.mrb[12].mxu0 %vm466_vm1, %v434_v13  ;;  %v425_v13 = vld [vmem:[%s7514_s19 + $0x180] sm:$0xff] }
  0x39   : > { %6206 = vmatprep.mubr.msk.bf16.mxu0 %vm7388_vm0, %v9487_v1  ;;  %v455_v15 = vpack.c.bf16 %v426_v14, %v425_v13 }
  0x40   : > { %6207 = vmatmul.mubr.msk.bf16.gmra.mrb[16].mxu0 %vm466_vm1, %v435_v16  ;;  %v427_v16 = vld [vmem:[%s7514_s19 + $0x190] sm:$0xff] }
  0x41   : > { %6210 = vmatprep.mubr.msk.bf16.mxu0 %vm7388_vm0, %v9487_v1  ;;  %v456_v18 = vpack.c.bf16 %v428_v17, %v427_v16 }
  0x48   : > { %6211 = vmatmul.mubr.msk.bf16.gmra.mrb[20].mxu0 %vm466_vm1, %v436_v19  ;;  %v429_v19 = vld [vmem:[%s7514_s19 + $0x1a0] sm:$0xff] }
  0x49   : > { %6214 = vmatprep.mubr.msk.bf16.mxu0 %vm7388_vm0, %v9487_v1 }
  0x50   : > { %6215 = vmatmul.mubr.msk.bf16.gmra.mrb[24].mxu0 %vm466_vm1, %v437_v22  ;;  %v457_v22 = vpack.c.bf16 %v430_v20, %v429_v19 }
  0x51   : > { %6218 = vmatprep.mubr.msk.bf16.mxu0 %vm7388_vm0, %v9487_v1 }
  0x58   : > { %6219 = vmatmul.mubr.msk.bf16.gmra.mrb[28].mxu0 %vm466_vm1, %v438_v25 }
  0x59   : > { %6222 = vmatprep.mubr.msk.bf16.mxu0 %vm7388_vm0, %v9487_v1 }
  0x60   : > { %6223 = vmatmul.mubr.msk.bf16.gmra.mrb[32].mxu0 %vm466_vm1, %v439_v28  ;;  %v973_v28 = vlaneseq }
  0x61   : > { %6226 = vmatprep.mubr.msk.bf16.mxu0 %vm7388_vm0, %v9487_v1 }
  0x68   : > { %6227 = vmatmul.mubr.msk.bf16.gmra.mrb[36].mxu0 %vm466_vm1, %v440_v31 }
  0x69   : > { %6230 = vmatprep.mubr.msk.bf16.mxu0 %vm7388_vm0, %v9487_v1 }
  0x70   : > { %6231 = vmatmul.mubr.msk.bf16.gmra.mrb[40].mxu0 %vm466_vm1, %v441_v34  ;;  %v7673_v34 = vshrl.u32 %v973_v28, 7 }
  0x71   : > { %6234 = vmatprep.mubr.msk.bf16.mxu0 %vm7388_vm0, %v9487_v1 }
  0x72   : > { %9556 = vst [vmem:[#allocation7_spill] sm:$0xff] %v7673_v34  ;;  %vm1250_vm4 = vcmp.ge.s32.totalorder %v7673_v34, 1  ;;  %v7684_v44 = vadd.s32 16, %v7673_v34  ;;  %vm1373_vm5 = vcmp.lt.s32.totalorder %v7673_v34, 7  ;;  %vm1482_vm6 = vcmp.lt.s32.totalorder %v7673_v34, 6 }
  0x74   : > { %vm1255_vm7 = vcmp.le.s32.totalorder %v7684_v44, 16 }
  0x78   : > { %6235 = vmatmul.mubr.msk.bf16.gmra.mrb[44].mxu0 %vm466_vm1, %v442_v37 }
  0x79   : > { %6238 = vmatprep.mubr.msk.bf16.mxu0 %vm7388_vm0, %v9487_v1 }
  0x80   : > { %6239 = vmatmul.mubr.msk.bf16.gmra.mrb[48].mxu0 %vm466_vm1, %v443_v40 }
  0x81   : > { %6242 = vmatprep.mubr.msk.bf16.mxu0 %vm7388_vm0, %v9487_v1 }
  0x88   : > { %6243 = vmatmul.mubr.msk.bf16.gmra.mrb[52].mxu0 %vm466_vm1, %v444_v43 }
  0x89   : > { %6246 = vmatprep.mubr.msk.bf16.mxu0 %vm7388_vm0, %v9487_v1 }
  0x90   : > { %6247 = vmatmul.mubr.msk.bf16.gmra.mrb[56].mxu0 %vm466_vm1, %v445_v47 }
  0x91   : > { %6250 = vmatprep.mubr.msk.bf16.mxu0 %vm7388_vm0, %v9487_v1 }
  0x98   : > { %6251 = vmatmul.mubr.msk.bf16.gmra.mrb[60].mxu0 %vm466_vm1, %v446_v51 }
  0x99   : > { %6254 = vmatprep.mubr.msk.bf16.mxu0 %vm7388_vm0, %v9487_v1 }
  0xa0   : > { %6255 = vmatmul.mubr.msk.bf16.gmra.mrb[64].mxu0 %vm466_vm1, %v447_v54 }
  0xa1   : > { %6258 = vmatprep.mubr.msk.bf16.mxu0 %vm7388_vm0, %v9487_v1 }
  0xa8   : > { %6259 = vmatmul.mubr.msk.bf16.gmra.mrb[68].mxu0 %vm466_vm1, %v448_v57 }
  0xa9   : > { %6262 = vmatprep.mubr.msk.bf16.mxu0 %vm7388_vm0, %v9487_v1 }
  0xb0   : > { %6263 = vmatmul.mubr.msk.bf16.gmra.mrb[72].mxu0 %vm466_vm1, %v449_v60 }
  0xb1   : > { %6266 = vmatprep.mubr.msk.bf16.mxu0 %vm7388_vm0, %v9487_v1 }
  0xb8   : > { %6267 = vmatmul.mubr.msk.bf16.gmra.mrb[76].mxu0 %vm466_vm1, %v450_v63 }
  0xb9   : > { %6270 = vmatprep.mubr.msk.bf16.mxu0 %vm7388_vm0, %v9487_v1 }
  0xc0   : > { %6271 = vmatmul.mubr.msk.bf16.gmra.mrb[80].mxu0 %vm466_vm1, %v451_v3 }
  0xc1   : > { %6274 = vmatprep.mubr.msk.bf16.mxu0 %vm7388_vm0, %v9487_v1 }
  0xc8   : > { %6275 = vmatmul.mubr.msk.bf16.gmra.mrb[84].mxu0 %vm466_vm1, %v452_v6 }
  0xc9   : > { %6278 = vmatprep.mubr.msk.bf16.mxu0 %vm7388_vm0, %v9487_v1 }
  0xd0   : > { %6279 = vmatmul.mubr.msk.bf16.gmra.mrb[88].mxu0 %vm466_vm1, %v453_v9 }
  0xd1   : > { %6282 = vmatprep.mubr.msk.bf16.mxu0 %vm7388_vm0, %v9487_v1 }
  0xd8   : > { %6283 = vmatmul.mubr.msk.bf16.gmra.mrb[92].mxu0 %vm466_vm1, %v454_v12 }
  0xd9   : > { %6286 = vmatprep.mubr.msk.bf16.mxu0 %vm7388_vm0, %v9487_v1 }
  0xe0   : > { %6287 = vmatmul.mubr.msk.bf16.gmra.mrb[96].mxu0 %vm466_vm1, %v455_v15 }
  0xe1   : > { %6290 = vmatprep.mubr.msk.bf16.mxu0 %vm7388_vm0, %v9487_v1 }
  0xe8   : > { %6291 = vmatmul.mubr.msk.bf16.gmra.mrb[100].mxu0 %vm466_vm1, %v456_v18 }
  0xe9   : > { %6294 = vmatprep.mubr.msk.bf16.mxu0 %vm7388_vm0, %v9487_v1 }
  0xf0   : > { %6295 = vmatmul.mubr.msk.bf16.gmra.mrb[104].mxu0 %vm466_vm1, %v457_v22 }
  0xf1   : > { %6300 = vmatprep.mubr.msk.bf16.mxu0 %vm1621_vm3, %v7658_v23 }
  0xf3   : > { %v582_v24 = vpop.f32.mrb[0].mxu0 }
  0xf4   : > { %v6192_v25 = vpop.f32.mrb[1].mxu0 }
  0xf5   : > { %v585_v26 = vpop.f32.mrb[2].mxu0 }
  0xf6   : > { %v6193_v27 = vpop.f32.mrb[3].mxu0 }
  0xfb   : > { %v590_v29 = vpop.f32.mrb[4].mxu0 }
  0xfc   : > { %v6196_v31 = vpop.f32.mrb[5].mxu0 }
  0xfd   : > { %v593_v32 = vpop.f32.mrb[6].mxu0 }
  0xfe   : > { %v807_v35 = vmul.f32 %v7666_v30, %v593_v32  ;;  %v6197_v36 = vpop.f32.mrb[7].mxu0 }
 0x100   : > { %v868_v37 = vadd.f32 %v7671_v33, %v807_v35 }
 0x102   : > { %v922_v38 = vmax.f32 %v868_v37, 0.0 }
 0x103   : > { %v598_v39 = vpop.f32.mrb[8].mxu0 }
 0x104   : > { %v7680_v40 = vsel %vm1250_vm4, %v922_v38, 0.0  ;;  %v808_v41 = vmul.f32 %v7666_v30, %v598_v39  ;;  %v6200_v42 = vpop.f32.mrb[9].mxu0 }
 0x105   : > { %v601_v43 = vpop.f32.mrb[10].mxu0  ;;  %v1322_v48 = vrot.slane %v7680_v40, 1  ;;  %v1431_v50 = vrot.slane %v7680_v40, 2 }
 0x106   : > { %v869_v45 = vadd.f32 %v7671_v33, %v808_v41  ;;  %v809_v46 = vmul.f32 %v7666_v30, %v601_v43  ;;  %v6201_v47 = vpop.f32.mrb[11].mxu0 }
 0x107   : > { %v1424_v56 = vsel %vm1373_vm5, %v7654_v21, %v1322_v48  ;;  %v1533_v57 = vsel %vm1482_vm6, %v7690_v49, %v1431_v50 }
 0x108   : > { %v923_v51 = vmax.f32 %v869_v45, 0.0  ;;  %v870_v52 = vadd.f32 %v7671_v33, %v809_v46 }
 0x10a   : > { %v1323_v53 = vrot.slane %v923_v51, 1  ;;  %v1432_v54 = vrot.slane %v923_v51, 2  ;;  %v924_v55 = vmax.f32 %v870_v52, 0.0 }
 0x10b   : > { %v606_v58 = vpop.f32.mrb[12].mxu0 }
 0x10c   : > { %v1423_v59 = vsel %vm1373_vm5, %v1322_v48, %v1323_v53  ;;  %v1532_v60 = vsel %vm1482_vm6, %v1431_v50, %v1432_v54  ;;  %v1270_v61 = vsel %vm1255_vm7, %v924_v55, 0.0  ;;  %v810_v62 = vmul.f32 %v7666_v30, %v606_v58  ;;  %v6204_v63 = vpop.f32.mrb[13].mxu0 }
 0x10d   : > { %v1565_v0 = vpack.c.bf16 %v1423_v59, %v1424_v56  ;;  %v7710_v2 = vpack.c.bf16 %v1532_v60, %v1533_v57  ;;  %v1324_v3 = vrot.slane %v1270_v61, 1  ;;  %v1433_v4 = vrot.slane %v1270_v61, 2  ;;  %v609_v5 = vpop.f32.mrb[14].mxu0 }
 0x10e   : > { %v7712_v6 = vpack.c.bf16 %v1270_v61, %v923_v51  ;;  %v871_v7 = vadd.f32 %v7671_v33, %v810_v62  ;;  %v811_v8 = vmul.f32 %v7666_v30, %v609_v5  ;;  %v6205_v9 = vpop.f32.mrb[15].mxu0 }
 0x10f   : > { %9558 = vst [vmem:[#allocation9_spill] sm:$0xff] %v7710_v2  ;;  %6301 = vmatmul.mubr.msk.bf16.vlgmr.msra.gmra.mrb[108].mxu0 %vm1621_vm3, %v1565_v0  ;;  %v1422_v10 = vsel %vm1373_vm5, %v1323_v53, %v1324_v3  ;;  %v1531_v11 = vsel %vm1482_vm6, %v1432_v54, %v1433_v4  ;;  %v2603_v42 = vrot.slane %v1565_v0, 4 }
 0x110   : > { %v925_v12 = vmax.f32 %v871_v7, 0.0  ;;  %v872_v13 = vadd.f32 %v7671_v33, %v811_v8 }
 0x112   : > { %v1271_v14 = vsel %vm1250_vm4, %v925_v12, 0.0  ;;  %v926_v15 = vmax.f32 %v872_v13, 0.0 }
 0x113   : > { %v1325_v16 = vrot.slane %v1271_v14, 1  ;;  %v1434_v17 = vrot.slane %v1271_v14, 2  ;;  %v614_v18 = vpop.f32.mrb[16].mxu0 }
 0x114   : > { %v1326_v19 = vrot.slane %v926_v15, 1  ;;  %v1435_v20 = vrot.slane %v926_v15, 2  ;;  %v812_v22 = vmul.f32 %v7666_v30, %v614_v18  ;;  %v6208_v24 = vpop.f32.mrb[17].mxu0  ;;  %v7725_v25 = vpack.c.bf16 %v926_v15, %v1271_v14 }
 0x115   : > { %v617_v26 = vpop.f32.mrb[18].mxu0  ;;  %v1421_v27 = vsel %vm1373_vm5, %v1324_v3, %v1325_v16  ;;  %v1530_v28 = vsel %vm1482_vm6, %v1433_v4, %v1434_v17 }
 0x116   : > { %v873_v29 = vadd.f32 %v7671_v33, %v812_v22  ;;  %v813_v31 = vmul.f32 %v7666_v30, %v617_v26  ;;  %v6209_v32 = vpop.f32.mrb[19].mxu0  ;;  %v7733_v35 = vpack.c.bf16 %v1421_v27, %v1422_v10  ;;  %v1420_v36 = vsel %vm1373_vm5, %v1325_v16, %v1326_v19 }
 0x117   : > { %v7737_v37 = vpack.c.bf16 %v1530_v28, %v1531_v11  ;;  %v1529_v38 = vsel %vm1482_vm6, %v1434_v17, %v1435_v20 }
 0x118   : > { %v927_v39 = vmax.f32 %v873_v29, 0.0  ;;  %v874_v41 = vadd.f32 %v7671_v33, %v813_v31  ;;  %6304 = vmatprep.mubr.msk.bf16.mxu0 %vm1621_vm3, %v7733_v35  ;;  %v9486_v43 = vrot.slane %v7733_v35, 4 }
 0x119   : > { %9559 = vst [vmem:[#allocation10_spill] sm:$0xff] %v7737_v37 }
 0x11a   : > { %v1273_v45 = vsel %vm1255_vm7, %v927_v39, 0.0  ;;  %v928_v46 = vmax.f32 %v874_v41, 0.0  ;;  %v7750_v47 = vsel %vm2602_vm8, %v2603_v42, %v9486_v43 }
 0x11b   : > { %v1327_v48 = vrot.slane %v1273_v45, 1  ;;  %v1436_v50 = vrot.slane %v1273_v45, 2  ;;  %v622_v51 = vpop.f32.mrb[20].mxu0 }
 0x11c   : > { %v1274_v52 = vsel %vm1250_vm4, %v928_v46, 0.0  ;;  %v814_v53 = vmul.f32 %v7666_v30, %v622_v51  ;;  %v6212_v54 = vpop.f32.mrb[21].mxu0 }
 0x11d   : > { %v1328_v55 = vrot.slane %v1274_v52, 1  ;;  %v1437_v56 = vrot.slane %v1274_v52, 2  ;;  %v7755_v57 = vpack.c.bf16 %v1274_v52, %v1273_v45  ;;  %v625_v58 = vpop.f32.mrb[22].mxu0  ;;  %v1419_v59 = vsel %vm1373_vm5, %v1326_v19, %v1327_v48 }
 0x11e   : > { %v875_v60 = vadd.f32 %v7671_v33, %v814_v53  ;;  %v815_v61 = vmul.f32 %v7666_v30, %v625_v58  ;;  %v6213_v62 = vpop.f32.mrb[23].mxu0  ;;  %v7761_v63 = vpack.c.bf16 %v1419_v59, %v1420_v36  ;;  %v1528_v0 = vsel %vm1482_vm6, %v1435_v20, %v1436_v50 }
 0x11f   : > { %v1418_v3 = vsel %vm1373_vm5, %v1327_v48, %v1328_v55  ;;  %v7767_v4 = vpack.c.bf16 %v1528_v0, %v1529_v38  ;;  %v1527_v5 = vsel %vm1482_vm6, %v1436_v50, %v1437_v56 }
 0x120   : > { %v929_v7 = vmax.f32 %v875_v60, 0.0  ;;  %v876_v8 = vadd.f32 %v7671_v33, %v815_v61  ;;  %6305 = vmatmul.mubr.msk.bf16.gmra.mrb[112].mxu0 %vm1621_vm3, %v7761_v63 }
 0x121   : > { %9560 = vst [vmem:[#allocation11_spill] sm:$0xff] %v7767_v4 }
 0x122   : > { %v1329_v9 = vrot.slane %v929_v7, 1  ;;  %v1438_v10 = vrot.slane %v929_v7, 2  ;;  %v930_v11 = vmax.f32 %v876_v8, 0.0 }
 0x123   : > { %v630_v12 = vpop.f32.mrb[24].mxu0 }
 0x124   : > { %v1276_v13 = vsel %vm1255_vm7, %v930_v11, 0.0  ;;  %v816_v14 = vmul.f32 %v7666_v30, %v630_v12  ;;  %v6216_v15 = vpop.f32.mrb[25].mxu0  ;;  %v1417_v16 = vsel %vm1373_vm5, %v1328_v55, %v1329_v9  ;;  %v1526_v17 = vsel %vm1482_vm6, %v1437_v56, %v1438_v10 }
 0x125   : > { %v1330_v18 = vrot.slane %v1276_v13, 1  ;;  %v1439_v19 = vrot.slane %v1276_v13, 2  ;;  %v7781_v20 = vpack.c.bf16 %v1276_v13, %v929_v7  ;;  %v633_v22 = vpop.f32.mrb[26].mxu0  ;;  %v7783_v24 = vpack.c.bf16 %v1417_v16, %v1418_v3 }
 0x126   : > { %v877_v26 = vadd.f32 %v7671_v33, %v816_v14  ;;  %v817_v27 = vmul.f32 %v7666_v30, %v633_v22  ;;  %v6217_v28 = vpop.f32.mrb[27].mxu0  ;;  %v7787_v29 = vpack.c.bf16 %v1526_v17, %v1527_v5 }
 0x127   : > { %6308 = vmatprep.mubr.msk.bf16.mxu0 %vm1621_vm3, %v7783_v24  ;;  %v1416_v31 = vsel %vm1373_vm5, %v1329_v9, %v1330_v18  ;;  %v1525_v32 = vsel %vm1482_vm6, %v1438_v10, %v1439_v19 }
 0x128   : > { %9561 = vst [vmem:[#allocation12_spill] sm:$0xff] %v7787_v29  ;;  %v931_v36 = vmax.f32 %v877_v26, 0.0  ;;  %v878_v38 = vadd.f32 %v7671_v33, %v817_v27 }
 0x12a   : > { %v1277_v39 = vsel %vm1250_vm4, %v931_v36, 0.0  ;;  %v932_v41 = vmax.f32 %v878_v38, 0.0 }
 0x12b   : > { %v1331_v42 = vrot.slane %v1277_v39, 1  ;;  %v1440_v45 = vrot.slane %v1277_v39, 2  ;;  %v638_v46 = vpop.f32.mrb[28].mxu0 }
 0x12c   : > { %v1332_v48 = vrot.slane %v932_v41, 1  ;;  %v1441_v50 = vrot.slane %v932_v41, 2  ;;  %v818_v51 = vmul.f32 %v7666_v30, %v638_v46  ;;  %v6220_v52 = vpop.f32.mrb[29].mxu0  ;;  %v7799_v53 = vpack.c.bf16 %v932_v41, %v1277_v39 }
 0x12d   : > { %v641_v54 = vpop.f32.mrb[30].mxu0  ;;  %v1415_v55 = vsel %vm1373_vm5, %v1330_v18, %v1331_v42  ;;  %v1524_v56 = vsel %vm1482_vm6, %v1439_v19, %v1440_v45 }
 0x12e   : > { %9562 = vst [vmem:[#allocation13_spill] sm:$0xff] %v7799_v53  ;;  %v879_v58 = vadd.f32 %v7671_v33, %v818_v51  ;;  %v819_v59 = vmul.f32 %v7666_v30, %v641_v54  ;;  %v6221_v60 = vpop.f32.mrb[31].mxu0  ;;  %v7807_v61 = vpack.c.bf16 %v1415_v55, %v1416_v31  ;;  %v1414_v62 = vsel %vm1373_vm5, %v1331_v42, %v1332_v48 }
 0x12f   : > { %v7811_v0 = vpack.c.bf16 %v1524_v56, %v1525_v32  ;;  %v1523_v3 = vsel %vm1482_vm6, %v1440_v45, %v1441_v50  ;;  %v5638_v56 = vld [vmem:[%s9479_s4 + $0x4] sm:$0x3] }
 0x130   : > { %v933_v5 = vmax.f32 %v879_v58, 0.0  ;;  %v880_v7 = vadd.f32 %v7671_v33, %v819_v59  ;;  %6309 = vmatmul.mubr.msk.bf16.gmra.mrb[116].mxu0 %vm1621_vm3, %v7807_v61  ;;  %7187 = vmatprep.subr.msk.bf16.mxu1 %vm1694_vm2, %v5638_v56 }
 0x131   : > { %9563 = vst [vmem:[#allocation14_spill] sm:$0xff] %v7811_v0 }
 0x132   : > { %v1279_v8 = vsel %vm1255_vm7, %v933_v5, 0.0  ;;  %v934_v9 = vmax.f32 %v880_v7, 0.0 }
 0x133   : > { %v1333_v10 = vrot.slane %v1279_v8, 1  ;;  %v1442_v11 = vrot.slane %v1279_v8, 2  ;;  %v646_v12 = vpop.f32.mrb[32].mxu0 }
 0x134   : > { %v1280_v13 = vsel %vm1250_vm4, %v934_v9, 0.0  ;;  %v820_v14 = vmul.f32 %v7666_v30, %v646_v12  ;;  %v6224_v15 = vpop.f32.mrb[33].mxu0 }
 0x135   : > { %v1334_v16 = vrot.slane %v1280_v13, 1  ;;  %v1443_v17 = vrot.slane %v1280_v13, 2  ;;  %v7823_v18 = vpack.c.bf16 %v1280_v13, %v1279_v8  ;;  %v649_v19 = vpop.f32.mrb[34].mxu0  ;;  %v1413_v22 = vsel %vm1373_vm5, %v1332_v48, %v1333_v10 }
 0x136   : > { %v881_v26 = vadd.f32 %v7671_v33, %v820_v14  ;;  %v821_v27 = vmul.f32 %v7666_v30, %v649_v19  ;;  %v6225_v28 = vpop.f32.mrb[35].mxu0  ;;  %v7829_v31 = vpack.c.bf16 %v1413_v22, %v1414_v62  ;;  %v1522_v32 = vsel %vm1482_vm6, %v1441_v50, %v1442_v11 }
 0x137   : > { %9564 = vst [vmem:[#allocation15_spill] sm:$0xff] %v7823_v18  ;;  %v1412_v36 = vsel %vm1373_vm5, %v1333_v10, %v1334_v16  ;;  %v7835_v38 = vpack.c.bf16 %v1522_v32, %v1523_v3  ;;  %v1521_v39 = vsel %vm1482_vm6, %v1442_v11, %v1443_v17  ;;  %v7860_v10 = vsel %vm1694_vm2, %v5638_v56, 0 }
 0x138   : > { %v935_v41 = vmax.f32 %v881_v26, 0.0  ;;  %v882_v42 = vadd.f32 %v7671_v33, %v821_v27  ;;  %6312 = vmatprep.mubr.msk.bf16.mxu0 %vm1621_vm3, %v7829_v31  ;;  %6799 = vmatpush3.bf16.msra.mxu1 %v7860_v10  ;;  %v7877_v27 = vld [vmem:[%s9479_s4 + $0x8] sm:$0x3] }
 0x139   : > { %9565 = vst [vmem:[#allocation16_spill] sm:$0xff] %v7835_v38  ;;  %7188 = vmatprep.subr.msk.bf16.mxu1 %vm1694_vm2, %v7877_v27 }
 0x13a   : > { %v1335_v45 = vrot.slane %v935_v41, 1  ;;  %v1444_v46 = vrot.slane %v935_v41, 2  ;;  %v936_v48 = vmax.f32 %v882_v42, 0.0 }
 0x13b   : > { %v654_v51 = vpop.f32.mrb[36].mxu0 }
 0x13c   : > { %v1282_v50 = vsel %vm1255_vm7, %v936_v48, 0.0  ;;  %v822_v52 = vmul.f32 %v7666_v30, %v654_v51  ;;  %v6228_v54 = vpop.f32.mrb[37].mxu0  ;;  %v1411_v55 = vsel %vm1373_vm5, %v1334_v16, %v1335_v45  ;;  %v1520_v58 = vsel %vm1482_vm6, %v1443_v17, %v1444_v46 }
 0x13d   : > { %v1336_v59 = vrot.slane %v1282_v50, 1  ;;  %v1445_v60 = vrot.slane %v1282_v50, 2  ;;  %v7852_v62 = vpack.c.bf16 %v1282_v50, %v935_v41  ;;  %v657_v3 = vpop.f32.mrb[38].mxu0  ;;  %v7854_v5 = vpack.c.bf16 %v1411_v55, %v1412_v36  ;;  %v1618_v41 = vld [vmem:[%s9479_s4] sm:$0x3] }
 0x13e   : > { %v883_v7 = vadd.f32 %v7671_v33, %v822_v52  ;;  %v823_v8 = vmul.f32 %v7666_v30, %v657_v3  ;;  %v6229_v9 = vpop.f32.mrb[39].mxu0  ;;  %v7862_v11 = vpack.c.bf16 %v1520_v58, %v1521_v39  ;;  %7185 = vmatprep.subr.msk.bf16.mxu0 %vm1694_vm2, %v1618_v41 }
 0x13f   : > { %9566 = vst [vmem:[#allocation17_spill] sm:$0xff] %v7852_v62  ;;  %6313 = vmatmul.mubr.msk.bf16.gmra.mrb[120].mxu0 %vm1621_vm3, %v7854_v5  ;;  %v1410_v12 = vsel %vm1373_vm5, %v1335_v45, %v1336_v59  ;;  %v1519_v13 = vsel %vm1482_vm6, %v1444_v46, %v1445_v60  ;;  %v1996_v46 = vsel %vm1694_vm2, %v1618_v41, 0 }
 0x140   : > { %9567 = vst [vmem:[#allocation18_spill] sm:$0xff] %v7862_v11  ;;  %v937_v14 = vmax.f32 %v883_v7, 0.0  ;;  %v884_v15 = vadd.f32 %v7671_v33, %v823_v8  ;;  %6349 = vmatpush3.bf16.msra.mxu0 %v1996_v46 }
 0x141   : > { %7186 = vmatprep.subr.msk.bf16.mxu0 %vm1694_vm2, %v5638_v56 }
 0x142   : > { %v1283_v16 = vsel %vm1250_vm4, %v937_v14, 0.0  ;;  %v938_v17 = vmax.f32 %v884_v15, 0.0 }
 0x143   : > { %v1337_v19 = vrot.slane %v1283_v16, 1  ;;  %v1446_v22 = vrot.slane %v1283_v16, 2  ;;  %v662_v26 = vpop.f32.mrb[40].mxu0 }
 0x144   : > { %v1338_v28 = vrot.slane %v938_v17, 1  ;;  %v1447_v32 = vrot.slane %v938_v17, 2  ;;  %v824_v36 = vmul.f32 %v7666_v30, %v662_v26  ;;  %v6232_v39 = vpop.f32.mrb[41].mxu0  ;;  %v7889_v48 = vpack.c.bf16 %v938_v17, %v1283_v16 }
 0x145   : > { %v665_v42 = vpop.f32.mrb[42].mxu0  ;;  %v1409_v45 = vsel %vm1373_vm5, %v1336_v59, %v1337_v19  ;;  %v1518_v51 = vsel %vm1482_vm6, %v1445_v60, %v1446_v22 }
 0x146   : > { %9568 = vst [vmem:[#allocation19_spill] sm:$0xff] %v7889_v48  ;;  %v885_v50 = vadd.f32 %v7671_v33, %v824_v36  ;;  %v825_v52 = vmul.f32 %v7666_v30, %v665_v42  ;;  %v6233_v54 = vpop.f32.mrb[43].mxu0  ;;  %v7895_v55 = vpack.c.bf16 %v1409_v45, %v1410_v12  ;;  %v1408_v58 = vsel %vm1373_vm5, %v1337_v19, %v1338_v28 }
 0x147   : > { %v7900_v59 = vpack.c.bf16 %v1518_v51, %v1519_v13  ;;  %v1517_v3 = vsel %vm1482_vm6, %v1446_v22, %v1447_v32 }
 0x148   : > { %v939_v7 = vmax.f32 %v885_v50, 0.0  ;;  %v886_v60 = vadd.f32 %v7671_v33, %v825_v52  ;;  %6316 = vmatprep.mubr.msk.bf16.mxu0 %vm1621_vm3, %v7895_v55 }
 0x149   : > { %9569 = vst [vmem:[#allocation20_spill] sm:$0xff] %v7900_v59 }
 0x14a   : > { %v1285_v8 = vsel %vm1255_vm7, %v939_v7, 0.0  ;;  %v940_v9 = vmax.f32 %v886_v60, 0.0 }
 0x14b   : > { %v1339_v12 = vrot.slane %v1285_v8, 1  ;;  %v1448_v14 = vrot.slane %v1285_v8, 2  ;;  %v670_v15 = vpop.f32.mrb[44].mxu0 }
 0x14c   : > { %v1286_v56 = vsel %vm1250_vm4, %v940_v9, 0.0  ;;  %v826_v13 = vmul.f32 %v7666_v30, %v670_v15  ;;  %v6236_v16 = vpop.f32.mrb[45].mxu0 }
 0x14d   : > { %v1340_v17 = vrot.slane %v1286_v56, 1  ;;  %v1449_v19 = vrot.slane %v1286_v56, 2  ;;  %v7912_v22 = vpack.c.bf16 %v1286_v56, %v1285_v8  ;;  %v673_v26 = vpop.f32.mrb[46].mxu0  ;;  %v1407_v36 = vsel %vm1373_vm5, %v1338_v28, %v1339_v12 }
 0x14e   : > { %v887_v39 = vadd.f32 %v7671_v33, %v826_v13  ;;  %v827_v41 = vmul.f32 %v7666_v30, %v673_v26  ;;  %v6237_v42 = vpop.f32.mrb[47].mxu0  ;;  %v7918_v45 = vpack.c.bf16 %v1407_v36, %v1408_v58  ;;  %v1516_v46 = vsel %vm1482_vm6, %v1447_v32, %v1448_v14 }
 0x14f   : > { %9570 = vst [vmem:[#allocation21_spill] sm:$0xff] %v7912_v22  ;;  %v1406_v51 = vsel %vm1373_vm5, %v1339_v12, %v1340_v17  ;;  %v7924_v50 = vpack.c.bf16 %v1516_v46, %v1517_v3  ;;  %v1515_v52 = vsel %vm1482_vm6, %v1448_v14, %v1449_v19 }
 0x150   : > { %v941_v54 = vmax.f32 %v887_v39, 0.0  ;;  %v888_v28 = vadd.f32 %v7671_v33, %v827_v41  ;;  %6317 = vmatmul.mubr.msk.bf16.gmra.mrb[124].mxu0 %vm1621_vm3, %v7918_v45 }
 0x151   : > { %9571 = vst [vmem:[#allocation22_spill] sm:$0xff] %v7924_v50 }
 0x152   : > { %v1341_v7 = vrot.slane %v941_v54, 1  ;;  %v1450_v58 = vrot.slane %v941_v54, 2  ;;  %v942_v60 = vmax.f32 %v888_v28, 0.0 }
 0x153   : > { %v678_v8 = vpop.f32.mrb[48].mxu0 }
 0x154   : > { %v1288_v32 = vsel %vm1255_vm7, %v942_v60, 0.0  ;;  %v828_v9 = vmul.f32 %v7666_v30, %v678_v8  ;;  %v6240_v3 = vpop.f32.mrb[49].mxu0  ;;  %v1405_v12 = vsel %vm1373_vm5, %v1340_v17, %v1341_v7  ;;  %v1514_v14 = vsel %vm1482_vm6, %v1449_v19, %v1450_v58 }
 0x155   : > { %v1342_v15 = vrot.slane %v1288_v32, 1  ;;  %v1451_v56 = vrot.slane %v1288_v32, 2  ;;  %v7938_v13 = vpack.c.bf16 %v1288_v32, %v941_v54  ;;  %v681_v16 = vpop.f32.mrb[50].mxu0  ;;  %v7940_v26 = vpack.c.bf16 %v1405_v12, %v1406_v51 }
 0x156   : > { %v889_v36 = vadd.f32 %v7671_v33, %v828_v9  ;;  %v829_v39 = vmul.f32 %v7666_v30, %v681_v16  ;;  %v6241_v41 = vpop.f32.mrb[51].mxu0  ;;  %v7944_v42 = vpack.c.bf16 %v1514_v14, %v1515_v52 }
 0x157   : > { %9572 = vst [vmem:[#allocation23_spill] sm:$0xff] %v7938_v13  ;;  %6320 = vmatprep.mubr.msk.bf16.mxu0 %vm1621_vm3, %v7940_v26  ;;  %v1404_v17 = vsel %vm1373_vm5, %v1341_v7, %v1342_v15  ;;  %v1513_v19 = vsel %vm1482_vm6, %v1450_v58, %v1451_v56 }
 0x158   : > { %9573 = vst [vmem:[#allocation24_spill] sm:$0xff] %v7944_v42  ;;  %v943_v46 = vmax.f32 %v889_v36, 0.0  ;;  %v890_v51 = vadd.f32 %v7671_v33, %v829_v39 }
 0x15a   : > { %v1289_v54 = vsel %vm1250_vm4, %v943_v46, 0.0  ;;  %v944_v28 = vmax.f32 %v890_v51, 0.0 }
 0x15b   : > { %v1343_v60 = vrot.slane %v1289_v54, 1  ;;  %v1452_v8 = vrot.slane %v1289_v54, 2  ;;  %v686_v52 = vpop.f32.mrb[52].mxu0 }
 0x15c   : > { %v1344_v32 = vrot.slane %v944_v28, 1  ;;  %v1453_v9 = vrot.slane %v944_v28, 2  ;;  %v830_v3 = vmul.f32 %v7666_v30, %v686_v52  ;;  %v6244_v12 = vpop.f32.mrb[53].mxu0  ;;  %v7956_v14 = vpack.c.bf16 %v944_v28, %v1289_v54 }
 0x15d   : > { %v689_v7 = vpop.f32.mrb[54].mxu0  ;;  %v1403_v58 = vsel %vm1373_vm5, %v1342_v15, %v1343_v60  ;;  %v1512_v16 = vsel %vm1482_vm6, %v1451_v56, %v1452_v8 }
 0x15e   : > { %9574 = vst [vmem:[#allocation25_spill] sm:$0xff] %v7956_v14  ;;  %v891_v36 = vadd.f32 %v7671_v33, %v830_v3  ;;  %v831_v39 = vmul.f32 %v7666_v30, %v689_v7  ;;  %v6245_v41 = vpop.f32.mrb[55].mxu0  ;;  %v7964_v46 = vpack.c.bf16 %v1403_v58, %v1404_v17  ;;  %v1402_v51 = vsel %vm1373_vm5, %v1343_v60, %v1344_v32 }
 0x15f   : > { %v7968_v52 = vpack.c.bf16 %v1512_v16, %v1513_v19  ;;  %v1511_v54 = vsel %vm1482_vm6, %v1452_v8, %v1453_v9 }
 0x160   : > { %v945_v28 = vmax.f32 %v891_v36, 0.0  ;;  %v892_v15 = vadd.f32 %v7671_v33, %v831_v39  ;;  %6321 = vmatmul.mubr.msk.bf16.gmra.mrb[128].mxu0 %vm1621_vm3, %v7964_v46 }
 0x161   : > { %9575 = vst [vmem:[#allocation26_spill] sm:$0xff] %v7968_v52 }
 0x162   : > { %v1291_v56 = vsel %vm1255_vm7, %v945_v28, 0.0  ;;  %v946_v3 = vmax.f32 %v892_v15, 0.0 }
 0x163   : > { %v1345_v17 = vrot.slane %v1291_v56, 1  ;;  %v1454_v12 = vrot.slane %v1291_v56, 2  ;;  %v694_v7 = vpop.f32.mrb[56].mxu0 }
 0x164   : > { %v1292_v19 = vsel %vm1250_vm4, %v946_v3, 0.0  ;;  %v832_v60 = vmul.f32 %v7666_v30, %v694_v7  ;;  %v6248_v58 = vpop.f32.mrb[57].mxu0 }
 0x165   : > { %v1346_v8 = vrot.slane %v1292_v19, 1  ;;  %v1455_v16 = vrot.slane %v1292_v19, 2  ;;  %v7980_v36 = vpack.c.bf16 %v1292_v19, %v1291_v56  ;;  %v697_v39 = vpop.f32.mrb[58].mxu0  ;;  %v1401_v41 = vsel %vm1373_vm5, %v1344_v32, %v1345_v17 }
 0x166   : > { %v893_v28 = vadd.f32 %v7671_v33, %v832_v60  ;;  %v833_v15 = vmul.f32 %v7666_v30, %v697_v39  ;;  %v6249_v43 = vpop.f32.mrb[59].mxu0  ;;  %v7986_v1 = vpack.c.bf16 %v1401_v41, %v1402_v51  ;;  %v1510_v3 = vsel %vm1482_vm6, %v1453_v9, %v1454_v12 }
 0x167   : > { %9576 = vst [vmem:[#allocation27_spill] sm:$0xff] %v7980_v36  ;;  %v1400_v7 = vsel %vm1373_vm5, %v1345_v17, %v1346_v8  ;;  %v7992_v58 = vpack.c.bf16 %v1510_v3, %v1511_v54  ;;  %v1509_v56 = vsel %vm1482_vm6, %v1454_v12, %v1455_v16 }
 0x168   : > { %v947_v19 = vmax.f32 %v893_v28, 0.0  ;;  %v894_v32 = vadd.f32 %v7671_v33, %v833_v15  ;;  %6324 = vmatprep.mubr.msk.bf16.mxu0 %vm1621_vm3, %v7986_v1 }
 0x169   : > { %9577 = vst [vmem:[#allocation28_spill] sm:$0xff] %v7992_v58 }
 0x16a   : > { %v1347_v43 = vrot.slane %v947_v19, 1  ;;  %v1456_v51 = vrot.slane %v947_v19, 2  ;;  %v948_v60 = vmax.f32 %v894_v32, 0.0 }
 0x16b   : > { %v702_v39 = vpop.f32.mrb[60].mxu0 }
 0x16c   : > { %v1294_v9 = vsel %vm1255_vm7, %v948_v60, 0.0  ;;  %v834_v17 = vmul.f32 %v7666_v30, %v702_v39  ;;  %v6252_v54 = vpop.f32.mrb[61].mxu0  ;;  %v1399_v41 = vsel %vm1373_vm5, %v1346_v8, %v1347_v43  ;;  %v1508_v12 = vsel %vm1482_vm6, %v1455_v16, %v1456_v51 }
 0x16d   : > { %v1348_v28 = vrot.slane %v1294_v9, 1  ;;  %v1457_v15 = vrot.slane %v1294_v9, 2  ;;  %v8006_v3 = vpack.c.bf16 %v1294_v9, %v947_v19  ;;  %v705_v23 = vpop.f32.mrb[62].mxu0  ;;  %v8008_v58 = vpack.c.bf16 %v1399_v41, %v1400_v7 }
 0x16e   : > { %v895_v32 = vadd.f32 %v7671_v33, %v834_v17  ;;  %v835_v60 = vmul.f32 %v7666_v30, %v705_v23  ;;  %v6253_v52 = vpop.f32.mrb[63].mxu0  ;;  %v8012_v39 = vpack.c.bf16 %v1508_v12, %v1509_v56 }
 0x16f   : > { %9578 = vst [vmem:[#allocation29_spill] sm:$0xff] %v8006_v3  ;;  %6325 = vmatmul.mubr.msk.bf16.gmra.mrb[132].mxu0 %vm1621_vm3, %v8008_v58  ;;  %v1398_v8 = vsel %vm1373_vm5, %v1347_v43, %v1348_v28  ;;  %v1507_v16 = vsel %vm1482_vm6, %v1456_v51, %v1457_v15 }
 0x170   : > { %9579 = vst [vmem:[#allocation30_spill] sm:$0xff] %v8012_v39  ;;  %v949_v19 = vmax.f32 %v895_v32, 0.0  ;;  %v896_v7 = vadd.f32 %v7671_v33, %v835_v60 }
 0x172   : > { %v1295_v9 = vsel %vm1250_vm4, %v949_v19, 0.0  ;;  %v950_v17 = vmax.f32 %v896_v7, 0.0 }
 0x173   : > { %v1349_v23 = vrot.slane %v1295_v9, 1  ;;  %v1458_v52 = vrot.slane %v1295_v9, 2  ;;  %v710_v56 = vpop.f32.mrb[64].mxu0 }
 0x174   : > { %v1350_v54 = vrot.slane %v950_v17, 1  ;;  %v1459_v41 = vrot.slane %v950_v17, 2  ;;  %v836_v12 = vmul.f32 %v7666_v30, %v710_v56  ;;  %v6256_v39 = vpop.f32.mrb[65].mxu0  ;;  %v8024_v42 = vpack.c.bf16 %v950_v17, %v1295_v9 }
 0x175   : > { %v713_v43 = vpop.f32.mrb[66].mxu0  ;;  %v1397_v51 = vsel %vm1373_vm5, %v1348_v28, %v1349_v23  ;;  %v1506_v32 = vsel %vm1482_vm6, %v1457_v15, %v1458_v52 }
 0x176   : > { %9580 = vst [vmem:[#allocation31_spill] sm:$0xff] %v8024_v42  ;;  %v897_v60 = vadd.f32 %v7671_v33, %v836_v12  ;;  %v837_v19 = vmul.f32 %v7666_v30, %v713_v43  ;;  %v6257_v7 = vpop.f32.mrb[67].mxu0  ;;  %v8032_v50 = vpack.c.bf16 %v1397_v51, %v1398_v8  ;;  %v1396_v56 = vsel %vm1373_vm5, %v1349_v23, %v1350_v54 }
 0x177   : > { %v8036_v39 = vpack.c.bf16 %v1506_v32, %v1507_v16  ;;  %v1505_v9 = vsel %vm1482_vm6, %v1458_v52, %v1459_v41 }
 0x178   : > { %v951_v17 = vmax.f32 %v897_v60, 0.0  ;;  %v898_v28 = vadd.f32 %v7671_v33, %v837_v19  ;;  %6328 = vmatprep.mubr.msk.bf16.mxu0 %vm1621_vm3, %v8032_v50 }
 0x179   : > { %9581 = vst [vmem:[#allocation32_spill] sm:$0xff] %v8036_v39 }
 0x17a   : > { %v1297_v15 = vsel %vm1255_vm7, %v951_v17, 0.0  ;;  %v952_v12 = vmax.f32 %v898_v28, 0.0 }
 0x17b   : > { %v1351_v8 = vrot.slane %v1297_v15, 1  ;;  %v1460_v43 = vrot.slane %v1297_v15, 2  ;;  %v718_v51 = vpop.f32.mrb[68].mxu0 }
 0x17c   : > { %v1298_v16 = vsel %vm1250_vm4, %v952_v12, 0.0  ;;  %v838_v23 = vmul.f32 %v7666_v30, %v718_v51  ;;  %v6260_v32 = vpop.f32.mrb[69].mxu0 }
 0x17d   : > { %v1352_v52 = vrot.slane %v1298_v16, 1  ;;  %v1461_v60 = vrot.slane %v1298_v16, 2  ;;  %v8048_v7 = vpack.c.bf16 %v1298_v16, %v1297_v15  ;;  %v721_v19 = vpop.f32.mrb[70].mxu0  ;;  %v1395_v39 = vsel %vm1373_vm5, %v1350_v54, %v1351_v8 }
 0x17e   : > { %v899_v17 = vadd.f32 %v7671_v33, %v838_v23  ;;  %v839_v28 = vmul.f32 %v7666_v30, %v721_v19  ;;  %v6261_v59 = vpop.f32.mrb[71].mxu0  ;;  %v8054_v11 = vpack.c.bf16 %v1395_v39, %v1396_v56  ;;  %v1504_v12 = vsel %vm1482_vm6, %v1459_v41, %v1460_v43 }
 0x17f   : > { %9582 = vst [vmem:[#allocation33_spill] sm:$0xff] %v8048_v7  ;;  %v1394_v51 = vsel %vm1373_vm5, %v1351_v8, %v1352_v52  ;;  %v8060_v32 = vpack.c.bf16 %v1504_v12, %v1505_v9  ;;  %v1503_v15 = vsel %vm1482_vm6, %v1460_v43, %v1461_v60 }
 0x180   : > { %v953_v16 = vmax.f32 %v899_v17, 0.0  ;;  %v900_v54 = vadd.f32 %v7671_v33, %v839_v28  ;;  %6329 = vmatmul.mubr.msk.bf16.gmra.mrb[136].mxu0 %vm1621_vm3, %v8054_v11 }
 0x181   : > { %9583 = vst [vmem:[#allocation34_spill] sm:$0xff] %v8060_v32 }
 0x182   : > { %v1353_v59 = vrot.slane %v953_v16, 1  ;;  %v1462_v56 = vrot.slane %v953_v16, 2  ;;  %v954_v39 = vmax.f32 %v900_v54, 0.0 }
 0x183   : > { %v726_v23 = vpop.f32.mrb[72].mxu0 }
 0x184   : > { %v1300_v41 = vsel %vm1255_vm7, %v954_v39, 0.0  ;;  %v840_v8 = vmul.f32 %v7666_v30, %v726_v23  ;;  %v6264_v9 = vpop.f32.mrb[73].mxu0  ;;  %v1393_v19 = vsel %vm1373_vm5, %v1352_v52, %v1353_v59  ;;  %v1502_v43 = vsel %vm1482_vm6, %v1461_v60, %v1462_v56 }
 0x185   : > { %v1354_v17 = vrot.slane %v1300_v41, 1  ;;  %v1463_v28 = vrot.slane %v1300_v41, 2  ;;  %v8074_v12 = vpack.c.bf16 %v1300_v41, %v953_v16  ;;  %v729_v32 = vpop.f32.mrb[74].mxu0  ;;  %v8076_v38 = vpack.c.bf16 %v1393_v19, %v1394_v51 }
 0x186   : > { %v901_v54 = vadd.f32 %v7671_v33, %v840_v8  ;;  %v841_v39 = vmul.f32 %v7666_v30, %v729_v32  ;;  %v6265_v0 = vpop.f32.mrb[75].mxu0  ;;  %v8080_v23 = vpack.c.bf16 %v1502_v43, %v1503_v15 }
 0x187   : > { %9584 = vst [vmem:[#allocation35_spill] sm:$0xff] %v8074_v12  ;;  %6332 = vmatprep.mubr.msk.bf16.mxu0 %vm1621_vm3, %v8076_v38  ;;  %v1392_v52 = vsel %vm1373_vm5, %v1353_v59, %v1354_v17  ;;  %v1501_v60 = vsel %vm1482_vm6, %v1462_v56, %v1463_v28 }
 0x188   : > { %9585 = vst [vmem:[#allocation36_spill] sm:$0xff] %v8080_v23  ;;  %v955_v16 = vmax.f32 %v901_v54, 0.0  ;;  %v902_v51 = vadd.f32 %v7671_v33, %v841_v39 }
 0x18a   : > { %v1301_v41 = vsel %vm1250_vm4, %v955_v16, 0.0  ;;  %v956_v8 = vmax.f32 %v902_v51, 0.0 }
 0x18b   : > { %v1355_v32 = vrot.slane %v1301_v41, 1  ;;  %v1464_v0 = vrot.slane %v1301_v41, 2  ;;  %v734_v15 = vpop.f32.mrb[76].mxu0 }
 0x18c   : > { %v1356_v9 = vrot.slane %v956_v8, 1  ;;  %v1465_v19 = vrot.slane %v956_v8, 2  ;;  %v842_v43 = vmul.f32 %v7666_v30, %v734_v15  ;;  %v6268_v23 = vpop.f32.mrb[77].mxu0  ;;  %v8092_v29 = vpack.c.bf16 %v956_v8, %v1301_v41 }
 0x18d   : > { %v737_v59 = vpop.f32.mrb[78].mxu0  ;;  %v1391_v56 = vsel %vm1373_vm5, %v1354_v17, %v1355_v32  ;;  %v1500_v54 = vsel %vm1482_vm6, %v1463_v28, %v1464_v0 }
 0x18e   : > { %9586 = vst [vmem:[#allocation37_spill] sm:$0xff] %v8092_v29  ;;  %v903_v39 = vadd.f32 %v7671_v33, %v842_v43  ;;  %v843_v16 = vmul.f32 %v7666_v30, %v737_v59  ;;  %v6269_v51 = vpop.f32.mrb[79].mxu0  ;;  %v8100_v4 = vpack.c.bf16 %v1391_v56, %v1392_v52  ;;  %v1390_v15 = vsel %vm1373_vm5, %v1355_v32, %v1356_v9 }
 0x18f   : > { %v8104_v23 = vpack.c.bf16 %v1500_v54, %v1501_v60  ;;  %v1499_v41 = vsel %vm1482_vm6, %v1464_v0, %v1465_v19 }
 0x190   : > { %v957_v8 = vmax.f32 %v903_v39, 0.0  ;;  %v904_v17 = vadd.f32 %v7671_v33, %v843_v16  ;;  %6333 = vmatmul.mubr.msk.bf16.gmra.mrb[140].mxu0 %vm1621_vm3, %v8100_v4 }
 0x191   : > { %9587 = vst [vmem:[#allocation38_spill] sm:$0xff] %v8104_v23 }
 0x192   : > { %v1303_v28 = vsel %vm1255_vm7, %v957_v8, 0.0  ;;  %v958_v43 = vmax.f32 %v904_v17, 0.0 }
 0x193   : > { %v1357_v52 = vrot.slane %v1303_v28, 1  ;;  %v1466_v59 = vrot.slane %v1303_v28, 2  ;;  %v742_v56 = vpop.f32.mrb[80].mxu0 }
 0x194   : > { %v1304_v60 = vsel %vm1250_vm4, %v958_v43, 0.0  ;;  %v844_v32 = vmul.f32 %v7666_v30, %v742_v56  ;;  %v6272_v54 = vpop.f32.mrb[81].mxu0 }
 0x195   : > { %v1358_v0 = vrot.slane %v1304_v60, 1  ;;  %v1467_v39 = vrot.slane %v1304_v60, 2  ;;  %v8116_v51 = vpack.c.bf16 %v1304_v60, %v1303_v28  ;;  %v745_v16 = vpop.f32.mrb[82].mxu0  ;;  %v1389_v23 = vsel %vm1373_vm5, %v1356_v9, %v1357_v52 }
 0x196   : > { %v905_v8 = vadd.f32 %v7671_v33, %v844_v32  ;;  %v845_v17 = vmul.f32 %v7666_v30, %v745_v16  ;;  %v6273_v37 = vpop.f32.mrb[83].mxu0  ;;  %v8122_v2 = vpack.c.bf16 %v1389_v23, %v1390_v15  ;;  %v1498_v43 = vsel %vm1482_vm6, %v1465_v19, %v1466_v59 }
 0x197   : > { %9588 = vst [vmem:[#allocation39_spill] sm:$0xff] %v8116_v51  ;;  %v1388_v56 = vsel %vm1373_vm5, %v1357_v52, %v1358_v0  ;;  %v8128_v54 = vpack.c.bf16 %v1498_v43, %v1499_v41  ;;  %v1497_v28 = vsel %vm1482_vm6, %v1466_v59, %v1467_v39 }
 0x198   : > { %v959_v60 = vmax.f32 %v905_v8, 0.0  ;;  %v906_v9 = vadd.f32 %v7671_v33, %v845_v17  ;;  %6336 = vmatprep.mubr.msk.bf16.mxu0 %vm1621_vm3, %v8122_v2 }
 0x199   : > { %9589 = vst [vmem:[#allocation40_spill] sm:$0xff] %v8128_v54 }
 0x19a   : > { %v1359_v37 = vrot.slane %v959_v60, 1  ;;  %v1468_v15 = vrot.slane %v959_v60, 2  ;;  %v960_v23 = vmax.f32 %v906_v9, 0.0 }
 0x19b   : > { %v750_v32 = vpop.f32.mrb[84].mxu0 }
 0x19c   : > { %v1306_v19 = vsel %vm1255_vm7, %v960_v23, 0.0  ;;  %v846_v52 = vmul.f32 %v7666_v30, %v750_v32  ;;  %v6276_v41 = vpop.f32.mrb[85].mxu0  ;;  %v1387_v16 = vsel %vm1373_vm5, %v1358_v0, %v1359_v37  ;;  %v1496_v59 = vsel %vm1482_vm6, %v1467_v39, %v1468_v15 }
 0x19d   : > { %v1360_v8 = vrot.slane %v1306_v19, 1  ;;  %v1469_v17 = vrot.slane %v1306_v19, 2  ;;  %v8142_v43 = vpack.c.bf16 %v1306_v19, %v959_v60  ;;  %v753_v54 = vpop.f32.mrb[86].mxu0  ;;  %v8144_v49 = vpack.c.bf16 %v1387_v16, %v1388_v56 }
 0x19e   : > { %v907_v9 = vadd.f32 %v7671_v33, %v846_v52  ;;  %v847_v23 = vmul.f32 %v7666_v30, %v753_v54  ;;  %v6277_v21 = vpop.f32.mrb[87].mxu0  ;;  %v8148_v32 = vpack.c.bf16 %v1496_v59, %v1497_v28 }
 0x19f   : > { %9590 = vst [vmem:[#allocation41_spill] sm:$0xff] %v8142_v43  ;;  %6337 = vmatmul.mubr.msk.bf16.gmra.mrb[144].mxu0 %vm1621_vm3, %v8144_v49  ;;  %v1386_v0 = vsel %vm1373_vm5, %v1359_v37, %v1360_v8  ;;  %v1495_v39 = vsel %vm1482_vm6, %v1468_v15, %v1469_v17 }
 0x1a0   : > { %9591 = vst [vmem:[#allocation42_spill] sm:$0xff] %v8148_v32  ;;  %v961_v60 = vmax.f32 %v907_v9, 0.0  ;;  %v908_v56 = vadd.f32 %v7671_v33, %v847_v23 }
 0x1a2   : > { %v1307_v19 = vsel %vm1250_vm4, %v961_v60, 0.0  ;;  %v962_v52 = vmax.f32 %v908_v56, 0.0 }
 0x1a3   : > { %v1361_v54 = vrot.slane %v1307_v19, 1  ;;  %v1470_v21 = vrot.slane %v1307_v19, 2  ;;  %v758_v28 = vpop.f32.mrb[88].mxu0 }
 0x1a4   : > { %v1362_v41 = vrot.slane %v962_v52, 1  ;;  %v1471_v16 = vrot.slane %v962_v52, 2  ;;  %v848_v59 = vmul.f32 %v7666_v30, %v758_v28  ;;  %v6280_v32 = vpop.f32.mrb[89].mxu0  ;;  %v8160_v43 = vpack.c.bf16 %v962_v52, %v1307_v19 }
 0x1a5   : > { %v761_v37 = vpop.f32.mrb[90].mxu0  ;;  %v1385_v15 = vsel %vm1373_vm5, %v1360_v8, %v1361_v54  ;;  %v1494_v9 = vsel %vm1482_vm6, %v1469_v17, %v1470_v21 }
 0x1a6   : > { %9592 = vst [vmem:[#allocation43_spill] sm:$0xff] %v8160_v43  ;;  %v909_v23 = vadd.f32 %v7671_v33, %v848_v59  ;;  %v849_v60 = vmul.f32 %v7666_v30, %v761_v37  ;;  %v6281_v56 = vpop.f32.mrb[91].mxu0  ;;  %v8168_v51 = vpack.c.bf16 %v1385_v15, %v1386_v0  ;;  %v1384_v28 = vsel %vm1373_vm5, %v1361_v54, %v1362_v41  ;;  %v7257_v54 = vld [vmem:[%s9477_s2] ss:$0 sm:$0xff] }
 0x1a7   : > { %v8172_v32 = vpack.c.bf16 %v1494_v9, %v1495_v39  ;;  %v1493_v19 = vsel %vm1482_vm6, %v1470_v21, %v1471_v16 }
 0x1a8   : > { %9593 = vst [vmem:[#allocation44_spill] sm:$0xff] %v8168_v51  ;;  %v963_v52 = vmax.f32 %v909_v23, 0.0  ;;  %v910_v8 = vadd.f32 %v7671_v33, %v849_v60  ;;  %6340 = vmatprep.mubr.msk.bf16.mxu0 %vm1621_vm3, %v8168_v51 }
 0x1a9   : > { %9594 = vst [vmem:[#allocation45_spill] sm:$0xff] %v8172_v32 }
 0x1aa   : > { %v1309_v30 = vsel %vm1255_vm7, %v963_v52, 0.0  ;;  %v964_v17 = vmax.f32 %v910_v8, 0.0  ;;  %v7258_v52 = vld [vmem:[%s9478_s3] ss:$0 sm:$0xff] }
 0x1ab   : > { %v1363_v0 = vrot.slane %v1309_v30, 1  ;;  %v1472_v59 = vrot.slane %v1309_v30, 2  ;;  %v766_v37 = vpop.f32.mrb[92].mxu0 }
 0x1ac   : > { %v1310_v39 = vsel %vm1250_vm4, %v964_v17, 0.0  ;;  %v850_v21 = vmul.f32 %v7257_v54, %v766_v37  ;;  %v6284_v15 = vpop.f32.mrb[93].mxu0 }
 0x1ad   : > { %v1364_v33 = vrot.slane %v1310_v39, 1  ;;  %v1473_v9 = vrot.slane %v1310_v39, 2  ;;  %v8186_v23 = vpack.c.bf16 %v1310_v39, %v1309_v30  ;;  %v769_v60 = vpop.f32.mrb[94].mxu0  ;;  %v1383_v56 = vsel %vm1373_vm5, %v1362_v41, %v1363_v0 }
 0x1ae   : > { %v911_v8 = vadd.f32 %v7258_v52, %v850_v21  ;;  %v851_v17 = vmul.f32 %v7257_v54, %v769_v60  ;;  %v6285_v32 = vpop.f32.mrb[95].mxu0  ;;  %v8193_v43 = vpack.c.bf16 %v1383_v56, %v1384_v28  ;;  %v1492_v37 = vsel %vm1482_vm6, %v1471_v16, %v1472_v59 }
 0x1af   : > { %9595 = vst [vmem:[#allocation46_spill] sm:$0xff] %v8186_v23  ;;  %v1382_v30 = vsel %vm1373_vm5, %v1363_v0, %v1364_v33  ;;  %v1491_v39 = vsel %vm1482_vm6, %v1472_v59, %v1473_v9  ;;  %v8201_v15 = vpack.c.bf16 %v1492_v37, %v1493_v19 }
 0x1b0   : > { %9596 = vst [vmem:[#allocation47_spill] sm:$0xff] %v8193_v43  ;;  %v965_v41 = vmax.f32 %v911_v8, 0.0  ;;  %v912_v23 = vadd.f32 %v7258_v52, %v851_v17  ;;  %6341 = vmatmul.mubr.msk.bf16.gmra.mrb[148].mxu0 %vm1621_vm3, %v8193_v43 }
 0x1b1   : > { %9597 = vst [vmem:[#allocation48_spill] sm:$0xff] %v8201_v15 }
 0x1b2   : > { %v1365_v21 = vrot.slane %v965_v41, 1  ;;  %v1474_v32 = vrot.slane %v965_v41, 2  ;;  %v966_v28 = vmax.f32 %v912_v23, 0.0 }
 0x1b3   : > { %v774_v60 = vpop.f32.mrb[96].mxu0 }
 0x1b4   : > { %v1312_v16 = vsel %vm1255_vm7, %v966_v28, 0.0  ;;  %v852_v56 = vmul.f32 %v7257_v54, %v774_v60  ;;  %v6288_v29 = vpop.f32.mrb[97].mxu0  ;;  %v1381_v0 = vsel %vm1373_vm5, %v1364_v33, %v1365_v21  ;;  %v1490_v19 = vsel %vm1482_vm6, %v1473_v9, %v1474_v32 }
 0x1b5   : > { %v1366_v59 = vrot.slane %v1312_v16, 1  ;;  %v1475_v8 = vrot.slane %v1312_v16, 2  ;;  %v8211_v17 = vpack.c.bf16 %v1312_v16, %v965_v41  ;;  %v777_v37 = vpop.f32.mrb[98].mxu0  ;;  %v8213_v15 = vpack.c.bf16 %v1381_v0, %v1382_v30 }
 0x1b6   : > { %v913_v23 = vadd.f32 %v7258_v52, %v852_v56  ;;  %v853_v43 = vmul.f32 %v7257_v54, %v777_v37  ;;  %v6289_v12 = vpop.f32.mrb[99].mxu0  ;;  %v8215_v51 = vpack.c.bf16 %v1490_v19, %v1491_v39  ;;  %v2725_v37 = vsel %vm1694_vm2, %v7877_v27, 0 }
 0x1b7   : > { %9598 = vst [vmem:[#allocation49_spill] sm:$0xff] %v8211_v17  ;;  %6344 = vmatprep.mubr.msk.bf16.mxu0 %vm1621_vm3, %v8213_v15  ;;  %v1380_v29 = vsel %vm1373_vm5, %v1365_v21, %v1366_v59  ;;  %v1489_v33 = vsel %vm1482_vm6, %v1474_v32, %v1475_v8 }
 0x1b8   : > { %9599 = vst [vmem:[#allocation50_spill] sm:$0xff] %v8215_v51  ;;  %v967_v9 = vmax.f32 %v913_v23, 0.0  ;;  %v914_v41 = vadd.f32 %v7258_v52, %v853_v43  ;;  %6444 = vmatprep.mubr.msk.bf16.mxu1 %vm1621_vm3, %v8215_v51 }
 0x1ba   : > { %v1313_v30 = vsel %vm1250_vm4, %v967_v9, 0.0  ;;  %v968_v12 = vmax.f32 %v914_v41, 0.0 }
 0x1bb   : > { %v1367_v39 = vrot.slane %v1313_v30, 1  ;;  %v1476_v28 = vrot.slane %v1313_v30, 2  ;;  %v782_v60 = vpop.f32.mrb[100].mxu0 }
 0x1bc   : > { %v1368_v16 = vrot.slane %v968_v12, 1  ;;  %v1477_v56 = vrot.slane %v968_v12, 2  ;;  %v8227_v0 = vpack.c.bf16 %v968_v12, %v1313_v30  ;;  %v854_v21 = vmul.f32 %v7257_v54, %v782_v60  ;;  %v6292_v19 = vpop.f32.mrb[101].mxu0 }
 0x1bd   : > { %v1379_v32 = vsel %vm1373_vm5, %v1366_v59, %v1367_v39  ;;  %v1488_v43 = vsel %vm1482_vm6, %v1475_v8, %v1476_v28  ;;  %v785_v23 = vpop.f32.mrb[102].mxu0  ;;  %v5663_v59 = vld [vmem:[%s9479_s4 + $0x6] sm:$0x3] }
 0x1be   : > { %9600 = vst [vmem:[#allocation51_spill] sm:$0xff] %v8227_v0  ;;  %v915_v9 = vadd.f32 %v7258_v52, %v854_v21  ;;  %v8235_v41 = vpack.c.bf16 %v1379_v32, %v1380_v29  ;;  %v8237_v51 = vpack.c.bf16 %v1488_v43, %v1489_v33  ;;  %v6293_v17 = vpop.f32.mrb[103].mxu0  ;;  %v1378_v54 = vsel %vm1373_vm5, %v1367_v39, %v1368_v16 }
 0x1bf   : > { %v1487_v8 = vsel %vm1482_vm6, %v1476_v28, %v1477_v56  ;;  %v9528_v52 = vmov 0.0|0.0   ;;  %v2606_v33 = vrot.slane %v7761_v63, 4  ;;  %v2608_v28 = vrot.slane %v7783_v24, 4 }
 0x1c0   : > { %v969_v30 = vmax.f32 %v915_v9, 0.0  ;;  %6345 = vmatmul.mubr.msk.bf16.gmra.mrb[152].mxu0 %vm1621_vm3, %v8235_v41  ;;  %6445 = vmatmul.mubr.msk.bf16.vlgmr.msra.gmra.mrb[0].mxu1 %vm1621_vm3, %v8237_v51  ;;  %v9601_v21 = vmov 0.0   ;;  %v3099_v32 = vsel %vm1694_vm2, %v5663_v59, 0  ;;  %v9602_v9 = vrot.slane %v7733_v35, 4 }
 0x1c1   : > { %6449 = vmatpush3.bf16.msra.mxu1 %v2725_v37  ;;  %6450 = vmatprep.mubr.msk.bf16.mxu1 %vm1621_vm3, %v7750_v47  ;;  %v8272_v19 = vpack.c.bf16 %v7680_v40, %v9601_v21  ;;  %v8288_v40 = vld [vmem:[%s9479_s4 + $0xa] sm:$0x3]  ;;  %v2610_v35 = vrot.slane %v7807_v61, 4 }
 0x1c2   : > { %v8254_v27 = vsel %vm1255_vm7, %v969_v30, 0.0  ;;  %6350 = vmatprep.mubr.bf16.mxu0 %v9528_v52  ;;  %7189 = vmatprep.subr.msk.bf16.mxu1 %vm1694_vm2, %v5663_v59  ;;  %v2616_v30 = vrot.slane %v7895_v55, 4 }
 0x1c3   : > { %v1369_v17 = vrot.slane %v8254_v27, 1  ;;  %v9529_v29 = vrot.slane %v8254_v27, 2  ;;  %v790_v12 = vpop.f32.mrb[104].mxu0  ;;  %v2611_v59 = vsel %vm2602_vm8, %v2608_v28, %v2610_v35 }
 0x1c4   : > { %v6296_v39 = vpop.f32.mrb[105].mxu0 }
 0x1c5   : > { %v1377_v44 = vsel %vm1373_vm5, %v1368_v16, %v1369_v17  ;;  %v1486_v47 = vsel %vm1482_vm6, %v1477_v56, %v9529_v29  ;;  %v793_v60 = vpop.f32.mrb[106].mxu0  ;;  %v2607_v16 = vsel %vm2602_vm8, %v9602_v9, %v2606_v33  ;;  %v2609_v56 = vsel %vm2602_vm8, %v2606_v33, %v2608_v28  ;;  %v9617_v29 = vld [vmem:[#allocation11_spill] sm:$0xff] }
 0x1c6   : > { %v8275_v43 = vpack.c.bf16 %v1377_v44, %v1378_v54  ;;  %v8277_v37 = vpack.c.bf16 %v1486_v47, %v1487_v8  ;;  %v6297_v23 = vpop.f32.mrb[107].mxu0  ;;  %v2612_v54 = vrot.slane %v7829_v31, 4  ;;  %v2618_v39 = vrot.slane %v7918_v45, 4 }
 0x1c7   : > { %v2620_v28 = vrot.slane %v7940_v26, 4  ;;  %v2622_v60 = vrot.slane %v7964_v46, 4 }
 0x1c8   : > { %6351 = vmatmul.mubr.msk.bf16.vlgmr.msra.gmra.mrb[108].mxu0 %vm1621_vm3, %v8272_v19  ;;  %6451 = vmatmul.mubr.msk.bf16.vlgmr.msra.gmra.mrb[4].mxu1 %vm1621_vm3, %v2607_v16  ;;  %v2613_v8 = vsel %vm2602_vm8, %v2610_v35, %v2612_v54  ;;  %v2619_v44 = vsel %vm2602_vm8, %v2616_v30, %v2618_v39  ;;  %v2626_v16 = vrot.slane %v8008_v58, 4 }
 0x1c9   : > { %6499 = vmatpush3.bf16.msra.mxu1 %v3099_v32  ;;  %6354 = vmatprep.mubr.msk.bf16.mxu0 %vm1621_vm3, %v7712_v6  ;;  %v2621_v47 = vsel %vm2602_vm8, %v2618_v39, %v2620_v28  ;;  %v2624_v32 = vrot.slane %v7986_v1, 4  ;;  %v2623_v23 = vsel %vm2602_vm8, %v2620_v28, %v2622_v60 }
 0x1ca   : > { %6454 = vmatprep.mubr.msk.bf16.mxu1 %vm1621_vm3, %v2609_v56  ;;  %6399 = vmatpush3.bf16.msra.mxu0 %v7860_v10  ;;  %v2614_v10 = vrot.slane %v7854_v5, 4  ;;  %v2628_v56 = vrot.slane %v8032_v50, 4 }
 0x1cb   : > { %7190 = vmatprep.subr.msk.bf16.mxu1 %vm1694_vm2, %v8288_v40  ;;  %v2625_v9 = vsel %vm2602_vm8, %v2622_v60, %v2624_v32  ;;  %v2627_v35 = vsel %vm2602_vm8, %v2624_v32, %v2626_v16 }
 0x1cc   : > { %v2615_v33 = vsel %vm2602_vm8, %v2612_v54, %v2614_v10  ;;  %v2617_v12 = vsel %vm2602_vm8, %v2614_v10, %v2616_v30  ;;  %v2629_v54 = vsel %vm2602_vm8, %v2626_v16, %v2628_v56  ;;  %v9605_v16 = vld [vmem:[#allocation37_spill] sm:$0xff] }
 0x1d0   : > { %6355 = vmatmul.mubr.msk.bf16.gmra.mrb[112].mxu0 %vm1621_vm3, %v7725_v25  ;;  %6455 = vmatmul.mubr.msk.bf16.gmra.mrb[8].mxu1 %vm1621_vm3, %v2611_v59  ;;  %v2630_v59 = vrot.slane %v8054_v11, 4 }
 0x1d1   : > { %6358 = vmatprep.mubr.msk.bf16.mxu0 %vm1621_vm3, %v7755_v57  ;;  %6458 = vmatprep.mubr.msk.bf16.mxu1 %vm1621_vm3, %v2613_v8  ;;  %v2632_v8 = vrot.slane %v8076_v38, 4 }
 0x1d2   : > { %v2631_v10 = vsel %vm2602_vm8, %v2628_v56, %v2630_v59  ;;  %v9606_v56 = vld [vmem:[#allocation47_spill] sm:$0xff] }
 0x1d3   : > { %v2633_v30 = vsel %vm2602_vm8, %v2630_v59, %v2632_v8 }
 0x1d8   : > { %6359 = vmatmul.mubr.msk.bf16.gmra.mrb[116].mxu0 %vm1621_vm3, %v7781_v20  ;;  %6459 = vmatmul.mubr.msk.bf16.gmra.mrb[12].mxu1 %vm1621_vm3, %v2615_v33  ;;  %v2634_v33 = vrot.slane %v8100_v4, 4 }
 0x1d9   : > { %6362 = vmatprep.mubr.msk.bf16.mxu0 %vm1621_vm3, %v7799_v53  ;;  %6462 = vmatprep.mubr.msk.bf16.mxu1 %vm1621_vm3, %v2617_v12  ;;  %v2636_v12 = vrot.slane %v8122_v2, 4 }
 0x1da   : > { %v2635_v39 = vsel %vm2602_vm8, %v2632_v8, %v2634_v33  ;;  %v9607_v8 = vld [vmem:[#allocation39_spill] sm:$0xff] }
 0x1db   : > { %v2637_v28 = vsel %vm2602_vm8, %v2634_v33, %v2636_v12  ;;  %v2646_v33 = vrot.slane %v8235_v41, 4 }
 0x1e0   : > { %6363 = vmatmul.mubr.msk.bf16.gmra.mrb[120].mxu0 %vm1621_vm3, %v7823_v18  ;;  %6463 = vmatmul.mubr.msk.bf16.gmra.mrb[16].mxu1 %vm1621_vm3, %v2619_v44  ;;  %v2638_v44 = vrot.slane %v8144_v49, 4 }
 0x1e1   : > { %6366 = vmatprep.mubr.msk.bf16.mxu0 %vm1621_vm3, %v7852_v62  ;;  %6466 = vmatprep.mubr.msk.bf16.mxu1 %vm1621_vm3, %v2621_v47  ;;  %v9603_v47 = vld [vmem:[#allocation44_spill] sm:$0xff] }
 0x1e2   : > { %v2640_v60 = vrot.slane %v9603_v47, 4  ;;  %v2639_v32 = vsel %vm2602_vm8, %v2636_v12, %v2638_v44  ;;  %v2648_v12 = vrot.slane %v8275_v43, 4 }
 0x1e8   : > { %6367 = vmatmul.mubr.msk.bf16.gmra.mrb[124].mxu0 %vm1621_vm3, %v7889_v48  ;;  %6467 = vmatmul.mubr.msk.bf16.gmra.mrb[20].mxu1 %vm1621_vm3, %v2623_v23  ;;  %v9604_v23 = vld [vmem:[#allocation35_spill] sm:$0xff] }
 0x1e9   : > { %6370 = vmatprep.mubr.msk.bf16.mxu0 %vm1621_vm3, %v7912_v22  ;;  %6470 = vmatprep.mubr.msk.bf16.mxu1 %vm1621_vm3, %v2625_v9  ;;  %v2641_v9 = vsel %vm2602_vm8, %v2638_v44, %v2640_v60 }
 0x1f0   : > { %6371 = vmatmul.mubr.msk.bf16.gmra.mrb[128].mxu0 %vm1621_vm3, %v7938_v13  ;;  %6471 = vmatmul.mubr.msk.bf16.gmra.mrb[24].mxu1 %vm1621_vm3, %v2627_v35  ;;  %v2642_v35 = vrot.slane %v9606_v56, 4 }
 0x1f1   : > { %6374 = vmatprep.mubr.msk.bf16.mxu0 %vm1621_vm3, %v7956_v14  ;;  %6474 = vmatprep.mubr.msk.bf16.mxu1 %vm1621_vm3, %v2629_v54  ;;  %v2644_v54 = vrot.slane %v8213_v15, 4 }
 0x1f2   : > { %v2643_v59 = vsel %vm2602_vm8, %v2640_v60, %v2642_v35 }
 0x1f3   : > { %v2647_v44 = vsel %vm2602_vm8, %v2644_v54, %v2646_v33 }
 0x1f8   : > { %6375 = vmatmul.mubr.msk.bf16.gmra.mrb[132].mxu0 %vm1621_vm3, %v7980_v36  ;;  %6475 = vmatmul.mubr.msk.bf16.gmra.mrb[28].mxu1 %vm1621_vm3, %v2631_v10  ;;  %v2645_v10 = vsel %vm2602_vm8, %v2642_v35, %v2644_v54  ;;  %v9611_v35 = vld [vmem:[#allocation46_spill] sm:$0xff]  ;;  %v9612_v54 = vld [vmem:[#allocation8_spill] sm:$0xff] }
 0x1f9   : > { %6378 = vmatprep.mubr.msk.bf16.mxu0 %vm1621_vm3, %v8006_v3  ;;  %6478 = vmatprep.mubr.msk.bf16.mxu1 %vm1621_vm3, %v2633_v30  ;;  %v9608_v30 = vld [vmem:[#allocation41_spill] sm:$0xff] }
 0x200   : > { %6379 = vmatmul.mubr.msk.bf16.gmra.mrb[136].mxu0 %vm1621_vm3, %v8024_v42  ;;  %6479 = vmatmul.mubr.msk.bf16.gmra.mrb[32].mxu1 %vm1621_vm3, %v2635_v39  ;;  %v9609_v39 = vld [vmem:[#allocation5_spill] sm:$0xff] }
 0x201   : > { %6382 = vmatprep.mubr.msk.bf16.mxu0 %vm1621_vm3, %v8048_v7  ;;  %6482 = vmatprep.mubr.msk.bf16.mxu1 %vm1621_vm3, %v2637_v28  ;;  %v1376_v28 = vsel %vm1373_vm5, %v1369_v17, %v9609_v39  ;;  %v2978_v17 = vrot.slane %v7712_v6, 4  ;;  %v2980_v6 = vrot.slane %v7725_v25, 4 }
 0x202   : > { %v8396_v60 = vpack.c.bf16 %v9609_v39, %v1376_v28  ;;  %v2977_v39 = vrot.slane %v8272_v19, 4  ;;  %v3475_v19 = vsel %vm1694_vm2, %v8288_v40, 0  ;;  %v2984_v40 = vrot.slane %v7781_v20, 4 }
 0x208   : > { %6383 = vmatmul.mubr.msk.bf16.gmra.mrb[140].mxu0 %vm1621_vm3, %v9604_v23  ;;  %6483 = vmatmul.mubr.msk.bf16.gmra.mrb[36].mxu1 %vm1621_vm3, %v2639_v32  ;;  %v9610_v32 = vld [vmem:[#allocation43_spill] sm:$0xff] }
 0x209   : > { %6386 = vmatprep.mubr.msk.bf16.mxu0 %vm1621_vm3, %v9605_v16  ;;  %6486 = vmatprep.mubr.msk.bf16.mxu1 %vm1621_vm3, %v2641_v9  ;;  %v2649_v9 = vsel %vm2602_vm8, %v2646_v33, %v2648_v12  ;;  %v2979_v33 = vsel %vm2602_vm8, %v2977_v39, %v2978_v17  ;;  %v9615_v39 = vld [vmem:[#allocation9_spill] sm:$0xff] }
 0x210   : > { %6387 = vmatmul.mubr.msk.bf16.gmra.mrb[144].mxu0 %vm1621_vm3, %v9607_v8  ;;  %6487 = vmatmul.mubr.msk.bf16.gmra.mrb[40].mxu1 %vm1621_vm3, %v2643_v59  ;;  %v2650_v59 = vrot.slane %v8396_v60, 4 }
 0x211   : > { %6390 = vmatprep.mubr.msk.bf16.mxu0 %vm1621_vm3, %v9608_v30  ;;  %6490 = vmatprep.mubr.msk.bf16.mxu1 %vm1621_vm3, %v2645_v10  ;;  %v8409_v10 = vpack.c.bf16 %v9612_v54, %v9612_v54 }
 0x212   : > { %v2651_v28 = vsel %vm2602_vm8, %v2648_v12, %v2650_v59  ;;  %v2981_v12 = vsel %vm2602_vm8, %v2978_v17, %v2980_v6  ;;  %v8428_v59 = vld [vmem:[%s9479_s4 + $0xe] sm:$0x3]  ;;  %v2986_v17 = vrot.slane %v7799_v53, 4 }
 0x213   : > { %9613 = vst [vmem:[#allocation44_spill] sm:$0xff] %v8409_v10  ;;  %v9619_v53 = vld [vmem:[#allocation14_spill] sm:$0xff] }
 0x218   : > { %6391 = vmatmul.mubr.msk.bf16.gmra.mrb[148].mxu0 %vm1621_vm3, %v9610_v32  ;;  %6491 = vmatmul.mubr.msk.bf16.gmra.mrb[44].mxu1 %vm1621_vm3, %v2647_v44  ;;  %v9614_v44 = vld [vmem:[#allocation49_spill] sm:$0xff] }
 0x219   : > { %6394 = vmatprep.mubr.msk.bf16.mxu0 %vm1621_vm3, %v9611_v35  ;;  %6494 = vmatprep.mubr.msk.bf16.mxu1 %vm1621_vm3, %v2649_v9  ;;  %v2982_v9 = vrot.slane %v7755_v57, 4 }
 0x21b   : > { %v2985_v52 = vsel %vm2602_vm8, %v2982_v9, %v2984_v40 }
 0x220   : > { %6395 = vmatmul.mubr.msk.bf16.gmra.mrb[152].mxu0 %vm1621_vm3, %v9614_v44  ;;  %6495 = vmatmul.mubr.msk.bf16.gmra.mrb[0].mxu1 %vm1621_vm3, %v2651_v28  ;;  %v9616_v28 = vld [vmem:[#allocation10_spill] sm:$0xff] }
 0x221   : > { %6500 = vmatprep.mubr.msk.bf16.mxu1 %vm1621_vm3, %v2979_v33  ;;  %6400 = vmatprep.mubr.msk.bf16.mxu0 %vm1621_vm3, %v8409_v10  ;;  %v2983_v33 = vsel %vm2602_vm8, %v2980_v6, %v2982_v9  ;;  %v2988_v6 = vrot.slane %v7823_v18, 4  ;;  %v9620_v9 = vld [vmem:[#allocation16_spill] sm:$0xff]  ;;  %v9621_v18 = vld [vmem:[#allocation18_spill] sm:$0xff] }
 0x223   : > { %v2989_v10 = vsel %vm2602_vm8, %v2986_v17, %v2988_v6 }
 0x228   : > { %6401 = vmatmul.mubr.msk.bf16.vlgmr.msra.gmra.mrb[108].mxu0 %vm1621_vm3, %v9615_v39  ;;  %6501 = vmatmul.mubr.msk.bf16.vlgmr.msra.gmra.mrb[4].mxu1 %vm1621_vm3, %v2981_v12  ;;  %v9618_v12 = vld [vmem:[#allocation12_spill] sm:$0xff] }
 0x229   : > { %6549 = vmatpush3.bf16.msra.mxu1 %v3475_v19  ;;  %6404 = vmatprep.mubr.msk.bf16.mxu0 %vm1621_vm3, %v9616_v28  ;;  %v2987_v19 = vsel %vm2602_vm8, %v2984_v40, %v2986_v17  ;;  %v2992_v40 = vrot.slane %v7889_v48, 4  ;;  %v9622_v17 = vld [vmem:[#allocation20_spill] sm:$0xff]  ;;  %v9623_v48 = vld [vmem:[#allocation22_spill] sm:$0xff] }
 0x22a   : > { %6504 = vmatprep.mubr.msk.bf16.mxu1 %vm1621_vm3, %v2983_v33  ;;  %7191 = vmatprep.subr.msk.bf16.mxu1 %vm1694_vm2, %v8428_v59  ;;  %v2990_v33 = vrot.slane %v7852_v62, 4 }
 0x22c   : > { %v2993_v62 = vsel %vm2602_vm8, %v2990_v33, %v2992_v40 }
 0x230   : > { %6405 = vmatmul.mubr.msk.bf16.gmra.mrb[112].mxu0 %vm1621_vm3, %v9617_v29  ;;  %6505 = vmatmul.mubr.msk.bf16.gmra.mrb[8].mxu1 %vm1621_vm3, %v2985_v52  ;;  %v2991_v52 = vsel %vm2602_vm8, %v2988_v6, %v2990_v33  ;;  %v2996_v6 = vrot.slane %v7938_v13, 4  ;;  %v9624_v33 = vld [vmem:[#allocation24_spill] sm:$0xff]  ;;  %v9625_v13 = vld [vmem:[#allocation26_spill] sm:$0xff] }
 0x231   : > { %6408 = vmatprep.mubr.msk.bf16.mxu0 %vm1621_vm3, %v9618_v12  ;;  %6508 = vmatprep.mubr.msk.bf16.mxu1 %vm1621_vm3, %v2987_v19  ;;  %v2994_v19 = vrot.slane %v7912_v22, 4 }
 0x233   : > { %v2997_v22 = vsel %vm2602_vm8, %v2994_v19, %v2996_v6 }
 0x238   : > { %6409 = vmatmul.mubr.msk.bf16.gmra.mrb[116].mxu0 %vm1621_vm3, %v9619_v53  ;;  %6509 = vmatmul.mubr.msk.bf16.gmra.mrb[12].mxu1 %vm1621_vm3, %v2989_v10  ;;  %v2995_v10 = vsel %vm2602_vm8, %v2992_v40, %v2994_v19  ;;  %v3000_v40 = vrot.slane %v7980_v36, 4  ;;  %v9626_v19 = vld [vmem:[#allocation28_spill] sm:$0xff]  ;;  %v9627_v36 = vld [vmem:[#allocation30_spill] sm:$0xff] }
 0x239   : > { %6412 = vmatprep.mubr.msk.bf16.mxu0 %vm1621_vm3, %v9620_v9  ;;  %6512 = vmatprep.mubr.msk.bf16.mxu1 %vm1621_vm3, %v2991_v52  ;;  %v2998_v52 = vrot.slane %v7956_v14, 4 }
 0x23b   : > { %v3001_v14 = vsel %vm2602_vm8, %v2998_v52, %v3000_v40 }
 0x240   : > { %6413 = vmatmul.mubr.msk.bf16.gmra.mrb[120].mxu0 %vm1621_vm3, %v9621_v18  ;;  %6513 = vmatmul.mubr.msk.bf16.gmra.mrb[16].mxu1 %vm1621_vm3, %v2993_v62  ;;  %v2999_v62 = vsel %vm2602_vm8, %v2996_v6, %v2998_v52  ;;  %v3004_v6 = vrot.slane %v8024_v42, 4  ;;  %v9628_v52 = vld [vmem:[#allocation32_spill] sm:$0xff]  ;;  %v9629_v42 = vld [vmem:[#allocation34_spill] sm:$0xff] }
 0x241   : > { %6416 = vmatprep.mubr.msk.bf16.mxu0 %vm1621_vm3, %v9622_v17  ;;  %6516 = vmatprep.mubr.msk.bf16.mxu1 %vm1621_vm3, %v2995_v10  ;;  %v3002_v10 = vrot.slane %v8006_v3, 4 }
 0x243   : > { %v3005_v3 = vsel %vm2602_vm8, %v3002_v10, %v3004_v6 }
 0x248   : > { %6417 = vmatmul.mubr.msk.bf16.gmra.mrb[124].mxu0 %vm1621_vm3, %v9623_v48  ;;  %6517 = vmatmul.mubr.msk.bf16.gmra.mrb[20].mxu1 %vm1621_vm3, %v2997_v22  ;;  %v3003_v22 = vsel %vm2602_vm8, %v3000_v40, %v3002_v10  ;;  %v3008_v40 = vrot.slane %v9604_v23, 4  ;;  %v9630_v10 = vld [vmem:[#allocation36_spill] sm:$0xff]  ;;  %v9631_v23 = vld [vmem:[#allocation38_spill] sm:$0xff] }
 0x249   : > { %6420 = vmatprep.mubr.msk.bf16.mxu0 %vm1621_vm3, %v9624_v33  ;;  %6520 = vmatprep.mubr.msk.bf16.mxu1 %vm1621_vm3, %v2999_v62  ;;  %v3006_v62 = vrot.slane %v8048_v7, 4 }
 0x24b   : > { %v3009_v7 = vsel %vm2602_vm8, %v3006_v62, %v3008_v40 }
 0x250   : > { %6421 = vmatmul.mubr.msk.bf16.gmra.mrb[128].mxu0 %vm1621_vm3, %v9625_v13  ;;  %6521 = vmatmul.mubr.msk.bf16.gmra.mrb[24].mxu1 %vm1621_vm3, %v3001_v14  ;;  %v3007_v14 = vsel %vm2602_vm8, %v3004_v6, %v3006_v62  ;;  %v3012_v6 = vrot.slane %v9607_v8, 4  ;;  %v9632_v62 = vld [vmem:[#allocation40_spill] sm:$0xff]  ;;  %v9633_v8 = vld [vmem:[#allocation42_spill] sm:$0xff] }
 0x251   : > { %6424 = vmatprep.mubr.msk.bf16.mxu0 %vm1621_vm3, %v9626_v19  ;;  %6524 = vmatprep.mubr.msk.bf16.mxu1 %vm1621_vm3, %v3003_v22  ;;  %v3010_v22 = vrot.slane %v9605_v16, 4 }
 0x253   : > { %v3013_v16 = vsel %vm2602_vm8, %v3010_v22, %v3012_v6 }
 0x258   : > { %6425 = vmatmul.mubr.msk.bf16.gmra.mrb[132].mxu0 %vm1621_vm3, %v9627_v36  ;;  %6525 = vmatmul.mubr.msk.bf16.gmra.mrb[28].mxu1 %vm1621_vm3, %v3005_v3  ;;  %v3011_v3 = vsel %vm2602_vm8, %v3008_v40, %v3010_v22  ;;  %v3016_v40 = vrot.slane %v9610_v32, 4  ;;  %v9634_v22 = vld [vmem:[#allocation45_spill] sm:$0xff]  ;;  %v9636_v32 = vld [vmem:[#allocation48_spill] sm:$0xff] }
 0x259   : > { %6428 = vmatprep.mubr.msk.bf16.mxu0 %vm1621_vm3, %v9628_v52  ;;  %6528 = vmatprep.mubr.msk.bf16.mxu1 %vm1621_vm3, %v3007_v14  ;;  %v3014_v14 = vrot.slane %v9608_v30, 4 }
 0x25b   : > { %v3017_v30 = vsel %vm2602_vm8, %v3014_v14, %v3016_v40 }
 0x260   : > { %6429 = vmatmul.mubr.msk.bf16.gmra.mrb[136].mxu0 %vm1621_vm3, %v9629_v42  ;;  %6529 = vmatmul.mubr.msk.bf16.gmra.mrb[32].mxu1 %vm1621_vm3, %v3009_v7  ;;  %v3015_v7 = vsel %vm2602_vm8, %v3012_v6, %v3014_v14  ;;  %v3020_v6 = vrot.slane %v9614_v44, 4 }
 0x261   : > { %6432 = vmatprep.mubr.msk.bf16.mxu0 %vm1621_vm3, %v9630_v10  ;;  %6532 = vmatprep.mubr.msk.bf16.mxu1 %vm1621_vm3, %v3011_v3  ;;  %v3018_v3 = vrot.slane %v9611_v35, 4  ;;  %v8533_v35 = vpack.c.bf16 %v9601_v21, %v8254_v27 }
 0x263   : > { %9635 = vst [vmem:[#allocation47_spill] sm:$0xff] %v8533_v35  ;;  %v3021_v14 = vsel %vm2602_vm8, %v3018_v3, %v3020_v6 }
 0x268   : > { %6433 = vmatmul.mubr.msk.bf16.gmra.mrb[140].mxu0 %vm1621_vm3, %v9631_v23  ;;  %6533 = vmatmul.mubr.msk.bf16.gmra.mrb[36].mxu1 %vm1621_vm3, %v3013_v16  ;;  %v3019_v16 = vsel %vm2602_vm8, %v3016_v40, %v3018_v3  ;;  %v3024_v40 = vrot.slane %v8533_v35, 4 }
 0x269   : > { %6436 = vmatprep.mubr.msk.bf16.mxu0 %vm1621_vm3, %v9632_v62  ;;  %6536 = vmatprep.mubr.msk.bf16.mxu1 %vm1621_vm3, %v3015_v7  ;;  %v3022_v7 = vrot.slane %v8227_v0, 4  ;;  %v3353_v0 = vrot.slane %v9615_v39, 4  ;;  %v8556_v39 = vld [vmem:[%s9479_s4 + $0xc] sm:$0x3] }
 0x26b   : > { %v3025_v21 = vsel %vm2602_vm8, %v3022_v7, %v3024_v40 }
 0x270   : > { %6437 = vmatmul.mubr.msk.bf16.gmra.mrb[144].mxu0 %vm1621_vm3, %v9633_v8  ;;  %6537 = vmatmul.mubr.msk.bf16.gmra.mrb[40].mxu1 %vm1621_vm3, %v3017_v30  ;;  %v3023_v30 = vsel %vm2602_vm8, %v3020_v6, %v3022_v7  ;;  %v3358_v6 = vrot.slane %v9618_v12, 4 }
 0x271   : > { %6440 = vmatprep.mubr.msk.bf16.mxu0 %vm1621_vm3, %v9634_v22  ;;  %6540 = vmatprep.mubr.msk.bf16.mxu1 %vm1621_vm3, %v3019_v16  ;;  %v3354_v16 = vrot.slane %v9616_v28, 4  ;;  %v3360_v28 = vrot.slane %v9619_v53, 4 }
 0x273   : > { %v3355_v3 = vsel %vm2602_vm8, %v3353_v0, %v3354_v16  ;;  %v3361_v7 = vsel %vm2602_vm8, %v3358_v6, %v3360_v28 }
 0x278   : > { %6441 = vmatmul.mubr.msk.bf16.gmra.mrb[148].mxu0 %vm1621_vm3, %v9636_v32  ;;  %6541 = vmatmul.mubr.msk.bf16.gmra.mrb[44].mxu1 %vm1621_vm3, %v3021_v14  ;;  %v3356_v14 = vrot.slane %v9617_v29, 4 }
 0x279   : > { %6544 = vmatprep.mubr.msk.bf16.mxu1 %vm1621_vm3, %v3023_v30  ;;  %v3764_v30 = vsel %vm1694_vm2, %v8428_v59, 0  ;;  %v3362_v59 = vrot.slane %v9620_v9, 4 }
 0x27a   : > { %v3357_v35 = vsel %vm2602_vm8, %v3354_v16, %v3356_v14  ;;  %v3359_v0 = vsel %vm2602_vm8, %v3356_v14, %v3358_v6  ;;  %v3366_v16 = vrot.slane %v9622_v17, 4  ;;  %v3368_v14 = vrot.slane %v9623_v48, 4 }
 0x27b   : > { %v3363_v40 = vsel %vm2602_vm8, %v3360_v28, %v3362_v59  ;;  %v3370_v6 = vrot.slane %v9624_v33, 4  ;;  %v3372_v28 = vrot.slane %v9625_v13, 4 }
 0x280   : > { %6545 = vmatmul.mubr.msk.bf16.gmra.mrb[0].mxu1 %vm1621_vm3, %v3025_v21 }
 0x281   : > { %6550 = vmatprep.mubr.msk.bf16.mxu1 %vm1621_vm3, %v3355_v3 }
 0x288   : > { %6551 = vmatmul.mubr.msk.bf16.vlgmr.msra.gmra.mrb[4].mxu1 %vm1621_vm3, %v3357_v35  ;;  %v3364_v35 = vrot.slane %v9621_v18, 4 }
 0x289   : > { %6599 = vmatpush3.bf16.msra.mxu1 %v3764_v30  ;;  %6554 = vmatprep.mubr.msk.bf16.mxu1 %vm1621_vm3, %v3359_v0  ;;  %v3369_v30 = vsel %vm2602_vm8, %v3366_v16, %v3368_v14  ;;  %v3371_v0 = vsel %vm2602_vm8, %v3368_v14, %v3370_v6  ;;  %v3380_v14 = vrot.slane %v9629_v42, 4 }
 0x28a   : > { %7192 = vmatprep.subr.msk.bf16.mxu1 %vm1694_vm2, %v8556_v39  ;;  %v3365_v21 = vsel %vm2602_vm8, %v3362_v59, %v3364_v35  ;;  %v3367_v3 = vsel %vm2602_vm8, %v3364_v35, %v3366_v16  ;;  %v3374_v59 = vrot.slane %v9626_v19, 4  ;;  %v3376_v35 = vrot.slane %v9627_v36, 4 }
 0x28b   : > { %v3378_v16 = vrot.slane %v9628_v52, 4 }
 0x290   : > { %6555 = vmatmul.mubr.msk.bf16.gmra.mrb[8].mxu1 %vm1621_vm3, %v3361_v7  ;;  %v3373_v7 = vsel %vm2602_vm8, %v3370_v6, %v3372_v28  ;;  %v3382_v6 = vrot.slane %v9630_v10, 4 }
 0x291   : > { %6558 = vmatprep.mubr.msk.bf16.mxu1 %vm1621_vm3, %v3363_v40  ;;  %v3375_v40 = vsel %vm2602_vm8, %v3372_v28, %v3374_v59  ;;  %v3384_v28 = vrot.slane %v9631_v23, 4 }
 0x298   : > { %6559 = vmatmul.mubr.msk.bf16.gmra.mrb[12].mxu1 %vm1621_vm3, %v3365_v21  ;;  %v3377_v21 = vsel %vm2602_vm8, %v3374_v59, %v3376_v35  ;;  %v3386_v59 = vrot.slane %v9632_v62, 4 }
 0x299   : > { %6562 = vmatprep.mubr.msk.bf16.mxu1 %vm1621_vm3, %v3367_v3  ;;  %v3379_v3 = vsel %vm2602_vm8, %v3376_v35, %v3378_v16  ;;  %v3388_v35 = vrot.slane %v9633_v8, 4 }
 0x2a0   : > { %6563 = vmatmul.mubr.msk.bf16.gmra.mrb[16].mxu1 %vm1621_vm3, %v3369_v30  ;;  %v3381_v30 = vsel %vm2602_vm8, %v3378_v16, %v3380_v14  ;;  %v3390_v16 = vrot.slane %v9634_v22, 4 }
 0x2a1   : > { %6566 = vmatprep.mubr.msk.bf16.mxu1 %vm1621_vm3, %v3371_v0  ;;  %v3383_v0 = vsel %vm2602_vm8, %v3380_v14, %v3382_v6  ;;  %v3392_v14 = vrot.slane %v9636_v32, 4 }
 0x2a8   : > { %6567 = vmatmul.mubr.msk.bf16.gmra.mrb[20].mxu1 %vm1621_vm3, %v3373_v7  ;;  %v3385_v7 = vsel %vm2602_vm8, %v3382_v6, %v3384_v28  ;;  %v9637_v6 = vld [vmem:[#allocation50_spill] sm:$0xff] }
 0x2a9   : > { %6570 = vmatprep.mubr.msk.bf16.mxu1 %vm1621_vm3, %v3375_v40  ;;  %v3387_v40 = vsel %vm2602_vm8, %v3384_v28, %v3386_v59 }
 0x2b0   : > { %6571 = vmatmul.mubr.msk.bf16.gmra.mrb[24].mxu1 %vm1621_vm3, %v3377_v21  ;;  %v3389_v21 = vsel %vm2602_vm8, %v3386_v59, %v3388_v35  ;;  %v3396_v59 = vrot.slane %v8237_v51, 4 }
 0x2b1   : > { %6574 = vmatprep.mubr.msk.bf16.mxu1 %vm1621_vm3, %v3379_v3  ;;  %v3391_v3 = vsel %vm2602_vm8, %v3388_v35, %v3390_v16 }
 0x2b8   : > { %6575 = vmatmul.mubr.msk.bf16.gmra.mrb[28].mxu1 %vm1621_vm3, %v3381_v30  ;;  %v3394_v30 = vrot.slane %v9637_v6, 4 }
 0x2b9   : > { %6578 = vmatprep.mubr.msk.bf16.mxu1 %vm1621_vm3, %v3383_v0  ;;  %v3393_v0 = vsel %vm2602_vm8, %v3390_v16, %v3392_v14 }
 0x2ba   : > { %v3395_v28 = vsel %vm2602_vm8, %v3392_v14, %v3394_v30 }
 0x2c0   : > { %6579 = vmatmul.mubr.msk.bf16.gmra.mrb[32].mxu1 %vm1621_vm3, %v3385_v7  ;;  %v3398_v7 = vrot.slane %v8277_v37, 4 }
 0x2c1   : > { %6582 = vmatprep.mubr.msk.bf16.mxu1 %vm1621_vm3, %v3387_v40  ;;  %v9638_v40 = vrot.slane %v8254_v27, 2  ;;  %v4001_v27 = vsel %vm1694_vm2, %v8556_v39, 0 }
 0x2c3   : > { %v1485_v35 = vsel %vm1482_vm6, %v9638_v40, %v9612_v54 }
 0x2c4   : > { %v8626_v16 = vpack.c.bf16 %v9612_v54, %v1485_v35  ;;  %v8641_v54 = vld [vmem:[%s9479_s4 + $0x10] sm:$0x3] }
 0x2c6   : > { %v3400_v14 = vrot.slane %v8626_v16, 4 }
 0x2c8   : > { %6583 = vmatmul.mubr.msk.bf16.gmra.mrb[36].mxu1 %vm1621_vm3, %v3389_v21  ;;  %v3397_v21 = vsel %vm2602_vm8, %v3394_v30, %v3396_v59 }
 0x2c9   : > { %6586 = vmatprep.mubr.msk.bf16.mxu1 %vm1621_vm3, %v3391_v3  ;;  %v3399_v3 = vsel %vm2602_vm8, %v3396_v59, %v3398_v7 }
 0x2d0   : > { %6587 = vmatmul.mubr.msk.bf16.gmra.mrb[40].mxu1 %vm1621_vm3, %v3393_v0  ;;  %v3401_v0 = vsel %vm2602_vm8, %v3398_v7, %v3400_v14 }
 0x2d1   : > { %6590 = vmatprep.mubr.msk.bf16.mxu1 %vm1621_vm3, %v3395_v28 }
 0x2d8   : > { %6591 = vmatmul.mubr.msk.bf16.gmra.mrb[44].mxu1 %vm1621_vm3, %v3397_v21 }
 0x2d9   : > { %6594 = vmatprep.mubr.msk.bf16.mxu1 %vm1621_vm3, %v3399_v3 }
 0x2e0   : > { %6595 = vmatmul.mubr.msk.bf16.gmra.mrb[0].mxu1 %vm1621_vm3, %v3401_v0 }
 0x2e1   : > { %6600 = vmatprep.mubr.msk.bf16.mxu1 %vm1621_vm3, %v7761_v63 }
 0x2e8   : > { %6601 = vmatmul.mubr.msk.bf16.vlgmr.msra.gmra.mrb[4].mxu1 %vm1621_vm3, %v7783_v24 }
 0x2e9   : > { %6649 = vmatpush3.bf16.msra.mxu1 %v4001_v27  ;;  %6604 = vmatprep.mubr.msk.bf16.mxu1 %vm1621_vm3, %v7807_v61 }
 0x2ea   : > { %7193 = vmatprep.subr.msk.bf16.mxu1 %vm1694_vm2, %v8641_v54 }
 0x2f0   : > { %6605 = vmatmul.mubr.msk.bf16.gmra.mrb[8].mxu1 %vm1621_vm3, %v7829_v31 }
 0x2f1   : > { %6608 = vmatprep.mubr.msk.bf16.mxu1 %vm1621_vm3, %v7854_v5 }
 0x2f3   : > { %v8653_v63 = vpop.f32.mrb[152].mxu0 }
 0x2f4   : > { %9639 = vst [vmem:[#allocation5_spill] sm:$0xff] %v8653_v63  ;;  %v8655_v39 = vpop.f32.mrb[153].mxu0 }
 0x2f5   : > { %9640 = vst [vmem:[#allocation8_spill] sm:$0xff] %v8655_v39  ;;  %v8657_v30 = vpop.f32.mrb[154].mxu0 }
 0x2f6   : > { %9641 = vst [vmem:[#allocation49_spill] sm:$0xff] %v8657_v30  ;;  %v8659_v24 = vpop.f32.mrb[155].mxu0 }
 0x2f7   : > { %9642 = vst [vmem:[#allocation9_spill] sm:$0xff] %v8659_v24 }
 0x2f8   : > { %6609 = vmatmul.mubr.msk.bf16.gmra.mrb[12].mxu1 %vm1621_vm3, %v7895_v55 }
 0x2f9   : > { %6612 = vmatprep.mubr.msk.bf16.mxu1 %vm1621_vm3, %v7918_v45 }
 0x2fb   : > { %v8665_v61 = vpop.f32.mrb[108].mxu0 }
 0x2fc   : > { %v8667_v31 = vpop.f32.mrb[109].mxu0 }
 0x2fd   : > { %v8669_v28 = vpop.f32.mrb[110].mxu0 }
 0x2fe   : > { %v8671_v5 = vpop.f32.mrb[111].mxu0 }
 0x300   : > { %6613 = vmatmul.mubr.msk.bf16.gmra.mrb[16].mxu1 %vm1621_vm3, %v7940_v26 }
 0x301   : > { %6616 = vmatprep.mubr.msk.bf16.mxu1 %vm1621_vm3, %v7964_v46 }
 0x303   : > { %v8677_v59 = vpop.f32.mrb[112].mxu0 }
 0x304   : > { %v8679_v55 = vpop.f32.mrb[113].mxu0 }
 0x305   : > { %v8681_v7 = vpop.f32.mrb[114].mxu0 }
 0x306   : > { %v8683_v45 = vpop.f32.mrb[115].mxu0 }
 0x308   : > { %6617 = vmatmul.mubr.msk.bf16.gmra.mrb[20].mxu1 %vm1621_vm3, %v7986_v1 }
 0x309   : > { %6620 = vmatprep.mubr.msk.bf16.mxu1 %vm1621_vm3, %v8008_v58 }
 0x30b   : > { %v8689_v40 = vpop.f32.mrb[116].mxu0 }
 0x30c   : > { %v8691_v26 = vpop.f32.mrb[117].mxu0 }
 0x30d   : > { %v8693_v35 = vpop.f32.mrb[118].mxu0 }
 0x30e   : > { %v8695_v46 = vpop.f32.mrb[119].mxu0 }
 0x310   : > { %6621 = vmatmul.mubr.msk.bf16.gmra.mrb[24].mxu1 %vm1621_vm3, %v8032_v50 }
 0x311   : > { %6624 = vmatprep.mubr.msk.bf16.mxu1 %vm1621_vm3, %v8054_v11 }
 0x313   : > { %v8701_v21 = vpop.f32.mrb[120].mxu0 }
 0x314   : > { %v8703_v1 = vpop.f32.mrb[121].mxu0 }
 0x315   : > { %v8705_v3 = vpop.f32.mrb[122].mxu0 }
 0x316   : > { %v8707_v58 = vpop.f32.mrb[123].mxu0 }
 0x318   : > { %6625 = vmatmul.mubr.msk.bf16.gmra.mrb[28].mxu1 %vm1621_vm3, %v8076_v38 }
 0x319   : > { %6628 = vmatprep.mubr.msk.bf16.mxu1 %vm1621_vm3, %v8100_v4 }
 0x31b   : > { %v8713_v14 = vpop.f32.mrb[124].mxu0 }
 0x31c   : > { %v8715_v50 = vpop.f32.mrb[125].mxu0 }
 0x31d   : > { %v8717_v0 = vpop.f32.mrb[126].mxu0 }
 0x31e   : > { %v8719_v11 = vpop.f32.mrb[127].mxu0 }
 0x320   : > { %6629 = vmatmul.mubr.msk.bf16.gmra.mrb[32].mxu1 %vm1621_vm3, %v8122_v2 }
 0x321   : > { %6632 = vmatprep.mubr.msk.bf16.mxu1 %vm1621_vm3, %v8144_v49 }
 0x323   : > { %v8725_v27 = vpop.f32.mrb[128].mxu0 }
 0x324   : > { %v8727_v38 = vpop.f32.mrb[129].mxu0 }
 0x325   : > { %v8729_v34 = vpop.f32.mrb[130].mxu0 }
 0x326   : > { %v8731_v4 = vpop.f32.mrb[131].mxu0 }
 0x328   : > { %6633 = vmatmul.mubr.msk.bf16.gmra.mrb[36].mxu1 %vm1621_vm3, %v9603_v47 }
 0x329   : > { %6636 = vmatprep.mubr.msk.bf16.mxu1 %vm1621_vm3, %v9606_v56 }
 0x32b   : > { %v8737_v24 = vpop.f32.mrb[132].mxu0 }
 0x32c   : > { %v8739_v2 = vpop.f32.mrb[133].mxu0 }
 0x32d   : > { %v8741_v30 = vpop.f32.mrb[134].mxu0 }
 0x32e   : > { %9643 = vst [vmem:[#allocation10_spill] sm:$0xff] %v8741_v30  ;;  %v8743_v49 = vpop.f32.mrb[135].mxu0 }
 0x32f   : > { %9644 = vst [vmem:[#allocation11_spill] sm:$0xff] %v8743_v49 }
 0x330   : > { %6637 = vmatmul.mubr.msk.bf16.gmra.mrb[40].mxu1 %vm1621_vm3, %v8213_v15 }
 0x331   : > { %6640 = vmatprep.mubr.msk.bf16.mxu1 %vm1621_vm3, %v8235_v41 }
 0x333   : > { %v8749_v39 = vpop.f32.mrb[136].mxu0 }
 0x334   : > { %9645 = vst [vmem:[#allocation12_spill] sm:$0xff] %v8749_v39  ;;  %v8751_v47 = vpop.f32.mrb[137].mxu0  ;;  %v9649_v39 = vld [vmem:[#allocation6_spill] sm:$0xff] }
 0x335   : > { %v8753_v63 = vpop.f32.mrb[138].mxu0 }
 0x336   : > { %9646 = vst [vmem:[#allocation14_spill] sm:$0xff] %v8753_v63  ;;  %v8755_v56 = vpop.f32.mrb[139].mxu0 }
 0x337   : > { %9647 = vst [vmem:[#allocation16_spill] sm:$0xff] %v8755_v56 }
 0x338   : > { %6641 = vmatmul.mubr.msk.bf16.gmra.mrb[44].mxu1 %vm1621_vm3, %v8275_v43 }
 0x339   : > { %6644 = vmatprep.mubr.msk.bf16.mxu1 %vm1621_vm3, %v8396_v60 }
 0x33b   : > { %v8761_v49 = vpop.f32.mrb[140].mxu0 }
 0x33c   : > { %v8763_v15 = vpop.f32.mrb[141].mxu0 }
 0x33d   : > { %9648 = vst [vmem:[#allocation18_spill] sm:$0xff] %v8763_v15  ;;  %v8765_v30 = vpop.f32.mrb[142].mxu0  ;;  %v4240_v15 = vsel %vm1694_vm2, %v8641_v54, 0  ;;  %v9658_v54 = vld [vmem:[#allocation17_spill] sm:$0xff] }
 0x33e   : > { %v8767_v41 = vpop.f32.mrb[143].mxu0 }
 0x340   : > { %6645 = vmatmul.mubr.msk.bf16.gmra.mrb[0].mxu1 %vm1621_vm3, %v9649_v39 }
 0x341   : > { %6650 = vmatprep.mubr.msk.bf16.mxu1 %vm1621_vm3, %v7725_v25 }
 0x343   : > { %v8773_v56 = vpop.f32.mrb[144].mxu0 }
 0x344   : > { %9650 = vst [vmem:[#allocation20_spill] sm:$0xff] %v8773_v56  ;;  %v8775_v43 = vpop.f32.mrb[145].mxu0 }
 0x345   : > { %9651 = vst [vmem:[#allocation22_spill] sm:$0xff] %v8775_v43  ;;  %v8777_v63 = vpop.f32.mrb[146].mxu0 }
 0x346   : > { %9652 = vst [vmem:[#allocation24_spill] sm:$0xff] %v8777_v63  ;;  %v8779_v60 = vpop.f32.mrb[147].mxu0  ;;  %v9656_v63 = vld [vmem:[#allocation13_spill] sm:$0xff] }
 0x347   : > { %9653 = vst [vmem:[#allocation26_spill] sm:$0xff] %v8779_v60  ;;  %v9657_v60 = vld [vmem:[#allocation15_spill] sm:$0xff] }
 0x348   : > { %6651 = vmatmul.mubr.msk.bf16.vlgmr.msra.gmra.mrb[4].mxu1 %vm1621_vm3, %v7755_v57  ;;  %v9659_v57 = vld [vmem:[#allocation19_spill] sm:$0xff] }
 0x349   : > { %6699 = vmatpush3.bf16.msra.mxu1 %v4240_v15  ;;  %6654 = vmatprep.mubr.msk.bf16.mxu1 %vm1621_vm3, %v7781_v20  ;;  %v9660_v20 = vld [vmem:[#allocation21_spill] sm:$0xff]  ;;  %v9661_v15 = vld [vmem:[#allocation23_spill] sm:$0xff] }
 0x34b   : > { %v8787_v39 = vpop.f32.mrb[148].mxu0 }
 0x34c   : > { %v8789_v25 = vpop.f32.mrb[149].mxu0 }
 0x34d   : > { %v8791_v56 = vpop.f32.mrb[150].mxu0 }
 0x34e   : > { %9654 = vst [vmem:[#allocation28_spill] sm:$0xff] %v8791_v56  ;;  %v8793_v43 = vpop.f32.mrb[151].mxu0  ;;  %v9662_v56 = vld [vmem:[#allocation25_spill] sm:$0xff] }
 0x34f   : > { %9655 = vst [vmem:[#allocation30_spill] sm:$0xff] %v8793_v43  ;;  %v9663_v43 = vld [vmem:[#allocation27_spill] sm:$0xff] }
 0x350   : > { %6655 = vmatmul.mubr.msk.bf16.gmra.mrb[8].mxu1 %vm1621_vm3, %v9656_v63  ;;  %v9664_v63 = vld [vmem:[#allocation29_spill] sm:$0xff] }
 0x351   : > { %6658 = vmatprep.mubr.msk.bf16.mxu1 %vm1621_vm3, %v9657_v60  ;;  %v9665_v60 = vld [vmem:[#allocation31_spill] sm:$0xff] }
 0x358   : > { %6659 = vmatmul.mubr.msk.bf16.gmra.mrb[12].mxu1 %vm1621_vm3, %v9658_v54  ;;  %v9666_v54 = vld [vmem:[#allocation33_spill] sm:$0xff] }
 0x359   : > { %6662 = vmatprep.mubr.msk.bf16.mxu1 %vm1621_vm3, %v9659_v57  ;;  %v9667_v57 = vld [vmem:[#allocation35_spill] sm:$0xff] }
 0x360   : > { %6663 = vmatmul.mubr.msk.bf16.gmra.mrb[16].mxu1 %vm1621_vm3, %v9660_v20  ;;  %v9668_v20 = vld [vmem:[#allocation37_spill] sm:$0xff] }
 0x361   : > { %6666 = vmatprep.mubr.msk.bf16.mxu1 %vm1621_vm3, %v9661_v15 }
 0x368   : > { %6667 = vmatmul.mubr.msk.bf16.gmra.mrb[20].mxu1 %vm1621_vm3, %v9662_v56  ;;  %v4793_v56 = vld [vmem:[%s9482_s7] sm:$0x3] }
 0x369   : > { %6670 = vmatprep.mubr.msk.bf16.mxu1 %vm1621_vm3, %v9663_v43  ;;  %v9669_v43 = vld [vmem:[#allocation39_spill] sm:$0xff]  ;;  %7194 = vmatprep.subr.msk.bf16.mxu0 %vm1694_vm2, %v4793_v56  ;;  %v4867_v15 = vsel %vm1694_vm2, %v4793_v56, 0  ;;  %v9675_v56 = vmov 0.0|0.0  }
 0x36a   : > { %6749 = vmatpush3.bf16.msra.mxu0 %v4867_v15 }
 0x370   : > { %6671 = vmatmul.mubr.msk.bf16.gmra.mrb[24].mxu1 %vm1621_vm3, %v9664_v63  ;;  %v9670_v63 = vld [vmem:[#allocation41_spill] sm:$0xff] }
 0x371   : > { %6674 = vmatprep.mubr.msk.bf16.mxu1 %vm1621_vm3, %v9665_v60  ;;  %v9671_v60 = vld [vmem:[#allocation43_spill] sm:$0xff] }
 0x378   : > { %6675 = vmatmul.mubr.msk.bf16.gmra.mrb[28].mxu1 %vm1621_vm3, %v9666_v54  ;;  %v9672_v54 = vld [vmem:[#allocation46_spill] sm:$0xff] }
 0x379   : > { %6678 = vmatprep.mubr.msk.bf16.mxu1 %vm1621_vm3, %v9667_v57  ;;  %v9673_v57 = vld [vmem:[#allocation51_spill] sm:$0xff] }
 0x380   : > { %6679 = vmatmul.mubr.msk.bf16.gmra.mrb[32].mxu1 %vm1621_vm3, %v9668_v20  ;;  %v9674_v20 = vld [vmem:[#allocation47_spill] sm:$0xff] }
 0x381   : > { %6682 = vmatprep.mubr.msk.bf16.mxu1 %vm1621_vm3, %v9669_v43 }
 0x388   : > { %6683 = vmatmul.mubr.msk.bf16.gmra.mrb[36].mxu1 %vm1621_vm3, %v9670_v63 }
 0x389   : > { %6686 = vmatprep.mubr.msk.bf16.mxu1 %vm1621_vm3, %v9671_v60 }
 0x390   : > { %6687 = vmatmul.mubr.msk.bf16.gmra.mrb[40].mxu1 %vm1621_vm3, %v9672_v54 }
 0x391   : > { %6690 = vmatprep.mubr.msk.bf16.mxu1 %vm1621_vm3, %v9614_v44 }
 0x398   : > { %6691 = vmatmul.mubr.msk.bf16.gmra.mrb[44].mxu1 %vm1621_vm3, %v9673_v57 }
 0x399   : > { %6694 = vmatprep.mubr.msk.bf16.mxu1 %vm1621_vm3, %v9674_v20 }
 0x3a0   : > { %6695 = vmatmul.mubr.bf16.gmra.mrb[0].mxu1 %v9675_v56 }
 0x3a1   : > { %6700 = vmatprep.mubr.msk.bf16.mxu1 %vm1621_vm3, %v9617_v29 }
 0x3a8   : > { %6701 = vmatmul.mubr.msk.bf16.vlgmr.msra.gmra.mrb[4].mxu1 %vm1621_vm3, %v9618_v12 }
 0x3a9   : > { %6704 = vmatprep.mubr.msk.bf16.mxu1 %vm1621_vm3, %v9619_v53  ;;  %v9676_v53 = vld [vmem:[#allocation44_spill] sm:$0xff] }
 0x3b0   : > { %6705 = vmatmul.mubr.msk.bf16.gmra.mrb[8].mxu1 %vm1621_vm3, %v9620_v9 }
 0x3b1   : > { %6708 = vmatprep.mubr.msk.bf16.mxu1 %vm1621_vm3, %v9621_v18 }
 0x3b8   : > { %6709 = vmatmul.mubr.msk.bf16.gmra.mrb[12].mxu1 %vm1621_vm3, %v9622_v17 }
 0x3b9   : > { %6712 = vmatprep.mubr.msk.bf16.mxu1 %vm1621_vm3, %v9623_v48  ;;  %v8892_v48 = vld [vmem:[%s9480_s5] ss:$0 sm:$0xff] }
 0x3c0   : > { %6713 = vmatmul.mubr.msk.bf16.gmra.mrb[16].mxu1 %vm1621_vm3, %v9624_v33 }
 0x3c1   : > { %6716 = vmatprep.mubr.msk.bf16.mxu1 %vm1621_vm3, %v9625_v13 }
 0x3c8   : > { %6717 = vmatmul.mubr.msk.bf16.gmra.mrb[20].mxu1 %vm1621_vm3, %v9626_v19 }
 0x3c9   : > { %6720 = vmatprep.mubr.msk.bf16.mxu1 %vm1621_vm3, %v9627_v36  ;;  %v8898_v36 = vld [vmem:[%s9481_s6] ss:$0 sm:$0xff] }
 0x3d0   : > { %6721 = vmatmul.mubr.msk.bf16.gmra.mrb[24].mxu1 %vm1621_vm3, %v9628_v52 }
 0x3d1   : > { %6724 = vmatprep.mubr.msk.bf16.mxu1 %vm1621_vm3, %v9629_v42 }
 0x3d8   : > { %6725 = vmatmul.mubr.msk.bf16.gmra.mrb[28].mxu1 %vm1621_vm3, %v9630_v10 }
 0x3d9   : > { %6728 = vmatprep.mubr.msk.bf16.mxu1 %vm1621_vm3, %v9631_v23 }
 0x3e0   : > { %6729 = vmatmul.mubr.msk.bf16.gmra.mrb[32].mxu1 %vm1621_vm3, %v9632_v62 }
 0x3e1   : > { %6732 = vmatprep.mubr.msk.bf16.mxu1 %vm1621_vm3, %v9633_v8 }
 0x3e8   : > { %6733 = vmatmul.mubr.msk.bf16.gmra.mrb[36].mxu1 %vm1621_vm3, %v9634_v22 }
 0x3e9   : > { %6736 = vmatprep.mubr.msk.bf16.mxu1 %vm1621_vm3, %v9636_v32 }
 0x3f0   : > { %6737 = vmatmul.mubr.msk.bf16.gmra.mrb[40].mxu1 %vm1621_vm3, %v9637_v6 }
 0x3f1   : > { %6740 = vmatprep.mubr.msk.bf16.mxu1 %vm1621_vm3, %v8237_v51 }
 0x3f8   : > { %6741 = vmatmul.mubr.msk.bf16.gmra.mrb[44].mxu1 %vm1621_vm3, %v8277_v37 }
 0x3f9   : > { %6744 = vmatprep.mubr.msk.bf16.mxu1 %vm1621_vm3, %v8626_v16 }
 0x400   : > { %6745 = vmatmul.mubr.msk.bf16.gmra.mrb[0].mxu1 %vm1621_vm3, %v9676_v53 }
 0x47b   : > { %v6702_v18 = vpop.f32.mrb[4].mxu1 }
 0x47c   : > { %v6800_v13 = vadd.f32 %v6702_v18, %v8665_v61  ;;  %v4276_v42 = vpop.f32.mrb[5].mxu1 }
 0x47d   : > { %v6801_v51 = vadd.f32 %v4276_v42, %v8667_v31  ;;  %v6703_v29 = vpop.f32.mrb[6].mxu1 }
 0x47e   : > { %v4620_v37 = vmul.f32 %v6800_v13, %v8892_v48  ;;  %v6802_v23 = vadd.f32 %v6703_v29, %v8669_v28  ;;  %v4279_v8 = vpop.f32.mrb[7].mxu1 }
 0x47f   : > { %v4618_v32 = vmul.f32 %v6801_v51, %v8892_v48  ;;  %v6803_v44 = vadd.f32 %v4279_v8, %v8671_v5 }
 0x480   : > { %v4675_v12 = vadd.f32 %v8898_v36, %v4620_v37  ;;  %v4621_v9 = vmul.f32 %v6802_v23, %v8892_v48 }
 0x481   : > { %v4673_v17 = vadd.f32 %v8898_v36, %v4618_v32  ;;  %v4619_v33 = vmul.f32 %v6803_v44, %v8892_v48 }
 0x482   : > { %v4676_v19 = vadd.f32 %v8898_v36, %v4621_v9  ;;  %v4723_v62 = vmax.f32 %v4675_v12, 0.0 }
 0x483   : > { %v4674_v52 = vadd.f32 %v8898_v36, %v4619_v33  ;;  %v6706_v10 = vpop.f32.mrb[8].mxu1  ;;  %v4721_v61 = vmax.f32 %v4673_v17, 0.0 }
 0x484   : > { %v4724_v22 = vmax.f32 %v4676_v19, 0.0  ;;  %v6804_v6 = vadd.f32 %v6706_v10, %v8677_v59  ;;  %v4292_v16 = vpop.f32.mrb[9].mxu1 }
 0x485   : > { %v4722_v31 = vmax.f32 %v4674_v52, 0.0  ;;  %v6805_v28 = vadd.f32 %v4292_v16, %v8679_v55  ;;  %v6707_v5 = vpop.f32.mrb[10].mxu1 }
 0x486   : > { %v4770_v43 = vpack.c.bf16 %v4724_v22, %v4723_v62  ;;  %v4624_v15 = vmul.f32 %v6804_v6, %v8892_v48  ;;  %v6806_v63 = vadd.f32 %v6707_v5, %v8681_v7  ;;  %v4295_v60 = vpop.f32.mrb[11].mxu1 }
 0x487   : > { %v4769_v54 = vpack.c.bf16 %v4722_v31, %v4721_v61  ;;  %v4622_v57 = vmul.f32 %v6805_v28, %v8892_v48  ;;  %v6807_v20 = vadd.f32 %v4295_v60, %v8683_v45 }
 0x488   : > { %v4679_v56 = vadd.f32 %v8898_v36, %v4624_v15  ;;  %v4625_v59 = vmul.f32 %v6806_v63, %v8892_v48 }
 0x489   : > { %v4677_v53 = vadd.f32 %v8898_v36, %v4622_v57  ;;  %v4623_v55 = vmul.f32 %v6807_v20, %v8892_v48  ;;  %6750 = vmatprep.mubr.msk.bf16.mxu0 %vm1621_vm3, %v4769_v54 }
 0x48a   : > { %v4680_v18 = vadd.f32 %v8898_v36, %v4625_v59  ;;  %6751 = vmatmul.mubr.msk.bf16.vlgmr.msra.gmra.mrb[156].mxu0 %vm1621_vm3, %v4770_v43  ;;  %v4727_v42 = vmax.f32 %v4679_v56, 0.0 }
 0x48b   : > { %v4678_v7 = vadd.f32 %v8898_v36, %v4623_v55  ;;  %v6710_v13 = vpop.f32.mrb[12].mxu1  ;;  %v4725_v37 = vmax.f32 %v4677_v53, 0.0 }
 0x48c   : > { %v4728_v51 = vmax.f32 %v4680_v18, 0.0  ;;  %v6808_v45 = vadd.f32 %v6710_v13, %v8689_v40  ;;  %v4308_v29 = vpop.f32.mrb[13].mxu1 }
 0x48d   : > { %v4726_v23 = vmax.f32 %v4678_v7, 0.0  ;;  %v6809_v8 = vadd.f32 %v4308_v29, %v8691_v26  ;;  %v6711_v32 = vpop.f32.mrb[14].mxu1 }
 0x48e   : > { %v4772_v44 = vpack.c.bf16 %v4728_v51, %v4727_v42  ;;  %v4628_v12 = vmul.f32 %v6808_v45, %v8892_v48  ;;  %v6810_v9 = vadd.f32 %v6711_v32, %v8693_v35  ;;  %v4311_v17 = vpop.f32.mrb[15].mxu1 }
 0x48f   : > { %v4771_v33 = vpack.c.bf16 %v4726_v23, %v4725_v37  ;;  %v4626_v19 = vmul.f32 %v6809_v8, %v8892_v48  ;;  %v6811_v52 = vadd.f32 %v4311_v17, %v8695_v46 }
 0x490   : > { %v4683_v10 = vadd.f32 %v8898_v36, %v4628_v12  ;;  %v4629_v40 = vmul.f32 %v6810_v9, %v8892_v48 }
 0x491   : > { %v4681_v62 = vadd.f32 %v8898_v36, %v4626_v19  ;;  %v4627_v26 = vmul.f32 %v6811_v52, %v8892_v48  ;;  %6754 = vmatprep.mubr.msk.bf16.mxu0 %vm1621_vm3, %v4771_v33 }
 0x492   : > { %v4684_v22 = vadd.f32 %v8898_v36, %v4629_v40  ;;  %6755 = vmatmul.mubr.msk.bf16.gmra.mrb[160].mxu0 %vm1621_vm3, %v4772_v44  ;;  %v4731_v16 = vmax.f32 %v4683_v10, 0.0 }
 0x493   : > { %v4682_v35 = vadd.f32 %v8898_v36, %v4627_v26  ;;  %v6714_v6 = vpop.f32.mrb[16].mxu1  ;;  %v4729_v28 = vmax.f32 %v4681_v62, 0.0 }
 0x494   : > { %v4732_v61 = vmax.f32 %v4684_v22, 0.0  ;;  %v6812_v46 = vadd.f32 %v6714_v6, %v8701_v21  ;;  %v4324_v31 = vpop.f32.mrb[17].mxu1 }
 0x495   : > { %v4730_v5 = vmax.f32 %v4682_v35, 0.0  ;;  %v6813_v43 = vadd.f32 %v4324_v31, %v8703_v1  ;;  %v6715_v15 = vpop.f32.mrb[18].mxu1 }
 0x496   : > { %v4774_v63 = vpack.c.bf16 %v4732_v61, %v4731_v16  ;;  %v4632_v60 = vmul.f32 %v6812_v46, %v8892_v48  ;;  %v6814_v54 = vadd.f32 %v6715_v15, %v8705_v3  ;;  %v4327_v57 = vpop.f32.mrb[19].mxu1 }
 0x497   : > { %v4773_v20 = vpack.c.bf16 %v4730_v5, %v4729_v28  ;;  %v4630_v56 = vmul.f32 %v6813_v43, %v8892_v48  ;;  %v6815_v59 = vadd.f32 %v4327_v57, %v8707_v58 }
 0x498   : > { %v4687_v53 = vadd.f32 %v8898_v36, %v4632_v60  ;;  %v4633_v21 = vmul.f32 %v6814_v54, %v8892_v48 }
 0x499   : > { %v4685_v55 = vadd.f32 %v8898_v36, %v4630_v56  ;;  %v4631_v1 = vmul.f32 %v6815_v59, %v8892_v48  ;;  %6758 = vmatprep.mubr.msk.bf16.mxu0 %vm1621_vm3, %v4773_v20 }
 0x49a   : > { %v4688_v18 = vadd.f32 %v8898_v36, %v4633_v21  ;;  %6759 = vmatmul.mubr.msk.bf16.gmra.mrb[164].mxu0 %vm1621_vm3, %v4774_v63  ;;  %v4735_v13 = vmax.f32 %v4687_v53, 0.0 }
 0x49b   : > { %v4686_v3 = vadd.f32 %v8898_v36, %v4631_v1  ;;  %v6718_v7 = vpop.f32.mrb[20].mxu1  ;;  %v4733_v45 = vmax.f32 %v4685_v55, 0.0 }
 0x49c   : > { %v4736_v42 = vmax.f32 %v4688_v18, 0.0  ;;  %v6816_v58 = vadd.f32 %v6718_v7, %v8713_v14  ;;  %v4340_v51 = vpop.f32.mrb[21].mxu1 }
 0x49d   : > { %v4734_v29 = vmax.f32 %v4686_v3, 0.0  ;;  %v6817_v37 = vadd.f32 %v4340_v51, %v8715_v50  ;;  %v6719_v23 = vpop.f32.mrb[22].mxu1 }
 0x49e   : > { %v4776_v8 = vpack.c.bf16 %v4736_v42, %v4735_v13  ;;  %v4636_v32 = vmul.f32 %v6816_v58, %v8892_v48  ;;  %v6818_v44 = vadd.f32 %v6719_v23, %v8717_v0  ;;  %v4343_v12 = vpop.f32.mrb[23].mxu1  ;;  %v9677_v13 = vld [vmem:[#allocation10_spill] sm:$0xff] }
 0x49f   : > { %v4775_v9 = vpack.c.bf16 %v4734_v29, %v4733_v45  ;;  %v4634_v17 = vmul.f32 %v6817_v37, %v8892_v48  ;;  %v6819_v33 = vadd.f32 %v4343_v12, %v8719_v11  ;;  %v9678_v29 = vld [vmem:[#allocation11_spill] sm:$0xff] }
 0x4a0   : > { %v4691_v19 = vadd.f32 %v8898_v36, %v4636_v32  ;;  %v4637_v14 = vmul.f32 %v6818_v44, %v8892_v48 }
 0x4a1   : > { %v4689_v52 = vadd.f32 %v8898_v36, %v4634_v17  ;;  %v4635_v50 = vmul.f32 %v6819_v33, %v8892_v48  ;;  %6762 = vmatprep.mubr.msk.bf16.mxu0 %vm1621_vm3, %v4775_v9  ;;  %v9679_v33 = vld [vmem:[#allocation12_spill] sm:$0xff] }
 0x4a2   : > { %v4692_v10 = vadd.f32 %v8898_v36, %v4637_v14  ;;  %6763 = vmatmul.mubr.msk.bf16.gmra.mrb[168].mxu0 %vm1621_vm3, %v4776_v8  ;;  %v4739_v62 = vmax.f32 %v4691_v19, 0.0 }
 0x4a3   : > { %v4690_v0 = vadd.f32 %v8898_v36, %v4635_v50  ;;  %v6722_v40 = vpop.f32.mrb[24].mxu1  ;;  %v4737_v35 = vmax.f32 %v4689_v52, 0.0 }
 0x4a4   : > { %v4740_v26 = vmax.f32 %v4692_v10, 0.0  ;;  %v6820_v11 = vadd.f32 %v6722_v40, %v8725_v27  ;;  %v4356_v22 = vpop.f32.mrb[25].mxu1 }
 0x4a5   : > { %v4738_v6 = vmax.f32 %v4690_v0, 0.0  ;;  %v6821_v16 = vadd.f32 %v4356_v22, %v8727_v38  ;;  %v6723_v61 = vpop.f32.mrb[26].mxu1 }
 0x4a6   : > { %v4778_v46 = vpack.c.bf16 %v4740_v26, %v4739_v62  ;;  %v4640_v31 = vmul.f32 %v6820_v11, %v8892_v48  ;;  %v6822_v28 = vadd.f32 %v6723_v61, %v8729_v34  ;;  %v4359_v5 = vpop.f32.mrb[27].mxu1  ;;  %v9680_v26 = vld [vmem:[#allocation14_spill] sm:$0xff] }
 0x4a7   : > { %v4777_v43 = vpack.c.bf16 %v4738_v6, %v4737_v35  ;;  %v4638_v15 = vmul.f32 %v6821_v16, %v8892_v48  ;;  %v6823_v63 = vadd.f32 %v4359_v5, %v8731_v4  ;;  %v9681_v16 = vld [vmem:[#allocation16_spill] sm:$0xff] }
 0x4a8   : > { %v4695_v60 = vadd.f32 %v8898_v36, %v4640_v31  ;;  %v4641_v27 = vmul.f32 %v6822_v28, %v8892_v48 }
 0x4a9   : > { %v4693_v54 = vadd.f32 %v8898_v36, %v4638_v15  ;;  %v4639_v38 = vmul.f32 %v6823_v63, %v8892_v48  ;;  %6766 = vmatprep.mubr.msk.bf16.mxu0 %vm1621_vm3, %v4777_v43 }
 0x4aa   : > { %v4696_v57 = vadd.f32 %v8898_v36, %v4641_v27  ;;  %6767 = vmatmul.mubr.msk.bf16.gmra.mrb[172].mxu0 %vm1621_vm3, %v4778_v46  ;;  %v4743_v56 = vmax.f32 %v4695_v60, 0.0 }
 0x4ab   : > { %v4694_v34 = vadd.f32 %v8898_v36, %v4639_v38  ;;  %v6726_v20 = vpop.f32.mrb[28].mxu1  ;;  %v4741_v21 = vmax.f32 %v4693_v54, 0.0 }
 0x4ac   : > { %v4744_v59 = vmax.f32 %v4696_v57, 0.0  ;;  %v6824_v4 = vadd.f32 %v6726_v20, %v8737_v24  ;;  %v4372_v53 = vpop.f32.mrb[29].mxu1 }
 0x4ad   : > { %v4742_v55 = vmax.f32 %v4694_v34, 0.0  ;;  %v6825_v1 = vadd.f32 %v4372_v53, %v8739_v2  ;;  %v6727_v18 = vpop.f32.mrb[30].mxu1  ;;  %v9682_v34 = vld [vmem:[#allocation18_spill] sm:$0xff] }
 0x4ae   : > { %v4780_v3 = vpack.c.bf16 %v4744_v59, %v4743_v56  ;;  %v4644_v7 = vmul.f32 %v6824_v4, %v8892_v48  ;;  %v6826_v42 = vadd.f32 %v6727_v18, %v9677_v13  ;;  %v4375_v58 = vpop.f32.mrb[31].mxu1 }
 0x4af   : > { %v4779_v51 = vpack.c.bf16 %v4742_v55, %v4741_v21  ;;  %v4642_v45 = vmul.f32 %v6825_v1, %v8892_v48  ;;  %v6827_v37 = vadd.f32 %v4375_v58, %v9678_v29 }
 0x4b0   : > { %v4699_v23 = vadd.f32 %v8898_v36, %v4644_v7  ;;  %v4645_v24 = vmul.f32 %v6826_v42, %v8892_v48 }
 0x4b1   : > { %v4697_v8 = vadd.f32 %v8898_v36, %v4642_v45  ;;  %v4643_v2 = vmul.f32 %v6827_v37, %v8892_v48  ;;  %6770 = vmatprep.mubr.msk.bf16.mxu0 %vm1621_vm3, %v4779_v51 }
 0x4b2   : > { %v4700_v32 = vadd.f32 %v8898_v36, %v4645_v24  ;;  %6771 = vmatmul.mubr.msk.bf16.gmra.mrb[176].mxu0 %vm1621_vm3, %v4780_v3  ;;  %v4747_v9 = vmax.f32 %v4699_v23, 0.0 }
 0x4b3   : > { %v4698_v44 = vadd.f32 %v8898_v36, %v4643_v2  ;;  %v6730_v12 = vpop.f32.mrb[32].mxu1  ;;  %v4745_v52 = vmax.f32 %v4697_v8, 0.0  ;;  %v9684_v8 = vld [vmem:[#allocation22_spill] sm:$0xff] }
 0x4b4   : > { %v4748_v17 = vmax.f32 %v4700_v32, 0.0  ;;  %v6828_v19 = vadd.f32 %v6730_v12, %v9679_v33  ;;  %v4388_v14 = vpop.f32.mrb[33].mxu1 }
 0x4b5   : > { %v4746_v50 = vmax.f32 %v4698_v44, 0.0  ;;  %v6829_v10 = vadd.f32 %v4388_v14, %v8751_v47  ;;  %v6731_v0 = vpop.f32.mrb[34].mxu1 }
 0x4b6   : > { %v4782_v40 = vpack.c.bf16 %v4748_v17, %v4747_v9  ;;  %v4648_v62 = vmul.f32 %v6828_v19, %v8892_v48  ;;  %v6830_v11 = vadd.f32 %v6731_v0, %v9680_v26  ;;  %v4391_v22 = vpop.f32.mrb[35].mxu1  ;;  %v9685_v9 = vld [vmem:[#allocation24_spill] sm:$0xff] }
 0x4b7   : > { %v4781_v35 = vpack.c.bf16 %v4746_v50, %v4745_v52  ;;  %v4646_v6 = vmul.f32 %v6829_v10, %v8892_v48  ;;  %v6831_v61 = vadd.f32 %v4391_v22, %v9681_v16  ;;  %v9686_v52 = vld [vmem:[#allocation26_spill] sm:$0xff] }
 0x4b8   : > { %v4703_v46 = vadd.f32 %v8898_v36, %v4648_v62  ;;  %v4649_v31 = vmul.f32 %v6830_v11, %v8892_v48 }
 0x4b9   : > { %v4701_v28 = vadd.f32 %v8898_v36, %v4646_v6  ;;  %v4647_v47 = vmul.f32 %v6831_v61, %v8892_v48  ;;  %6774 = vmatprep.mubr.msk.bf16.mxu0 %vm1621_vm3, %v4781_v35 }
 0x4ba   : > { %v4704_v5 = vadd.f32 %v8898_v36, %v4649_v31  ;;  %6775 = vmatmul.mubr.msk.bf16.gmra.mrb[180].mxu0 %vm1621_vm3, %v4782_v40  ;;  %v4751_v63 = vmax.f32 %v4703_v46, 0.0 }
 0x4bb   : > { %v4702_v43 = vadd.f32 %v8898_v36, %v4647_v47  ;;  %v6734_v15 = vpop.f32.mrb[36].mxu1  ;;  %v4749_v38 = vmax.f32 %v4701_v28, 0.0 }
 0x4bc   : > { %v4752_v60 = vmax.f32 %v4704_v5, 0.0  ;;  %v6832_v27 = vadd.f32 %v6734_v15, %v8761_v49  ;;  %v4404_v54 = vpop.f32.mrb[37].mxu1  ;;  %v9687_v15 = vld [vmem:[#allocation28_spill] sm:$0xff] }
 0x4bd   : > { %v4750_v57 = vmax.f32 %v4702_v43, 0.0  ;;  %v6833_v20 = vadd.f32 %v4404_v54, %v9682_v34  ;;  %v6735_v56 = vpop.f32.mrb[38].mxu1 }
 0x4be   : > { %v4784_v59 = vpack.c.bf16 %v4752_v60, %v4751_v63  ;;  %v4652_v4 = vmul.f32 %v6832_v27, %v8892_v48  ;;  %v6834_v53 = vadd.f32 %v6735_v56, %v8765_v30  ;;  %v4407_v21 = vpop.f32.mrb[39].mxu1 }
 0x4bf   : > { %v4783_v55 = vpack.c.bf16 %v4750_v57, %v4749_v38  ;;  %v4650_v1 = vmul.f32 %v6833_v20, %v8892_v48  ;;  %v6835_v18 = vadd.f32 %v4407_v21, %v8767_v41  ;;  %v9683_v41 = vld [vmem:[#allocation20_spill] sm:$0xff]  ;;  %v9688_v38 = vld [vmem:[#allocation30_spill] sm:$0xff] }
 0x4c0   : > { %v4707_v3 = vadd.f32 %v8898_v36, %v4652_v4  ;;  %v4653_v49 = vmul.f32 %v6834_v53, %v8892_v48 }
 0x4c1   : > { %v4705_v7 = vadd.f32 %v8898_v36, %v4650_v1  ;;  %v4651_v13 = vmul.f32 %v6835_v18, %v8892_v48  ;;  %6778 = vmatprep.mubr.msk.bf16.mxu0 %vm1621_vm3, %v4783_v55  ;;  %v9689_v55 = vld [vmem:[#allocation5_spill] sm:$0xff] }
 0x4c2   : > { %v4708_v42 = vadd.f32 %v8898_v36, %v4653_v49  ;;  %6779 = vmatmul.mubr.msk.bf16.gmra.mrb[184].mxu0 %vm1621_vm3, %v4784_v59  ;;  %v4755_v51 = vmax.f32 %v4707_v3, 0.0 }
 0x4c3   : > { %v4706_v30 = vadd.f32 %v8898_v36, %v4651_v13  ;;  %v6738_v58 = vpop.f32.mrb[40].mxu1  ;;  %v4753_v23 = vmax.f32 %v4705_v7, 0.0  ;;  %v9690_v7 = vld [vmem:[#allocation8_spill] sm:$0xff] }
 0x4c4   : > { %v4756_v45 = vmax.f32 %v4708_v42, 0.0  ;;  %v6836_v29 = vadd.f32 %v6738_v58, %v9683_v41  ;;  %v4420_v37 = vpop.f32.mrb[41].mxu1 }
 0x4c5   : > { %v4754_v24 = vmax.f32 %v4706_v30, 0.0  ;;  %v6837_v2 = vadd.f32 %v4420_v37, %v9684_v8  ;;  %v6739_v32 = vpop.f32.mrb[42].mxu1 }
 0x4c6   : > { %v4786_v44 = vpack.c.bf16 %v4756_v45, %v4755_v51  ;;  %v4656_v12 = vmul.f32 %v6836_v29, %v8892_v48  ;;  %v6838_v17 = vadd.f32 %v6739_v32, %v9685_v9  ;;  %v4423_v33 = vpop.f32.mrb[43].mxu1  ;;  %v9691_v51 = vld [vmem:[#allocation49_spill] sm:$0xff] }
 0x4c7   : > { %v4785_v19 = vpack.c.bf16 %v4754_v24, %v4753_v23  ;;  %v4654_v14 = vmul.f32 %v6837_v2, %v8892_v48  ;;  %v6839_v50 = vadd.f32 %v4423_v33, %v9686_v52  ;;  %v9692_v23 = vld [vmem:[#allocation9_spill] sm:$0xff] }
 0x4c8   : > { %v4711_v10 = vadd.f32 %v8898_v36, %v4656_v12  ;;  %v4657_v0 = vmul.f32 %v6838_v17, %v8892_v48  ;;  %v7259_v12 = vld [vmem:[%s7514_s19 + $0x18] sm:$0xff]  ;;  %v7260_v17 = vld [vmem:[%s7514_s19 + $0x20] sm:$0xff] }
 0x4c9   : > { %v4709_v40 = vadd.f32 %v8898_v36, %v4654_v14  ;;  %v4655_v62 = vmul.f32 %v6839_v50, %v8892_v48  ;;  %6782 = vmatprep.mubr.msk.bf16.mxu0 %vm1621_vm3, %v4785_v19  ;;  %v5078_v9 = vrot.slane %v7259_v12, 1  ;;  %v5079_v33 = vrot.slane %v7260_v17, 1 }
 0x4ca   : > { %v4712_v26 = vadd.f32 %v8898_v36, %v4657_v0  ;;  %6783 = vmatmul.mubr.msk.bf16.gmra.mrb[188].mxu0 %vm1621_vm3, %v4786_v44  ;;  %v4759_v35 = vmax.f32 %v4711_v10, 0.0 }
 0x4cb   : > { %v4710_v11 = vadd.f32 %v8898_v36, %v4655_v62  ;;  %v6742_v22 = vpop.f32.mrb[44].mxu1  ;;  %v4757_v46 = vmax.f32 %v4709_v40, 0.0  ;;  %v9069_v62 = vsel %vm1373_vm5, %v5078_v9, %v5079_v33  ;;  %v7280_v9 = vld [vmem:[%s7514_s19 + $0xc8] sm:$0xff] }
 0x4cc   : > { %v4760_v6 = vmax.f32 %v4712_v26, 0.0  ;;  %v6840_v16 = vadd.f32 %v6742_v22, %v8787_v39  ;;  %v4436_v61 = vpop.f32.mrb[45].mxu1  ;;  %v5100_v17 = vrot.slane %v7280_v9, 1 }
 0x4cd   : > { %v4758_v31 = vmax.f32 %v4710_v11, 0.0  ;;  %v6841_v28 = vadd.f32 %v4436_v61, %v8789_v25  ;;  %v6743_v47 = vpop.f32.mrb[46].mxu1  ;;  %v7261_v11 = vld [vmem:[%s7514_s19 + $0x30] sm:$0xff] }
 0x4ce   : > { %v4788_v5 = vpack.c.bf16 %v4760_v6, %v4759_v35  ;;  %v4660_v43 = vmul.f32 %v6840_v16, %v8892_v48  ;;  %v6842_v63 = vadd.f32 %v6743_v47, %v9687_v15  ;;  %v4439_v60 = vpop.f32.mrb[47].mxu1  ;;  %v5081_v22 = vrot.slane %v7261_v11, 1  ;;  %v7262_v35 = vld [vmem:[%s7514_s19 + $0x38] sm:$0xff]  ;;  %v7263_v16 = vld [vmem:[%s7514_s19 + $0x28] sm:$0xff]  ;;  %v7265_v47 = vld [vmem:[%s7514_s19 + $0x50] sm:$0xff] }
 0x4cf   : > { %v4787_v27 = vpack.c.bf16 %v4758_v31, %v4757_v46  ;;  %v4658_v54 = vmul.f32 %v6841_v28, %v8892_v48  ;;  %v6843_v57 = vadd.f32 %v4439_v60, %v9688_v38  ;;  %v5082_v6 = vrot.slane %v7262_v35, 1  ;;  %v7264_v31 = vld [vmem:[%s7514_s19 + $0x48] sm:$0xff] }
 0x4d0   : > { %v4715_v34 = vadd.f32 %v8898_v36, %v4660_v43  ;;  %v4661_v39 = vmul.f32 %v6842_v63, %v8892_v48  ;;  %v5084_v28 = vrot.slane %v7264_v31, 1  ;;  %v7266_v43 = vld [vmem:[%s7514_s19 + $0x40] sm:$0xff]  ;;  %v7267_v63 = vld [vmem:[%s7514_s19 + $0x58] sm:$0xff] }
 0x4d1   : > { %v4713_v20 = vadd.f32 %v8898_v36, %v4658_v54  ;;  %v4659_v25 = vmul.f32 %v6843_v57, %v8892_v48  ;;  %6786 = vmatprep.mubr.msk.bf16.mxu0 %vm1621_vm3, %v4787_v27  ;;  %v9078_v61 = vsel %vm1373_vm5, %v5081_v22, %v5082_v6  ;;  %v5083_v15 = vrot.slane %v7266_v43, 1  ;;  %v7268_v57 = vld [vmem:[%s7514_s19 + $0x68] sm:$0xff]  ;;  %v7285_v22 = vld [vmem:[%s7514_s19 + $0xf0] sm:$0xff] }
 0x4d2   : > { %v4716_v56 = vadd.f32 %v8898_v36, %v4661_v39  ;;  %6787 = vmatmul.mubr.msk.bf16.gmra.mrb[192].mxu0 %vm1621_vm3, %v4788_v5  ;;  %v4763_v53 = vmax.f32 %v4715_v34, 0.0  ;;  %v5085_v5 = vrot.slane %v7265_v47, 1  ;;  %v5086_v60 = vrot.slane %v7267_v63, 1  ;;  %v7269_v39 = vld [vmem:[%s7514_s19 + $0x70] sm:$0xff]  ;;  %v7288_v43 = vld [vmem:[%s7514_s19 + $0x108] sm:$0xff] }
 0x4d3   : > { %v4714_v59 = vadd.f32 %v8898_v36, %v4659_v25  ;;  %v6746_v4 = vpop.f32.mrb[0].mxu1  ;;  %v4761_v3 = vmax.f32 %v4713_v20, 0.0  ;;  %v9094_v54 = vsel %vm1373_vm5, %v5082_v6, %v5083_v15  ;;  %v5088_v34 = vrot.slane %v7268_v57, 1  ;;  %v7270_v25 = vld [vmem:[%s7514_s19 + $0x60] sm:$0xff]  ;;  %v7286_v6 = vld [vmem:[%s7514_s19 + $0xf8] sm:$0xff]  ;;  %v7289_v63 = vld [vmem:[%s7514_s19 + $0x110] sm:$0xff] }
 0x4d4   : > { %v4764_v21 = vmax.f32 %v4716_v56, 0.0  ;;  %v6844_v1 = vadd.f32 %v6746_v4, %v9689_v55  ;;  %v4452_v18 = vpop.f32.mrb[1].mxu1  ;;  %v9090_v27 = vsel %vm1373_vm5, %v5084_v28, %v5085_v5  ;;  %v9098_v38 = vsel %vm1373_vm5, %v5085_v5, %v5086_v60  ;;  %v7272_v55 = vld [vmem:[%s7514_s19 + $0x80] sm:$0xff] }
 0x4d5   : > { %v4762_v49 = vmax.f32 %v4714_v59, 0.0  ;;  %v6845_v13 = vadd.f32 %v4452_v18, %v9690_v7  ;;  %v6747_v42 = vpop.f32.mrb[2].mxu1  ;;  %v5089_v20 = vrot.slane %v7269_v39, 1  ;;  %v5087_v56 = vrot.slane %v7270_v25, 1  ;;  %v7273_v18 = vld [vmem:[%s7514_s19 + $0x90] sm:$0xff]  ;;  %v7290_v57 = vld [vmem:[%s7514_s19 + $0x100] sm:$0xff] }
 0x4d6   : > { %v4790_v30 = vpack.c.bf16 %v4764_v21, %v4763_v53  ;;  %v4664_v58 = vmul.f32 %v6844_v1, %v8892_v48  ;;  %v6846_v45 = vadd.f32 %v6747_v42, %v9691_v51  ;;  %v4455_v41 = vpop.f32.mrb[3].mxu1  ;;  %v7271_v53 = vld [vmem:[%s7514_s19 + $0x78] sm:$0xff]  ;;  %v5091_v1 = vrot.slane %v7272_v55, 1 }
 0x4d7   : > { %v4789_v29 = vpack.c.bf16 %v4762_v49, %v4761_v3  ;;  %v4662_v37 = vmul.f32 %v6845_v13, %v8892_v48  ;;  %v6847_v24 = vadd.f32 %v4455_v41, %v9692_v23  ;;  %v9105_v59 = vsel %vm1373_vm5, %v5088_v34, %v5089_v20  ;;  %v7274_v49 = vld [vmem:[%s7514_s19 + $0x98] sm:$0xff]  ;;  %v7275_v13 = vld [vmem:[%s7514_s19 + $0x88] sm:$0xff]  ;;  %v7278_v23 = vld [vmem:[%s7514_s19 + $0xa0] sm:$0xff] }
 0x4d8   : > { %v4719_v8 = vadd.f32 %v8898_v36, %v4664_v58  ;;  %v4665_v2 = vmul.f32 %v6846_v45, %v8892_v48  ;;  %v9109_v4 = vsel %vm1373_vm5, %v5087_v56, %v5088_v34  ;;  %v5090_v21 = vrot.slane %v7271_v53, 1  ;;  %v7276_v45 = vld [vmem:[%s7514_s19 + $0xa8] sm:$0xff]  ;;  %v7291_v39 = vld [vmem:[%s7514_s19 + $0x118] sm:$0xff] }
 0x4d9   : > { %v4717_v32 = vadd.f32 %v8898_v36, %v4662_v37  ;;  %v4663_v44 = vmul.f32 %v6847_v24, %v8892_v48  ;;  %6790 = vmatprep.mubr.msk.bf16.mxu0 %vm1621_vm3, %v4789_v29  ;;  %v5093_v3 = vrot.slane %v7273_v18, 1  ;;  %v5094_v7 = vrot.slane %v7274_v49, 1  ;;  %v7277_v29 = vld [vmem:[%s7514_s19 + $0xb0] sm:$0xff] }
 0x4da   : > { %v4720_v19 = vadd.f32 %v8898_v36, %v4665_v2  ;;  %6791 = vmatmul.mubr.msk.bf16.gmra.mrb[196].mxu0 %vm1621_vm3, %v4790_v30  ;;  %v4767_v52 = vmax.f32 %v4719_v8, 0.0  ;;  %v5092_v42 = vrot.slane %v7275_v13, 1  ;;  %v9118_v30 = vsel %vm1373_vm5, %v5090_v21, %v5091_v1  ;;  %v7279_v8 = vld [vmem:[%s7514_s19 + $0xb8] sm:$0xff]  ;;  %v7292_v21 = vld [vmem:[%s7514_s19 + $0x128] sm:$0xff] }
 0x4db   : > { %v4718_v14 = vadd.f32 %v8898_v36, %v4663_v44  ;;  %v4765_v10 = vmax.f32 %v4717_v32, 0.0  ;;  %v5080_v36 = vrot.slane %v7263_v16, 1  ;;  %v9122_v58 = vsel %vm1373_vm5, %v5093_v3, %v5094_v7  ;;  %v7294_v3 = vld [vmem:[%s7514_s19 + $0x120] sm:$0xff] }
 0x4dc   : > { %v4768_v50 = vmax.f32 %v4720_v19, 0.0  ;;  %v9126_v51 = vsel %vm1373_vm5, %v5091_v1, %v5092_v42  ;;  %v5096_v41 = vrot.slane %v7276_v45, 1  ;;  %v5097_v37 = vrot.slane %v7277_v29, 1  ;;  %v7293_v1 = vld [vmem:[%s7514_s19 + $0x130] sm:$0xff]  ;;  %v7295_v42 = vld [vmem:[%s7514_s19 + $0x138] sm:$0xff] }
 0x4dd   : > { %v4766_v48 = vmax.f32 %v4718_v14, 0.0  ;;  %v9082_v46 = vsel %vm1373_vm5, %v5079_v33, %v5080_v36  ;;  %v5095_v24 = vrot.slane %v7278_v23, 1  ;;  %v5098_v2 = vrot.slane %v7279_v8, 1  ;;  %v7281_v33 = vld [vmem:[%s7514_s19 + $0xd0] sm:$0xff]  ;;  %v7282_v14 = vld [vmem:[%s7514_s19 + $0xc0] sm:$0xff]  ;;  %v7287_v36 = vld [vmem:[%s7514_s19 + $0xe8] sm:$0xff] }
 0x4de   : > { %v4792_v0 = vpack.c.bf16 %v4768_v50, %v4767_v52  ;;  %v9134_v32 = vsel %vm1373_vm5, %v5096_v41, %v5097_v37  ;;  %v5101_v19 = vrot.slane %v7281_v33, 1  ;;  %v5099_v52 = vrot.slane %v7282_v14, 1  ;;  %v7296_v41 = vld [vmem:[%s7514_s19 + $0x140] sm:$0xff]  ;;  %v7300_v14 = vld [vmem:[%s7514_s19 + $0x168] sm:$0xff] }
 0x4df   : > { %v4791_v26 = vpack.c.bf16 %v4766_v48, %v4765_v10  ;;  %v9138_v44 = vsel %vm1373_vm5, %v5094_v7, %v5095_v24  ;;  %v9142_v12 = vsel %vm1373_vm5, %v5097_v37, %v5098_v2  ;;  %v7283_v48 = vld [vmem:[%s7514_s19 + $0xd8] sm:$0xff]  ;;  %v5105_v35 = vrot.slane %v7285_v22, 1  ;;  %v7297_v37 = vld [vmem:[%s7514_s19 + $0x150] sm:$0xff]  ;;  %v7299_v2 = vld [vmem:[%s7514_s19 + $0x148] sm:$0xff] }
 0x4e0   : > { %v9149_v50 = vsel %vm1373_vm5, %v5100_v17, %v5101_v19  ;;  %v9153_v10 = vsel %vm1373_vm5, %v5099_v52, %v5100_v17  ;;  %v5106_v16 = vrot.slane %v7286_v6, 1  ;;  %v5104_v31 = vrot.slane %v7287_v36, 1  ;;  %v7298_v24 = vld [vmem:[%s7514_s19 + $0x158] sm:$0xff] }
 0x4e1   : > { %6794 = vmatprep.mubr.msk.bf16.mxu0 %vm1621_vm3, %v4791_v26  ;;  %v7284_v26 = vld [vmem:[%s7514_s19 + $0xe0] sm:$0xff]  ;;  %v5108_v15 = vrot.slane %v7288_v43, 1  ;;  %v5109_v60 = vrot.slane %v7289_v63, 1  ;;  %v5107_v34 = vrot.slane %v7290_v57, 1  ;;  %v5110_v20 = vrot.slane %v7291_v39, 1  ;;  %v7303_v22 = vld [vmem:[%s7514_s19 + $0x178] sm:$0xff] }
 0x4e2   : > { %6795 = vmatmul.mubr.msk.bf16.gmra.mrb[200].mxu0 %vm1621_vm3, %v4792_v0  ;;  %v5102_v0 = vrot.slane %v7283_v48, 1  ;;  %v5103_v11 = vrot.slane %v7284_v26, 1  ;;  %v9166_v47 = vsel %vm1373_vm5, %v5105_v35, %v5106_v16  ;;  %v5112_v55 = vrot.slane %v7292_v21, 1  ;;  %v7301_v48 = vld [vmem:[%s7514_s19 + $0x170] sm:$0xff]  ;;  %v7302_v26 = vld [vmem:[%s7514_s19 + $0x160] sm:$0xff] }
 0x4e3   : > { %v9178_v25 = vsel %vm1373_vm5, %v5108_v15, %v5109_v60  ;;  %v9182_v56 = vsel %vm1373_vm5, %v5106_v16, %v5107_v34  ;;  %v9186_v53 = vsel %vm1373_vm5, %v5109_v60, %v5110_v20  ;;  %v5113_v18 = vrot.slane %v7293_v1, 1  ;;  %v7305_v15 = vld [vmem:[%s7514_s19 + $0x190] sm:$0xff]  ;;  %v7306_v60 = vld [vmem:[%s7514_s19 + $0x180] sm:$0xff] }
 0x4e4   : > { %v9162_v28 = vsel %vm1373_vm5, %v5102_v0, %v5103_v11  ;;  %v9170_v5 = vsel %vm1373_vm5, %v5103_v11, %v5104_v31  ;;  %v5111_v49 = vrot.slane %v7294_v3, 1  ;;  %v5114_v45 = vrot.slane %v7295_v42, 1  ;;  %v7304_v31 = vld [vmem:[%s7514_s19 + $0x188] sm:$0xff]  ;;  %v9246_v20 = vld [vmem:[%s9483_s8] ss:$0 sm:$0xff]  ;;  %s364_s19 = sand.u32 1, %s7369_s14  }
 0x4e5   : > { %v9193_v7 = vsel %vm1373_vm5, %v5112_v55, %v5113_v18  ;;  %v5115_v29 = vrot.slane %v7296_v41, 1  ;;  %v5117_v23 = vrot.slane %v7297_v37, 1  ;;  %v5118_v8 = vrot.slane %v7298_v24, 1  ;;  %v9251_v1 = vld [vmem:[%s9484_s9] ss:$0 sm:$0xff]  ;;  %s5558_s20 = sshll.u32 %s364_s19, 7 }
 0x4e6   : > { %v9197_v13 = vsel %vm1373_vm5, %v5111_v49, %v5112_v55  ;;  %v5116_v9 = vrot.slane %v7299_v2, 1  ;;  %v5120_v52 = vrot.slane %v7300_v14, 1  ;;  %v5121_v0 = vrot.slane %v7301_v48, 1  ;;  %s9269_s22 = scalar_lea.vmem [#allocation2], %s5558_s20  ;;  %s9429_s16 = scalar_lea.sflag [#allocation3], %s364_s19 }
 0x4e7   : > { %v9206_v17 = vsel %vm1373_vm5, %v5114_v45, %v5115_v29  ;;  %v9210_v33 = vsel %vm1373_vm5, %v5117_v23, %v5118_v8  ;;  %v5119_v11 = vrot.slane %v7302_v26, 1  ;;  %v5122_v35 = vrot.slane %v7303_v22, 1  ;;  %s5478_s27 = sshll.u32 %s9269_s22, 4  ;;  %s7311_s20 = sshll.u32 %s7390_s12, 4  ;;  %s9423_s27 = int_to_ptr.vmem [resolvable:$true] %s5478_s27  ;;  %s7312_s20 = int_to_ptr.vmem [resolvable:$false] %s7311_s20 }
 0x4e8   : > { %v9214_v19 = vsel %vm1373_vm5, %v5115_v29, %v5116_v9  ;;  %v9222_v6 = vsel %vm1373_vm5, %v5120_v52, %v5121_v0  ;;  %v5124_v43 = vrot.slane %v7304_v31, 1  ;;  %v5125_v63 = vrot.slane %v7305_v15, 1  ;;  %s7307_s11 = scalar_lea.vmem %s9423_s27, 2048  ;;  %s7313_s24 = scalar_lea.vmem %s7312_s20, 4096 }
 0x4e9   : > { %v9226_v16 = vsel %vm1373_vm5, %v5118_v8, %v5119_v11  ;;  %v9230_v36 = vsel %vm1373_vm5, %v5121_v0, %v5122_v35  ;;  %v5123_v57 = vrot.slane %v7306_v60, 1  ;;  %p7308_p12 = scmp.ne.s32.totalorder %s9423_s27, %s7307_s11  ;;  %p7314_p1 = scmp.lt.s32.totalorder %s9423_s27, %s7312_s20 }
 0x4ea   : > { %v9237_v34 = vsel %vm1373_vm5, %v5124_v43, %v5125_v63  ;;  %p7315_p2 = scmp.lt.s32.totalorder %s7313_s24, %s7307_s11 }
 0x4eb   : > { %v9241_v39 = vsel %vm1373_vm5, %v5123_v57, %v5124_v43  ;;  %p7309_p13 = pnand %p7308_p12, %p7488_p4 }
 0x4ec   : > { %p7316_p3 = por %p7315_p2, %p7314_p1 }
 0x4ed   : > { %p7310_p0 = pneg %p7309_p13 }
 0x4ef   : > { %p7317_p5 = pnand %p7316_p3, %p7310_p0 }
 0x55d   : > { %v6752_v21 = vpop.f32.mrb[156].mxu0 }
 0x55e   : > { %v4903_v55 = vpop.f32.mrb[157].mxu0 }
 0x55f   : > { %v5165_v18 = vmul.f32 %v9246_v20, %v4903_v55  ;;  %v6753_v3 = vpop.f32.mrb[158].mxu0 }
 0x560   : > { %v5167_v40 = vmul.f32 %v6753_v3, %v9246_v20  ;;  %v4906_v49 = vpop.f32.mrb[159].mxu0 }
 0x561   : > { %v5204_v42 = vadd.f32 %v9251_v1, %v5165_v18  ;;  %v5166_v45 = vmul.f32 %v9246_v20, %v4906_v49 }
 0x562   : > { %v5206_v41 = vadd.f32 %v9251_v1, %v5167_v40 }
 0x563   : > { %v5236_v29 = vadd.f32 %v5204_v42, %v9069_v62  ;;  %v5205_v37 = vadd.f32 %v9251_v1, %v5166_v45 }
 0x564   : > { %v5238_v23 = vadd.f32 %v5206_v41, %v9078_v61 }
 0x565   : > { %v5268_v24 = vmax.f32 %v5236_v29, 0.0  ;;  %v5237_v8 = vadd.f32 %v5205_v37, %v9082_v46  ;;  %v6756_v2 = vpop.f32.mrb[160].mxu0 }
 0x566   : > { %v5270_v9 = vmax.f32 %v5238_v23, 0.0  ;;  %v5169_v14 = vmul.f32 %v6756_v2, %v9246_v20  ;;  %v4918_v52 = vpop.f32.mrb[161].mxu0 }
 0x567   : > { %v5877_v48 = vpack.c.bf16 %v5268_v24, %v5268_v24  ;;  %v5269_v0 = vmax.f32 %v5237_v8, 0.0  ;;  %v5168_v26 = vmul.f32 %v9246_v20, %v4918_v52  ;;  %v6757_v11 = vpop.f32.mrb[162].mxu0 }
 0x568   : > { %v5879_v22 = vpack.c.bf16 %v5270_v9, %v5270_v9  ;;  %v5208_v62 = vadd.f32 %v9251_v1, %v5169_v14  ;;  %v5170_v35 = vmul.f32 %v6757_v11, %v9246_v20  ;;  %v4921_v61 = vpop.f32.mrb[163].mxu0 }
 0x569   : > { %5429 = vst.msk [vmem:[%s9269_s22] sm:$0xf] %vm5428_vm9, %v5877_v48  ;;  %v5878_v46 = vpack.c.bf16 %v5269_v0, %v5269_v0  ;;  %v5207_v31 = vadd.f32 %v9251_v1, %v5168_v26 }
 0x56a   : > { %5431 = vst.msk [vmem:[%s9269_s22 + $0x8] sm:$0xf] %vm5428_vm9, %v5879_v22  ;;  %v5240_v43 = vadd.f32 %v5208_v62, %v9090_v27  ;;  %v5209_v15 = vadd.f32 %v9251_v1, %v5170_v35 }
 0x56b   : > { %5430 = vst.msk [vmem:[%s9269_s22 + $0x4] sm:$0xf] %vm5428_vm9, %v5878_v46  ;;  %v5239_v63 = vadd.f32 %v5207_v31, %v9094_v54 }
 0x56c   : > { %v5272_v60 = vmax.f32 %v5240_v43, 0.0  ;;  %v5241_v57 = vadd.f32 %v5209_v15, %v9098_v38 }
 0x56d   : > { %v5271_v21 = vmax.f32 %v5239_v63, 0.0  ;;  %v6760_v55 = vpop.f32.mrb[164].mxu0 }
 0x56e   : > { %v5881_v18 = vpack.c.bf16 %v5272_v60, %v5272_v60  ;;  %v5273_v3 = vmax.f32 %v5241_v57, 0.0  ;;  %v5172_v40 = vmul.f32 %v6760_v55, %v9246_v20  ;;  %v4933_v49 = vpop.f32.mrb[165].mxu0 }
 0x56f   : > { %v5880_v42 = vpack.c.bf16 %v5271_v21, %v5271_v21  ;;  %v6761_v27 = vpop.f32.mrb[166].mxu0 }
 0x570   : > { %5433 = vst.msk [vmem:[%s9269_s22 + $0x10] sm:$0xf] %vm5428_vm9, %v5881_v18  ;;  %v5882_v45 = vpack.c.bf16 %v5273_v3, %v5273_v3  ;;  %v5211_v41 = vadd.f32 %v9251_v1, %v5172_v40  ;;  %v4935_v54 = vpop.f32.mrb[167].mxu0 }
 0x571   : > { %5432 = vst.msk [vmem:[%s9269_s22 + $0xc] sm:$0xf] %vm5428_vm9, %v5880_v42  ;;  %v5171_v38 = vmul.f32 %v9246_v20, %v4935_v54 }
 0x572   : > { %5434 = vst.msk [vmem:[%s9269_s22 + $0x14] sm:$0xf] %vm5428_vm9, %v5882_v45  ;;  %v5243_v29 = vadd.f32 %v5211_v41, %v9105_v59 }
 0x573   : > { %v5210_v37 = vadd.f32 %v9251_v1, %v5171_v38 }
 0x574   : > { %v5275_v23 = vmax.f32 %v5243_v29, 0.0 }
 0x575   : > { %v5242_v24 = vadd.f32 %v5210_v37, %v9109_v4  ;;  %v6764_v8 = vpop.f32.mrb[168].mxu0 }
 0x576   : > { %v5884_v2 = vpack.c.bf16 %v5275_v23, %v5275_v23  ;;  %v4947_v9 = vpop.f32.mrb[169].mxu0 }
 0x577   : > { %v5274_v14 = vmax.f32 %v5242_v24, 0.0  ;;  %v5173_v52 = vmul.f32 %v9246_v20, %v4947_v9  ;;  %v6765_v48 = vpop.f32.mrb[170].mxu0 }
 0x578   : > { %5436 = vst.msk [vmem:[%s9269_s22 + $0x1c] sm:$0xf] %vm5428_vm9, %v5884_v2  ;;  %v5175_v0 = vmul.f32 %v6765_v48, %v9246_v20  ;;  %v4950_v26 = vpop.f32.mrb[171].mxu0 }
 0x579   : > { %v5883_v11 = vpack.c.bf16 %v5274_v14, %v5274_v14  ;;  %v5212_v59 = vadd.f32 %v9251_v1, %v5173_v52  ;;  %v5174_v22 = vmul.f32 %v9246_v20, %v4950_v26 }
 0x57a   : > { %v5214_v62 = vadd.f32 %v9251_v1, %v5175_v0 }
 0x57b   : > { %5435 = vst.msk [vmem:[%s9269_s22 + $0x18] sm:$0xf] %vm5428_vm9, %v5883_v11  ;;  %v5244_v4 = vadd.f32 %v5212_v59, %v9118_v30  ;;  %v5213_v35 = vadd.f32 %v9251_v1, %v5174_v22 }
 0x57c   : > { %v5246_v61 = vadd.f32 %v5214_v62, %v9122_v58 }
 0x57d   : > { %v5276_v46 = vmax.f32 %v5244_v4, 0.0  ;;  %v5245_v31 = vadd.f32 %v5213_v35, %v9126_v51  ;;  %v6768_v43 = vpop.f32.mrb[172].mxu0 }
 0x57e   : > { %v5278_v15 = vmax.f32 %v5246_v61, 0.0  ;;  %v5177_v63 = vmul.f32 %v6768_v43, %v9246_v20  ;;  %v4962_v60 = vpop.f32.mrb[173].mxu0 }
 0x57f   : > { %v5885_v57 = vpack.c.bf16 %v5276_v46, %v5276_v46  ;;  %v5277_v21 = vmax.f32 %v5245_v31, 0.0  ;;  %v5176_v55 = vmul.f32 %v9246_v20, %v4962_v60  ;;  %v6769_v30 = vpop.f32.mrb[174].mxu0 }
 0x580   : > { %v5887_v18 = vpack.c.bf16 %v5278_v15, %v5278_v15  ;;  %v5216_v3 = vadd.f32 %v9251_v1, %v5177_v63  ;;  %v5178_v58 = vmul.f32 %v6769_v30, %v9246_v20  ;;  %v4965_v40 = vpop.f32.mrb[175].mxu0 }
 0x581   : > { %5437 = vst.msk [vmem:[%s9269_s22 + $0x20] sm:$0xf] %vm5428_vm9, %v5885_v57  ;;  %v5886_v51 = vpack.c.bf16 %v5277_v21, %v5277_v21  ;;  %v5215_v49 = vadd.f32 %v9251_v1, %v5176_v55 }
 0x582   : > { %5439 = vst.msk [vmem:[%s9269_s22 + $0x28] sm:$0xf] %vm5428_vm9, %v5887_v18  ;;  %v5248_v42 = vadd.f32 %v5216_v3, %v9134_v32  ;;  %v5217_v27 = vadd.f32 %v9251_v1, %v5178_v58 }
 0x583   : > { %5438 = vst.msk [vmem:[%s9269_s22 + $0x24] sm:$0xf] %vm5428_vm9, %v5886_v51  ;;  %v5247_v45 = vadd.f32 %v5215_v49, %v9138_v44 }
 0x584   : > { %v5280_v41 = vmax.f32 %v5248_v42, 0.0  ;;  %v5249_v54 = vadd.f32 %v5217_v27, %v9142_v12 }
 0x585   : > { %v5279_v38 = vmax.f32 %v5247_v45, 0.0  ;;  %v6772_v29 = vpop.f32.mrb[176].mxu0 }
 0x586   : > { %v5889_v37 = vpack.c.bf16 %v5280_v41, %v5280_v41  ;;  %v5281_v23 = vmax.f32 %v5249_v54, 0.0  ;;  %v5180_v24 = vmul.f32 %v6772_v29, %v9246_v20  ;;  %v4977_v8 = vpop.f32.mrb[177].mxu0 }
 0x587   : > { %v5888_v2 = vpack.c.bf16 %v5279_v38, %v5279_v38  ;;  %v6773_v32 = vpop.f32.mrb[178].mxu0 }
 0x588   : > { %5441 = vst.msk [vmem:[%s9269_s22 + $0x30] sm:$0xf] %vm5428_vm9, %v5889_v37  ;;  %v5890_v9 = vpack.c.bf16 %v5281_v23, %v5281_v23  ;;  %v5219_v14 = vadd.f32 %v9251_v1, %v5180_v24  ;;  %v4979_v44 = vpop.f32.mrb[179].mxu0 }
 0x589   : > { %5440 = vst.msk [vmem:[%s9269_s22 + $0x2c] sm:$0xf] %vm5428_vm9, %v5888_v2  ;;  %v5179_v12 = vmul.f32 %v9246_v20, %v4979_v44 }
 0x58a   : > { %5442 = vst.msk [vmem:[%s9269_s22 + $0x34] sm:$0xf] %vm5428_vm9, %v5890_v9  ;;  %v5251_v52 = vadd.f32 %v5219_v14, %v9149_v50 }
 0x58b   : > { %v5218_v48 = vadd.f32 %v9251_v1, %v5179_v12 }
 0x58c   : > { %v5283_v0 = vmax.f32 %v5251_v52, 0.0 }
 0x58d   : > { %v5250_v26 = vadd.f32 %v5218_v48, %v9153_v10  ;;  %v6776_v11 = vpop.f32.mrb[180].mxu0 }
 0x58e   : > { %v5892_v59 = vpack.c.bf16 %v5283_v0, %v5283_v0  ;;  %v4991_v22 = vpop.f32.mrb[181].mxu0 }
 0x58f   : > { %v5282_v62 = vmax.f32 %v5250_v26, 0.0  ;;  %v5181_v4 = vmul.f32 %v9246_v20, %v4991_v22  ;;  %v6777_v35 = vpop.f32.mrb[182].mxu0 }
 0x590   : > { %5444 = vst.msk [vmem:[%s9269_s22 + $0x3c] sm:$0xf] %vm5428_vm9, %v5892_v59  ;;  %v5183_v61 = vmul.f32 %v6777_v35, %v9246_v20  ;;  %v4994_v46 = vpop.f32.mrb[183].mxu0 }
 0x591   : > { %v5891_v31 = vpack.c.bf16 %v5282_v62, %v5282_v62  ;;  %v5220_v50 = vadd.f32 %v9251_v1, %v5181_v4  ;;  %v5182_v43 = vmul.f32 %v9246_v20, %v4994_v46 }
 0x592   : > { %v5222_v15 = vadd.f32 %v9251_v1, %v5183_v61 }
 0x593   : > { %5443 = vst.msk [vmem:[%s9269_s22 + $0x38] sm:$0xf] %vm5428_vm9, %v5891_v31  ;;  %v5252_v10 = vadd.f32 %v5220_v50, %v9162_v28  ;;  %v5221_v63 = vadd.f32 %v9251_v1, %v5182_v43 }
 0x594   : > { %v5254_v60 = vadd.f32 %v5222_v15, %v9166_v47 }
 0x595   : > { %v5284_v57 = vmax.f32 %v5252_v10, 0.0  ;;  %v5253_v21 = vadd.f32 %v5221_v63, %v9170_v5  ;;  %v6780_v55 = vpop.f32.mrb[184].mxu0 }
 0x596   : > { %v5286_v30 = vmax.f32 %v5254_v60, 0.0  ;;  %v5185_v18 = vmul.f32 %v6780_v55, %v9246_v20  ;;  %v5006_v3 = vpop.f32.mrb[185].mxu0 }
 0x597   : > { %v5893_v58 = vpack.c.bf16 %v5284_v57, %v5284_v57  ;;  %v5285_v40 = vmax.f32 %v5253_v21, 0.0  ;;  %v5184_v51 = vmul.f32 %v9246_v20, %v5006_v3  ;;  %v6781_v28 = vpop.f32.mrb[186].mxu0 }
 0x598   : > { %v5895_v49 = vpack.c.bf16 %v5286_v30, %v5286_v30  ;;  %v5224_v42 = vadd.f32 %v9251_v1, %v5185_v18  ;;  %v5186_v47 = vmul.f32 %v6781_v28, %v9246_v20  ;;  %v5009_v27 = vpop.f32.mrb[187].mxu0 }
 0x599   : > { %5445 = vst.msk [vmem:[%s9269_s22 + $0x40] sm:$0xf] %vm5428_vm9, %v5893_v58  ;;  %v5894_v5 = vpack.c.bf16 %v5285_v40, %v5285_v40  ;;  %v5223_v45 = vadd.f32 %v9251_v1, %v5184_v51 }
 0x59a   : > { %5447 = vst.msk [vmem:[%s9269_s22 + $0x48] sm:$0xf] %vm5428_vm9, %v5895_v49  ;;  %v5256_v41 = vadd.f32 %v5224_v42, %v9178_v25  ;;  %v5225_v54 = vadd.f32 %v9251_v1, %v5186_v47 }
 0x59b   : > { %5446 = vst.msk [vmem:[%s9269_s22 + $0x44] sm:$0xf] %vm5428_vm9, %v5894_v5  ;;  %v5255_v38 = vadd.f32 %v5223_v45, %v9182_v56 }
 0x59c   : > { %v5288_v29 = vmax.f32 %v5256_v41, 0.0  ;;  %v5257_v37 = vadd.f32 %v5225_v54, %v9186_v53 }
 0x59d   : > { %v5287_v23 = vmax.f32 %v5255_v38, 0.0  ;;  %v6784_v24 = vpop.f32.mrb[188].mxu0 }
 0x59e   : > { %v5897_v8 = vpack.c.bf16 %v5288_v29, %v5288_v29  ;;  %v5289_v2 = vmax.f32 %v5257_v37, 0.0  ;;  %v5188_v32 = vmul.f32 %v6784_v24, %v9246_v20  ;;  %v5021_v9 = vpop.f32.mrb[189].mxu0 }
 0x59f   : > { %v5896_v14 = vpack.c.bf16 %v5287_v23, %v5287_v23  ;;  %v6785_v25 = vpop.f32.mrb[190].mxu0 }
 0x5a0   : > { %5449 = vst.msk [vmem:[%s9269_s22 + $0x50] sm:$0xf] %vm5428_vm9, %v5897_v8  ;;  %v5898_v44 = vpack.c.bf16 %v5289_v2, %v5289_v2  ;;  %v5227_v12 = vadd.f32 %v9251_v1, %v5188_v32  ;;  %v5023_v56 = vpop.f32.mrb[191].mxu0 }
 0x5a1   : > { %5448 = vst.msk [vmem:[%s9269_s22 + $0x4c] sm:$0xf] %vm5428_vm9, %v5896_v14  ;;  %v5187_v53 = vmul.f32 %v9246_v20, %v5023_v56 }
 0x5a2   : > { %5450 = vst.msk [vmem:[%s9269_s22 + $0x54] sm:$0xf] %vm5428_vm9, %v5898_v44  ;;  %v5259_v52 = vadd.f32 %v5227_v12, %v9193_v7 }
 0x5a3   : > { %v5226_v48 = vadd.f32 %v9251_v1, %v5187_v53 }
 0x5a4   : > { %v5291_v0 = vmax.f32 %v5259_v52, 0.0 }
 0x5a5   : > { %v5258_v26 = vadd.f32 %v5226_v48, %v9197_v13  ;;  %v6788_v11 = vpop.f32.mrb[192].mxu0 }
 0x5a6   : > { %v5900_v59 = vpack.c.bf16 %v5291_v0, %v5291_v0  ;;  %v5035_v22 = vpop.f32.mrb[193].mxu0 }
 0x5a7   : > { %v5290_v62 = vmax.f32 %v5258_v26, 0.0  ;;  %v5189_v4 = vmul.f32 %v9246_v20, %v5035_v22  ;;  %v6789_v35 = vpop.f32.mrb[194].mxu0 }
 0x5a8   : > { %5452 = vst.msk [vmem:[%s9269_s22 + $0x5c] sm:$0xf] %vm5428_vm9, %v5900_v59  ;;  %v5191_v61 = vmul.f32 %v6789_v35, %v9246_v20  ;;  %v5038_v46 = vpop.f32.mrb[195].mxu0 }
 0x5a9   : > { %v5899_v31 = vpack.c.bf16 %v5290_v62, %v5290_v62  ;;  %v5228_v7 = vadd.f32 %v9251_v1, %v5189_v4  ;;  %v5190_v50 = vmul.f32 %v9246_v20, %v5038_v46 }
 0x5aa   : > { %v5230_v43 = vadd.f32 %v9251_v1, %v5191_v61 }
 0x5ab   : > { %5451 = vst.msk [vmem:[%s9269_s22 + $0x58] sm:$0xf] %vm5428_vm9, %v5899_v31  ;;  %v5260_v13 = vadd.f32 %v5228_v7, %v9206_v17  ;;  %v5229_v15 = vadd.f32 %v9251_v1, %v5190_v50 }
 0x5ac   : > { %v5262_v10 = vadd.f32 %v5230_v43, %v9210_v33 }
 0x5ad   : > { %v5292_v63 = vmax.f32 %v5260_v13, 0.0  ;;  %v5261_v60 = vadd.f32 %v5229_v15, %v9214_v19  ;;  %v6792_v57 = vpop.f32.mrb[196].mxu0 }
 0x5ae   : > { %v5294_v21 = vmax.f32 %v5262_v10, 0.0  ;;  %v5193_v55 = vmul.f32 %v6792_v57, %v9246_v20  ;;  %v5050_v30 = vpop.f32.mrb[197].mxu0 }
 0x5af   : > { %v5901_v18 = vpack.c.bf16 %v5292_v63, %v5292_v63  ;;  %v5293_v3 = vmax.f32 %v5261_v60, 0.0  ;;  %v5192_v58 = vmul.f32 %v9246_v20, %v5050_v30  ;;  %v6793_v17 = vpop.f32.mrb[198].mxu0 }
 0x5b0   : > { %v5903_v40 = vpack.c.bf16 %v5294_v21, %v5294_v21  ;;  %v5232_v51 = vadd.f32 %v9251_v1, %v5193_v55  ;;  %v5194_v33 = vmul.f32 %v6793_v17, %v9246_v20  ;;  %v5053_v28 = vpop.f32.mrb[199].mxu0 }
 0x5b1   : > { %5453 = vst.msk [vmem:[%s9269_s22 + $0x60] sm:$0xf] %vm5428_vm9, %v5901_v18  ;;  %v5902_v19 = vpack.c.bf16 %v5293_v3, %v5293_v3  ;;  %v5231_v49 = vadd.f32 %v9251_v1, %v5192_v58 }
 0x5b2   : > { %5455 = vst.msk [vmem:[%s9269_s22 + $0x68] sm:$0xf] %vm5428_vm9, %v5903_v40  ;;  %v5264_v42 = vadd.f32 %v5232_v51, %v9222_v6  ;;  %v5233_v47 = vadd.f32 %v9251_v1, %v5194_v33 }
 0x5b3   : > { %5454 = vst.msk [vmem:[%s9269_s22 + $0x64] sm:$0xf] %vm5428_vm9, %v5902_v19  ;;  %v5263_v27 = vadd.f32 %v5231_v49, %v9226_v16 }
 0x5b4   : > { %v5296_v5 = vmax.f32 %v5264_v42, 0.0  ;;  %v5265_v45 = vadd.f32 %v5233_v47, %v9230_v36 }
 0x5b5   : > { %v5295_v41 = vmax.f32 %v5263_v27, 0.0  ;;  %v6796_v54 = vpop.f32.mrb[200].mxu0 }
 0x5b6   : > { %v5905_v38 = vpack.c.bf16 %v5296_v5, %v5296_v5  ;;  %v5297_v29 = vmax.f32 %v5265_v45, 0.0  ;;  %v5196_v37 = vmul.f32 %v6796_v54, %v9246_v20  ;;  %v5065_v6 = vpop.f32.mrb[201].mxu0 }
 0x5b7   : > { %v5904_v23 = vpack.c.bf16 %v5295_v41, %v5295_v41  ;;  %v6797_v24 = vpop.f32.mrb[202].mxu0 }
 0x5b8   : > { %5457 = vst.msk [vmem:[%s9269_s22 + $0x70] sm:$0xf] %vm5428_vm9, %v5905_v38  ;;  %v5906_v8 = vpack.c.bf16 %v5297_v29, %v5297_v29  ;;  %v5235_v16 = vadd.f32 %v9251_v1, %v5196_v37  ;;  %v5067_v2 = vpop.f32.mrb[203].mxu0 }
 0x5b9   : > { %5456 = vst.msk [vmem:[%s9269_s22 + $0x6c] sm:$0xf] %vm5428_vm9, %v5904_v23  ;;  %v5195_v36 = vmul.f32 %v9246_v20, %v5067_v2 }
 0x5ba   : > { %5458 = vst.msk [vmem:[%s9269_s22 + $0x74] sm:$0xf] %vm5428_vm9, %v5906_v8  ;;  %v5267_v32 = vadd.f32 %v5235_v16, %v9237_v34 }
 0x5bb   : > { %v5234_v9 = vadd.f32 %v9251_v1, %v5195_v36 }
 0x5bc   : > { %v5299_v14 = vmax.f32 %v5267_v32, 0.0 }
 0x5bd   : > { %v5266_v25 = vadd.f32 %v5234_v9, %v9241_v39 }
 0x5be   : > { %v5908_v44 = vpack.c.bf16 %v5299_v14, %v5299_v14 }
 0x5bf   : > { %v5298_v12 = vmax.f32 %v5266_v25, 0.0 }
 0x5c0   : > { %5460 = vst.msk [vmem:[%s9269_s22 + $0x7c] sm:$0xf] %vm5428_vm9, %v5908_v44 }
 0x5c1   : > { %v5907_v34 = vpack.c.bf16 %v5298_v12, %v5298_v12 }
 0x5c3   : > { %5459 = vst.msk [vmem:[%s9269_s22 + $0x78] sm:$0xf] %vm5428_vm9, %v5907_v34 }
 0x5c4   : > { %7320 = shalt.err (!%p7317_p5)
}
 0x5c5   : > { %s7321_s19 = scalar_lea.hbm %s9421_s30, 2048  ;;  %s7325_s29 = scalar_lea.hbm %s9485_s10, 4096 }
 0x5c6   : > { %p7322_p6 = scmp.ne.s32.totalorder %s9421_s30, %s7321_s19  ;;  %p7326_p10 = scmp.lt.u32.totalorder %s9421_s30, %s9485_s10 }
 0x5c7   : > { %p7327_p11 = scmp.lt.u32.totalorder %s7325_s29, %s7321_s19  ;;  %p7329_p13 = scmp.lt.u32.totalorder %s7321_s19, %s9421_s30 }
 0x5c8   : > { %p7323_p7 = pnand %p7322_p6, %p7488_p4 }
 0x5c9   : > { %p7328_p12 = por %p7327_p11, %p7326_p10 }
 0x5ca   : > { %p7324_p9 = pneg %p7323_p7 }
 0x5cb   : > { %p7330_p0 = por %p7329_p13, %p7328_p12 }
 0x5cd   : > { %p7331_p1 = pnand %p7330_p0, %p7324_p9 }
 0x5cf   : > { %7334 = shalt.err (!%p7331_p1)
}
 0x5d0   : > { %s7391_s11 = smov 64   ;;  %s7392_s24 = smov 4  }
 0x5d1   : > { %7196 = dma.vmem_to_hbm [thread:$0]  (%p7488_p4), %s9423_s27, 2048, %s9421_s30, %s9429_s16, %s7391_s11, %s7391_s11, %s7392_s24  }
 0x5d2 PF: > { %p7202_p2 = scmp.ge.s32.totalorder %s7385_s18, 2  ;;  %s5493_s22 = sand.u32 1, %s7365_s13  }
 0x5d3   : > { %s5494_s19 = scalar_lea.sflag [#allocation3], %s5493_s22 }
 0x5d4   : > { %p7199_p3 = pnand %p7202_p2, %p7495_p8 }
 0x5d6   : > { %7360 = dma.done.wait (!%p7199_p3), %s5494_s19, 2048  }
 0x5d7   : > { %7362 = vsyncadd (!%p7199_p3), %s5494_s19, 4294965248  ;;  %s23_s18 = sadd.s32 1, %s7385_s18   ;;  %s9694_s13 = smov %s7369_s14 }
 0x5d8   : > { %p20_p5 = scmp.ge.s32.totalorder %s23_s18, 4   ;;  %s9695_s14 = smov %s7373_s15 }
 0x5d9   : > { %s9696_s15 = smov %s7501_s26  ;;  %s9697_s16 = smov %s7381_s17 }
 0x5da   : > { %s9698_s17 = smov %s9700_s21  ;;  %22 = sbr.rel (!%p20_p5) target bundleno = 4 (0x4), region = 104 }
 0x5e1   :  { %5499 = vsyncpa [#allocation3], 1 }
 0x5e2   :  { %5501 = vsyncpa [#allocation3 + $0x1], 1 }

</bundles_post_ra>
